<compile_context>
chip_gen: v7x
topology: tpu7x:2x2x1
jax: 0.10.0
libtpu: 0.0.40
codegen_flags: <defaults>
</compile_context>

<pallas_src>
import functools

import jax
import jax.numpy as jnp
from jax.experimental import pallas as pl
from jax.experimental.pallas import tpu as pltpu

_VMEM_LIMIT = 64 * 1024 * 1024  # safe on v5e/v6e/v7x, above the 16/32 MiB defaults


def default_rope_frequencies(head_dim: int, theta: float) -> jnp.ndarray:
    """1 / theta ** (arange(0, head_dim, 2) / head_dim) — matches the PyTorch helper."""
    exponents = jnp.arange(0, head_dim, 2, dtype=jnp.float32) / float(head_dim)
    return 1.0 / (theta ** exponents)


# ---------------------------------------------------------------------------
# Kernel 1: input RMSNorm + wide QKV projections + q/k head-norm + fused RoPE
# ---------------------------------------------------------------------------
def _qkv_rope_kernel(x_ref, ln_ref, wq_ref, wk_ref, wv_ref, qn_ref, kn_ref,
                     pos_ref, invs_ref, q_ref, k_ref, v_ref,
                     *, eps, num_q_heads, num_kv_heads, head_dim):
    x = x_ref[...].astype(jnp.float32)                       # (Tt, H)
    var = jnp.mean(x * x, axis=-1, keepdims=True)
    xn = x * jax.lax.rsqrt(var + eps) * ln_ref[...]          # input RMSNorm

    # RoPE angles. invs = concat([-inv_freq, inv_freq]) so that
    #   cos(ang) = concat([cos f, cos f]),  sin(ang) = concat([-sin f, sin f])
    # which turns  q*cos + rotate_half(q)*sin  into the fully lane-dense
    #   q*cos(ang) + roll(q, head_dim//2)*sin(ang).
    ang = pos_ref[...].astype(jnp.float32) * invs_ref[...]   # (Tt,1)*(1,D) -> (Tt,D)
    cos_t = jnp.cos(ang)
    sin_t = jnp.sin(ang)
    half = head_dim // 2

    # One full-depth matmul per projection (fills the 256-wide MXU on v6e/v7x).
    q_all = jnp.dot(xn, wq_ref[...], preferred_element_type=jnp.float32)  # (Tt, nq*D)
    k_all = jnp.dot(xn, wk_ref[...], preferred_element_type=jnp.float32)  # (Tt, nkv*D)
    v_all = jnp.dot(xn, wv_ref[...], preferred_element_type=jnp.float32)  # (Tt, nkv*D)

    def _head_norm_rope(y, w):
        v2 = jnp.mean(y * y, axis=-1, keepdims=True)
        yn = y * jax.lax.rsqrt(v2 + eps) * w                 # per-head RMSNorm
        return yn * cos_t + pltpu.roll(yn, shift=half, axis=1) * sin_t

    for h in range(num_q_heads):                              # 128-lane aligned slices
        qh = q_all[:, h * head_dim:(h + 1) * head_dim]
        q_ref[h, :, :] = _head_norm_rope(qh, qn_ref[...]).astype(q_ref.dtype)

    for h in range(num_kv_heads):
        kh = k_all[:, h * head_dim:(h + 1) * head_dim]
        k_ref[h, :, :] = _head_norm_rope(kh, kn_ref[...]).astype(k_ref.dtype)
        v_ref[h, :, :] = v_all[:, h * head_dim:(h + 1) * head_dim].astype(v_ref.dtype)


# ---------------------------------------------------------------------------
# Kernel 2: attention + o_proj + residual, one GQA group per grid step.
# kv-head axis is a reduction accumulating into a (S, H) f32 accumulator.
# ---------------------------------------------------------------------------
def _attn_oproj_kernel(q_ref, k_ref, v_ref, m_ref, wo_ref, res_ref, out_ref,
                       acc_ref, *, scale, group, num_kv_heads):
    kv = pl.program_id(1)

    @pl.when(kv == 0)
    def _():
        acc_ref[...] = res_ref[0].astype(jnp.float32)         # seed with residual

    k = k_ref[0, 0].astype(jnp.float32)                       # (S, D)
    v = v_ref[0, 0]                                           # (S, D)
    m = m_ref[0, 0].astype(jnp.float32)                       # (S, S) additive mask

    acc = acc_ref[...]
    for g in range(group):                                    # K/V resident across group
        q = q_ref[g, 0].astype(jnp.float32)                   # (S, D)
        s = jax.lax.dot_general(q, k, (((1,), (1,)), ((), ())),
                                preferred_element_type=jnp.float32) * scale + m
        s = s - jnp.max(s, axis=-1, keepdims=True)
        p = jnp.exp(s)
        rowsum = jnp.sum(p, axis=-1, keepdims=True)
        o = jnp.dot(p.astype(v.dtype), v, preferred_element_type=jnp.float32)
        o = o * pl.reciprocal(rowsum, approx=True)            # EUP, not S^2 VPU divides
        acc = acc + jnp.dot(o, wo_ref[g], preferred_element_type=jnp.float32)
    acc_ref[...] = acc

    @pl.when(kv == num_kv_heads - 1)
    def _():
        out_ref[0] = acc_ref[...].astype(out_ref.dtype)


# ---------------------------------------------------------------------------
# Kernel 3: post-attention RMSNorm + SiLU MLP (intermediate-dim tiled) + residual
# ---------------------------------------------------------------------------
def _mlp_kernel(h_ref, ln_ref, wg_ref, wu_ref, wd_ref, out_ref, xn_ref, acc_ref,
                *, eps):
    j = pl.program_id(1)
    nj = pl.num_programs(1)

    @pl.when(j == 0)
    def _():
        x = h_ref[...].astype(jnp.float32)
        var = jnp.mean(x * x, axis=-1, keepdims=True)
        xn_ref[...] = x * jax.lax.rsqrt(var + eps) * ln_ref[...]
        acc_ref[...] = x                                      # residual seeds accumulator

    xn = xn_ref[...]
    g = jnp.dot(xn, wg_ref[...], preferred_element_type=jnp.float32)
    u = jnp.dot(xn, wu_ref[...], preferred_element_type=jnp.float32)
    act = g * (1.0 / (1.0 + jnp.exp(-g)))                     # SiLU
    acc_ref[...] += jnp.dot(act * u, wd_ref[...], preferred_element_type=jnp.float32)

    @pl.when(j == nj - 1)
    def _():
        out_ref[...] = acc_ref[...].astype(out_ref.dtype)


def _pick_token_tile(total_tokens: int) -> int:
    for cand in (256, 128, 64, 32, 16, 8):                    # cap at 256 (v7x VMEM)
        if total_tokens % cand == 0:
            return cand
    return total_tokens


def _pick_inter_chunk(inter: int) -> int:
    for cand in (1024, 512, 256, 128, 64, 32, 16, 8):
        if inter % cand == 0:
            return cand
    return inter


@functools.partial(jax.jit, static_argnames=("eps",))
def qwen3_decoder_layer(hidden_states, attention_mask, position_ids, params, *, eps=1e-6):
    """hidden_states (B,S,H), attention_mask (B,1,S,S) additive, position_ids (B,S) int."""
    B, S, H = hidden_states.shape
    dtype = hidden_states.dtype

    head_dim = params["q_norm_w"].shape[0]
    num_q_heads = params["wq"].shape[1] // head_dim
    num_kv_heads = params["wk"].shape[1] // head_dim
    group = num_q_heads // num_kv_heads
    inter = params["w_gate"].shape[1]

    T = B * S
    tile_t = _pick_token_tile(T)
    n_tiles = T // tile_t
    ci = _pick_inter_chunk(inter)
    n_inter = inter // ci

    x2 = hidden_states.reshape(T, H)
    pos = position_ids.reshape(T, 1)                          # int32, cast in-kernel

    inv_freq = params["inv_freq"].astype(jnp.float32)         # (head_dim // 2,)
    inv_signed = jnp.concatenate([-inv_freq, inv_freq]).reshape(1, head_dim)

    ln1_w = params["input_ln_w"].astype(jnp.float32).reshape(1, H)
    ln2_w = params["post_ln_w"].astype(jnp.float32).reshape(1, H)
    qn_w = params["q_norm_w"].astype(jnp.float32).reshape(1, head_dim)
    kn_w = params["k_norm_w"].astype(jnp.float32).reshape(1, head_dim)

    wo_h = params["wo"].reshape(num_q_heads, head_dim, H)     # free view

    cparams_1d = pltpu.CompilerParams(dimension_semantics=("parallel",),
                                      vmem_limit_bytes=_VMEM_LIMIT)
    cparams_2d = pltpu.CompilerParams(dimension_semantics=("parallel", "arbitrary"),
                                      vmem_limit_bytes=_VMEM_LIMIT)

    # ---- 1. RMSNorm + wide QKV + q/k-norm + fused RoPE -----------------------
    q_rot, k_rot, v_heads = pl.pallas_call(
        functools.partial(_qkv_rope_kernel, eps=eps, num_q_heads=num_q_heads,
                          num_kv_heads=num_kv_heads, head_dim=head_dim),
        out_shape=(
            jax.ShapeDtypeStruct((num_q_heads, T, head_dim), dtype),
            jax.ShapeDtypeStruct((num_kv_heads, T, head_dim), dtype),
            jax.ShapeDtypeStruct((num_kv_heads, T, head_dim), dtype),
        ),
        grid=(n_tiles,),
        in_specs=[
            pl.BlockSpec((tile_t, H), lambda i: (i, 0)),
            pl.BlockSpec((1, H), lambda i: (0, 0)),
            pl.BlockSpec((H, num_q_heads * head_dim), lambda i: (0, 0)),
            pl.BlockSpec((H, num_kv_heads * head_dim), lambda i: (0, 0)),
            pl.BlockSpec((H, num_kv_heads * head_dim), lambda i: (0, 0)),
            pl.BlockSpec((1, head_dim), lambda i: (0, 0)),
            pl.BlockSpec((1, head_dim), lambda i: (0, 0)),
            pl.BlockSpec((tile_t, 1), lambda i: (i, 0)),
            pl.BlockSpec((1, head_dim), lambda i: (0, 0)),
        ],
        out_specs=(
            pl.BlockSpec((num_q_heads, tile_t, head_dim), lambda i: (0, i, 0)),
            pl.BlockSpec((num_kv_heads, tile_t, head_dim), lambda i: (0, i, 0)),
            pl.BlockSpec((num_kv_heads, tile_t, head_dim), lambda i: (0, i, 0)),
        ),
        compiler_params=cparams_1d,
    )(x2, ln1_w, params["wq"], params["wk"], params["wv"], qn_w, kn_w, pos, inv_signed)

    # ---- 2. attention + o_proj + residual (one GQA group per step) -----------
    q4 = q_rot.reshape(num_q_heads, B, S, head_dim)
    k4 = k_rot.reshape(num_kv_heads, B, S, head_dim)
    v4 = v_heads.reshape(num_kv_heads, B, S, head_dim)

    attn_res = pl.pallas_call(
        functools.partial(_attn_oproj_kernel, scale=float(head_dim) ** -0.5,
                          group=group, num_kv_heads=num_kv_heads),
        out_shape=jax.ShapeDtypeStruct((B, S, H), dtype),
        grid=(B, num_kv_heads),
        in_specs=[
            pl.BlockSpec((group, 1, S, head_dim), lambda b, kv: (kv, b, 0, 0)),
            pl.BlockSpec((1, 1, S, head_dim), lambda b, kv: (kv, b, 0, 0)),
            pl.BlockSpec((1, 1, S, head_dim), lambda b, kv: (kv, b, 0, 0)),
            pl.BlockSpec((1, 1, S, S), lambda b, kv: (b, 0, 0, 0)),
            pl.BlockSpec((group, head_dim, H), lambda b, kv: (kv, 0, 0)),
            pl.BlockSpec((1, S, H), lambda b, kv: (b, 0, 0)),
        ],
        out_specs=pl.BlockSpec((1, S, H), lambda b, kv: (b, 0, 0)),
        scratch_shapes=[pltpu.VMEM((S, H), jnp.float32)],
        compiler_params=cparams_2d,
    )(q4, k4, v4, attention_mask, wo_h, hidden_states)

    # ---- 3. post-attention RMSNorm + MLP (inter-tiled) + residual -------------
    attn_flat = attn_res.reshape(T, H)
    out = pl.pallas_call(
        functools.partial(_mlp_kernel, eps=eps),
        out_shape=jax.ShapeDtypeStruct((T, H), dtype),
        grid=(n_tiles, n_inter),
        in_specs=[
            pl.BlockSpec((tile_t, H), lambda i, j: (i, 0)),
            pl.BlockSpec((1, H), lambda i, j: (0, 0)),
            pl.BlockSpec((H, ci), lambda i, j: (0, j)),
            pl.BlockSpec((H, ci), lambda i, j: (0, j)),
            pl.BlockSpec((ci, H), lambda i, j: (j, 0)),
        ],
        out_specs=pl.BlockSpec((tile_t, H), lambda i, j: (i, 0)),
        scratch_shapes=[pltpu.VMEM((tile_t, H), jnp.float32),
                        pltpu.VMEM((tile_t, H), jnp.float32)],
        compiler_params=cparams_2d,
    )(attn_flat, ln2_w, params["w_gate"], params["w_up"], params["w_down"])

    return out.reshape(B, S, H)


# ---------------------------------------------------------------------------
# Pure-JAX reference (mirrors the PyTorch module line-by-line)
# ---------------------------------------------------------------------------
def _rms_ref(v, w, eps):
    vf = v.astype(jnp.float32)
    var = jnp.mean(vf * vf, axis=-1, keepdims=True)
    return w * (vf * jax.lax.rsqrt(var + eps)).astype(v.dtype)


def ref_decoder_layer(x, attention_mask, position_ids, params, eps):
    B, S, H = x.shape
    head_dim = params["q_norm_w"].shape[0]
    num_q_heads = params["wq"].shape[1] // head_dim
    num_kv_heads = params["wk"].shape[1] // head_dim
    hp = jax.lax.Precision.HIGHEST

    inv_freq = params["inv_freq"].astype(jnp.float32)
    freqs = position_ids.astype(jnp.float32)[..., None] * inv_freq[None, None, :]
    emb = jnp.concatenate([freqs, freqs], axis=-1)
    cos = jnp.cos(emb).astype(x.dtype)[:, None, :, :]
    sin = jnp.sin(emb).astype(x.dtype)[:, None, :, :]

    h1 = _rms_ref(x, params["input_ln_w"], eps)
    q = jnp.einsum("bsh,hd->bsd", h1, params["wq"], precision=hp)
    k = jnp.einsum("bsh,hd->bsd", h1, params["wk"], precision=hp)
    v = jnp.einsum("bsh,hd->bsd", h1, params["wv"], precision=hp)
    q = q.reshape(B, S, num_q_heads, head_dim)
    k = k.reshape(B, S, num_kv_heads, head_dim)
    v = v.reshape(B, S, num_kv_heads, head_dim)
    q = _rms_ref(q, params["q_norm_w"], eps).transpose(0, 2, 1, 3)
    k = _rms_ref(k, params["k_norm_w"], eps).transpose(0, 2, 1, 3)
    v = v.transpose(0, 2, 1, 3)

    def rotate_half(t):
        t1, t2 = t[..., : head_dim // 2], t[..., head_dim // 2:]
        return jnp.concatenate([-t2, t1], axis=-1)

    q = q * cos + rotate_half(q) * sin
    k = k * cos + rotate_half(k) * sin

    rep = num_q_heads // num_kv_heads
    k = jnp.repeat(k, rep, axis=1)
    v = jnp.repeat(v, rep, axis=1)

    scores = jnp.einsum("bhqd,bhkd->bhqk", q, k, precision=hp) * head_dim ** -0.5
    scores = scores + attention_mask
    p = jax.nn.softmax(scores.astype(jnp.float32), axis=-1).astype(x.dtype)
    attn = jnp.einsum("bhqk,bhkd->bhqd", p, v, precision=hp)
    attn = attn.transpose(0, 2, 1, 3).reshape(B, S, num_q_heads * head_dim)
    attn = jnp.einsum("bsd,dh->bsh", attn, params["wo"], precision=hp)

    h = x + attn
    h2 = _rms_ref(h, params["post_ln_w"], eps)
    g = jnp.einsum("bsh,hi->bsi", h2, params["w_gate"], precision=hp)
    u = jnp.einsum("bsh,hi->bsi", h2, params["w_up"], precision=hp)
    mlp = jnp.einsum("bsi,ih->bsh", jax.nn.silu(g) * u, params["w_down"], precision=hp)
    return h + mlp


if __name__ == "__main__":
    # Small shapes consistent with the module (real Qwen3 head_dim=128 kept so all
    # RoPE / attention lane dims are 128-aligned).
    B, S = 2, 8
    HIDDEN = 64
    NUM_HEADS, NUM_KV_HEADS = 4, 2
    HEAD_DIM = 128
    INTERMEDIATE = 128
    EPS = 1e-6
    ROPE_THETA = 10000.0
    dtype = jnp.float32

    key = jax.random.PRNGKey(0)
    ks = jax.random.split(key, 12)

    def winit(k, shape, scale=0.08):
        return (scale * jax.random.normal(k, shape, dtype=jnp.float32)).astype(dtype)

    def ninit(k, shape):
        return (1.0 + 0.1 * jax.random.normal(k, shape, dtype=jnp.float32)).astype(dtype)

    params = {
        "input_ln_w": ninit(ks[0], (HIDDEN,)),
        "wq": winit(ks[1], (HIDDEN, NUM_HEADS * HEAD_DIM)),
        "wk": winit(ks[2], (HIDDEN, NUM_KV_HEADS * HEAD_DIM)),
        "wv": winit(ks[3], (HIDDEN, NUM_KV_HEADS * HEAD_DIM)),
        "q_norm_w": ninit(ks[4], (HEAD_DIM,)),
        "k_norm_w": ninit(ks[5], (HEAD_DIM,)),
        "wo": winit(ks[6], (NUM_HEADS * HEAD_DIM, HIDDEN)),
        "post_ln_w": ninit(ks[7], (HIDDEN,)),
        "w_gate": winit(ks[8], (HIDDEN, INTERMEDIATE)),
        "w_up": winit(ks[9], (HIDDEN, INTERMEDIATE)),
        "w_down": winit(ks[10], (INTERMEDIATE, HIDDEN)),
        "inv_freq": default_rope_frequencies(HEAD_DIM, ROPE_THETA),
    }

    x = jax.random.normal(ks[11], (B, S, HIDDEN), dtype=dtype)
    position_ids = (jnp.arange(S, dtype=jnp.int32)[None, :]
                    + jnp.arange(B, dtype=jnp.int32)[:, None])     # distinct per batch
    causal = jnp.tril(jnp.ones((S, S), dtype=bool))
    base_mask = jnp.where(causal, 0.0, -1e9).astype(jnp.float32)
    attention_mask = jnp.tile(base_mask[None, None, :, :], (B, 1, 1, 1))

    out = qwen3_decoder_layer(x, attention_mask, position_ids, params, eps=EPS)
    jax.block_until_ready(out)

    ref = ref_decoder_layer(x, attention_mask, position_ids, params, EPS)

    assert out.shape == (B, S, HIDDEN) and out.dtype == dtype
    max_err = float(jnp.max(jnp.abs(out - ref)))
    assert jnp.allclose(out, ref, atol=2e-2, rtol=2e-2), f"max abs err={max_err}"
    print("KERNEL_OK")
</pallas_src>

<mosaic_0001>
module attributes {stable_mosaic.version = 11 : i64} {
  func.func @_qkv_rope_kernel(%arg0: i32, %arg1: memref<16x64xf32, #tpu.memory_space<vmem>>, %arg2: memref<1x64xf32, #tpu.memory_space<vmem>>, %arg3: memref<64x512xf32, #tpu.memory_space<vmem>>, %arg4: memref<64x256xf32, #tpu.memory_space<vmem>>, %arg5: memref<64x256xf32, #tpu.memory_space<vmem>>, %arg6: memref<1x128xf32, #tpu.memory_space<vmem>>, %arg7: memref<1x128xf32, #tpu.memory_space<vmem>>, %arg8: memref<16x1xi32, #tpu.memory_space<vmem>>, %arg9: memref<1x128xf32, #tpu.memory_space<vmem>>, %arg10: memref<4x16x128xf32, #tpu.memory_space<vmem>>, %arg11: memref<2x16x128xf32, #tpu.memory_space<vmem>>, %arg12: memref<2x16x128xf32, #tpu.memory_space<vmem>>) attributes {dimension_semantics = [#tpu.dimension_semantics<parallel>], iteration_bounds = array<i64: 1>, scalar_prefetch = 0 : i64, scratch_operands = 0 : i64, tpu.core_type = #tpu.core_type<tc>, window_params = [{transform_indices = @transform_0, window_bounds = array<i64: 16, 64>}, {pipeline_mode = #tpu.pipeline_mode<synchronous>, transform_indices = @transform_1, window_bounds = array<i64: 1, 64>}, {pipeline_mode = #tpu.pipeline_mode<synchronous>, transform_indices = @transform_2, window_bounds = array<i64: 64, 512>}, {pipeline_mode = #tpu.pipeline_mode<synchronous>, transform_indices = @transform_3, window_bounds = array<i64: 64, 256>}, {pipeline_mode = #tpu.pipeline_mode<synchronous>, transform_indices = @transform_4, window_bounds = array<i64: 64, 256>}, {pipeline_mode = #tpu.pipeline_mode<synchronous>, transform_indices = @transform_5, window_bounds = array<i64: 1, 128>}, {pipeline_mode = #tpu.pipeline_mode<synchronous>, transform_indices = @transform_6, window_bounds = array<i64: 1, 128>}, {transform_indices = @transform_7, window_bounds = array<i64: 16, 1>}, {pipeline_mode = #tpu.pipeline_mode<synchronous>, transform_indices = @transform_8, window_bounds = array<i64: 1, 128>}, {transform_indices = @transform_9, window_bounds = array<i64: 4, 16, 128>}, {transform_indices = @transform_10, window_bounds = array<i64: 2, 16, 128>}, {transform_indices = @transform_11, window_bounds = array<i64: 2, 16, 128>}]} {
    %c0 = arith.constant 0 : index
    %c0_0 = arith.constant 0 : index
    %0 = vector.load %arg1[%c0, %c0_0] : memref<16x64xf32, #tpu.memory_space<vmem>>, vector<16x64xf32>
    %1 = arith.mulf %0, %0 : vector<16x64xf32>
    %cst = arith.constant dense<0.000000e+00> : vector<16xf32>
    %2 = vector.multi_reduction <add>, %1, %cst [1] : vector<16x64xf32> to vector<16xf32>
    %3 = vector.shape_cast %2 : vector<16xf32> to vector<16x1xf32>
    %cst_1 = arith.constant 6.400000e+01 : f32
    %4 = vector.broadcast %cst_1 : f32 to vector<16x1xf32>
    %5 = arith.divf %3, %4 : vector<16x1xf32>
    %cst_2 = arith.constant 9.99999997E-7 : f32
    %6 = vector.broadcast %cst_2 : f32 to vector<16x1xf32>
    %7 = arith.addf %5, %6 : vector<16x1xf32>
    %8 = math.rsqrt %7 : vector<16x1xf32>
    %9 = vector.broadcast %8 : vector<16x1xf32> to vector<16x64xf32>
    %10 = arith.mulf %0, %9 : vector<16x64xf32>
    %c0_3 = arith.constant 0 : index
    %c0_4 = arith.constant 0 : index
    %11 = vector.load %arg2[%c0_3, %c0_4] : memref<1x64xf32, #tpu.memory_space<vmem>>, vector<1x64xf32>
    %12 = vector.broadcast %11 : vector<1x64xf32> to vector<16x64xf32>
    %13 = arith.mulf %10, %12 : vector<16x64xf32>
    %c0_5 = arith.constant 0 : index
    %c0_6 = arith.constant 0 : index
    %14 = vector.load %arg8[%c0_5, %c0_6] : memref<16x1xi32, #tpu.memory_space<vmem>>, vector<16x1xi32>
    %15 = arith.sitofp %14 : vector<16x1xi32> to vector<16x1xf32>
    %c0_7 = arith.constant 0 : index
    %c0_8 = arith.constant 0 : index
    %16 = vector.load %arg9[%c0_7, %c0_8] : memref<1x128xf32, #tpu.memory_space<vmem>>, vector<1x128xf32>
    %17 = vector.broadcast %15 : vector<16x1xf32> to vector<16x128xf32>
    %18 = vector.broadcast %16 : vector<1x128xf32> to vector<16x128xf32>
    %19 = arith.mulf %17, %18 : vector<16x128xf32>
    %20 = math.cos %19 : vector<16x128xf32>
    %21 = math.sin %19 : vector<16x128xf32>
    %c0_9 = arith.constant 0 : index
    %c0_10 = arith.constant 0 : index
    %22 = vector.load %arg3[%c0_9, %c0_10] : memref<64x512xf32, #tpu.memory_space<vmem>>, vector<64x512xf32>
    %cst_11 = arith.constant dense<0.000000e+00> : vector<16x512xf32>
    %23 = tpu.matmul %13, %22, %cst_11 {dimension_numbers = #tpu.dot_dimension_numbers<[1], [0], [0], [1], [0, 0, 1, 1], [], []>} : vector<16x64xf32>, vector<64x512xf32>, vector<16x512xf32> -> vector<16x512xf32>
    %c0_12 = arith.constant 0 : index
    %c0_13 = arith.constant 0 : index
    %24 = vector.load %arg4[%c0_12, %c0_13] : memref<64x256xf32, #tpu.memory_space<vmem>>, vector<64x256xf32>
    %cst_14 = arith.constant dense<0.000000e+00> : vector<16x256xf32>
    %25 = tpu.matmul %13, %24, %cst_14 {dimension_numbers = #tpu.dot_dimension_numbers<[1], [0], [0], [1], [0, 0, 1, 1], [], []>} : vector<16x64xf32>, vector<64x256xf32>, vector<16x256xf32> -> vector<16x256xf32>
    %c0_15 = arith.constant 0 : index
    %c0_16 = arith.constant 0 : index
    %26 = vector.load %arg5[%c0_15, %c0_16] : memref<64x256xf32, #tpu.memory_space<vmem>>, vector<64x256xf32>
    %cst_17 = arith.constant dense<0.000000e+00> : vector<16x256xf32>
    %27 = tpu.matmul %13, %26, %cst_17 {dimension_numbers = #tpu.dot_dimension_numbers<[1], [0], [0], [1], [0, 0, 1, 1], [], []>} : vector<16x64xf32>, vector<64x256xf32>, vector<16x256xf32> -> vector<16x256xf32>
    %28 = vector.extract_strided_slice %23 {offsets = [0, 0], sizes = [16, 128], strides = [1, 1]} : vector<16x512xf32> to vector<16x128xf32>
    %c0_18 = arith.constant 0 : index
    %c0_19 = arith.constant 0 : index
    %29 = vector.load %arg6[%c0_18, %c0_19] : memref<1x128xf32, #tpu.memory_space<vmem>>, vector<1x128xf32>
    %30 = arith.mulf %28, %28 : vector<16x128xf32>
    %cst_20 = arith.constant dense<0.000000e+00> : vector<16xf32>
    %31 = vector.multi_reduction <add>, %30, %cst_20 [1] : vector<16x128xf32> to vector<16xf32>
    %32 = vector.shape_cast %31 : vector<16xf32> to vector<16x1xf32>
    %cst_21 = arith.constant 1.280000e+02 : f32
    %33 = vector.broadcast %cst_21 : f32 to vector<16x1xf32>
    %34 = arith.divf %32, %33 : vector<16x1xf32>
    %cst_22 = arith.constant 9.99999997E-7 : f32
    %35 = vector.broadcast %cst_22 : f32 to vector<16x1xf32>
    %36 = arith.addf %34, %35 : vector<16x1xf32>
    %37 = math.rsqrt %36 : vector<16x1xf32>
    %38 = vector.broadcast %37 : vector<16x1xf32> to vector<16x128xf32>
    %39 = arith.mulf %28, %38 : vector<16x128xf32>
    %40 = vector.broadcast %29 : vector<1x128xf32> to vector<16x128xf32>
    %41 = arith.mulf %39, %40 : vector<16x128xf32>
    %42 = arith.mulf %41, %20 : vector<16x128xf32>
    %c64_i32 = arith.constant 64 : i32
    %43 = tpu.dynamic_rotate %41 by %c64_i32 dim 1 : vector<16x128xf32>, i32 -> vector<16x128xf32>
    %44 = arith.mulf %43, %21 : vector<16x128xf32>
    %45 = arith.addf %42, %44 : vector<16x128xf32>
    %c0_23 = arith.constant 0 : index
    %c0_24 = arith.constant 0 : index
    %c0_25 = arith.constant 0 : index
    %46 = vector.load %arg10[%c0_23, %c0_24, %c0_25] : memref<4x16x128xf32, #tpu.memory_space<vmem>>, vector<1x16x128xf32>
    %47 = vector.shape_cast %46 : vector<1x16x128xf32> to vector<16x128xf32>
    %48 = vector.shape_cast %45 : vector<16x128xf32> to vector<1x16x128xf32>
    tpu.vector_store %arg10[%c0_23, %c0_24, %c0_25], %48 {strides = array<i32>} : memref<4x16x128xf32, #tpu.memory_space<vmem>>, vector<1x16x128xf32>,
    %49 = vector.extract_strided_slice %23 {offsets = [0, 128], sizes = [16, 128], strides = [1, 1]} : vector<16x512xf32> to vector<16x128xf32>
    %c0_26 = arith.constant 0 : index
    %c0_27 = arith.constant 0 : index
    %50 = vector.load %arg6[%c0_26, %c0_27] : memref<1x128xf32, #tpu.memory_space<vmem>>, vector<1x128xf32>
    %51 = arith.mulf %49, %49 : vector<16x128xf32>
    %cst_28 = arith.constant dense<0.000000e+00> : vector<16xf32>
    %52 = vector.multi_reduction <add>, %51, %cst_28 [1] : vector<16x128xf32> to vector<16xf32>
    %53 = vector.shape_cast %52 : vector<16xf32> to vector<16x1xf32>
    %cst_29 = arith.constant 1.280000e+02 : f32
    %54 = vector.broadcast %cst_29 : f32 to vector<16x1xf32>
    %55 = arith.divf %53, %54 : vector<16x1xf32>
    %cst_30 = arith.constant 9.99999997E-7 : f32
    %56 = vector.broadcast %cst_30 : f32 to vector<16x1xf32>
    %57 = arith.addf %55, %56 : vector<16x1xf32>
    %58 = math.rsqrt %57 : vector<16x1xf32>
    %59 = vector.broadcast %58 : vector<16x1xf32> to vector<16x128xf32>
    %60 = arith.mulf %49, %59 : vector<16x128xf32>
    %61 = vector.broadcast %50 : vector<1x128xf32> to vector<16x128xf32>
    %62 = arith.mulf %60, %61 : vector<16x128xf32>
    %63 = arith.mulf %62, %20 : vector<16x128xf32>
    %c64_i32_31 = arith.constant 64 : i32
    %64 = tpu.dynamic_rotate %62 by %c64_i32_31 dim 1 : vector<16x128xf32>, i32 -> vector<16x128xf32>
    %65 = arith.mulf %64, %21 : vector<16x128xf32>
    %66 = arith.addf %63, %65 : vector<16x128xf32>
    %c1 = arith.constant 1 : index
    %c0_32 = arith.constant 0 : index
    %c0_33 = arith.constant 0 : index
    %67 = vector.load %arg10[%c1, %c0_32, %c0_33] : memref<4x16x128xf32, #tpu.memory_space<vmem>>, vector<1x16x128xf32>
    %68 = vector.shape_cast %67 : vector<1x16x128xf32> to vector<16x128xf32>
    %69 = vector.shape_cast %66 : vector<16x128xf32> to vector<1x16x128xf32>
    tpu.vector_store %arg10[%c1, %c0_32, %c0_33], %69 {strides = array<i32>} : memref<4x16x128xf32, #tpu.memory_space<vmem>>, vector<1x16x128xf32>,
    %70 = vector.extract_strided_slice %23 {offsets = [0, 256], sizes = [16, 128], strides = [1, 1]} : vector<16x512xf32> to vector<16x128xf32>
    %c0_34 = arith.constant 0 : index
    %c0_35 = arith.constant 0 : index
    %71 = vector.load %arg6[%c0_34, %c0_35] : memref<1x128xf32, #tpu.memory_space<vmem>>, vector<1x128xf32>
    %72 = arith.mulf %70, %70 : vector<16x128xf32>
    %cst_36 = arith.constant dense<0.000000e+00> : vector<16xf32>
    %73 = vector.multi_reduction <add>, %72, %cst_36 [1] : vector<16x128xf32> to vector<16xf32>
    %74 = vector.shape_cast %73 : vector<16xf32> to vector<16x1xf32>
    %cst_37 = arith.constant 1.280000e+02 : f32
    %75 = vector.broadcast %cst_37 : f32 to vector<16x1xf32>
    %76 = arith.divf %74, %75 : vector<16x1xf32>
    %cst_38 = arith.constant 9.99999997E-7 : f32
    %77 = vector.broadcast %cst_38 : f32 to vector<16x1xf32>
    %78 = arith.addf %76, %77 : vector<16x1xf32>
    %79 = math.rsqrt %78 : vector<16x1xf32>
    %80 = vector.broadcast %79 : vector<16x1xf32> to vector<16x128xf32>
    %81 = arith.mulf %70, %80 : vector<16x128xf32>
    %82 = vector.broadcast %71 : vector<1x128xf32> to vector<16x128xf32>
    %83 = arith.mulf %81, %82 : vector<16x128xf32>
    %84 = arith.mulf %83, %20 : vector<16x128xf32>
    %c64_i32_39 = arith.constant 64 : i32
    %85 = tpu.dynamic_rotate %83 by %c64_i32_39 dim 1 : vector<16x128xf32>, i32 -> vector<16x128xf32>
    %86 = arith.mulf %85, %21 : vector<16x128xf32>
    %87 = arith.addf %84, %86 : vector<16x128xf32>
    %c2 = arith.constant 2 : index
    %c0_40 = arith.constant 0 : index
    %c0_41 = arith.constant 0 : index
    %88 = vector.load %arg10[%c2, %c0_40, %c0_41] : memref<4x16x128xf32, #tpu.memory_space<vmem>>, vector<1x16x128xf32>
    %89 = vector.shape_cast %88 : vector<1x16x128xf32> to vector<16x128xf32>
    %90 = vector.shape_cast %87 : vector<16x128xf32> to vector<1x16x128xf32>
    tpu.vector_store %arg10[%c2, %c0_40, %c0_41], %90 {strides = array<i32>} : memref<4x16x128xf32, #tpu.memory_space<vmem>>, vector<1x16x128xf32>,
    %91 = vector.extract_strided_slice %23 {offsets = [0, 384], sizes = [16, 128], strides = [1, 1]} : vector<16x512xf32> to vector<16x128xf32>
    %c0_42 = arith.constant 0 : index
    %c0_43 = arith.constant 0 : index
    %92 = vector.load %arg6[%c0_42, %c0_43] : memref<1x128xf32, #tpu.memory_space<vmem>>, vector<1x128xf32>
    %93 = arith.mulf %91, %91 : vector<16x128xf32>
    %cst_44 = arith.constant dense<0.000000e+00> : vector<16xf32>
    %94 = vector.multi_reduction <add>, %93, %cst_44 [1] : vector<16x128xf32> to vector<16xf32>
    %95 = vector.shape_cast %94 : vector<16xf32> to vector<16x1xf32>
    %cst_45 = arith.constant 1.280000e+02 : f32
    %96 = vector.broadcast %cst_45 : f32 to vector<16x1xf32>
    %97 = arith.divf %95, %96 : vector<16x1xf32>
    %cst_46 = arith.constant 9.99999997E-7 : f32
    %98 = vector.broadcast %cst_46 : f32 to vector<16x1xf32>
    %99 = arith.addf %97, %98 : vector<16x1xf32>
    %100 = math.rsqrt %99 : vector<16x1xf32>
    %101 = vector.broadcast %100 : vector<16x1xf32> to vector<16x128xf32>
    %102 = arith.mulf %91, %101 : vector<16x128xf32>
    %103 = vector.broadcast %92 : vector<1x128xf32> to vector<16x128xf32>
    %104 = arith.mulf %102, %103 : vector<16x128xf32>
    %105 = arith.mulf %104, %20 : vector<16x128xf32>
    %c64_i32_47 = arith.constant 64 : i32
    %106 = tpu.dynamic_rotate %104 by %c64_i32_47 dim 1 : vector<16x128xf32>, i32 -> vector<16x128xf32>
    %107 = arith.mulf %106, %21 : vector<16x128xf32>
    %108 = arith.addf %105, %107 : vector<16x128xf32>
    %c3 = arith.constant 3 : index
    %c0_48 = arith.constant 0 : index
    %c0_49 = arith.constant 0 : index
    %109 = vector.load %arg10[%c3, %c0_48, %c0_49] : memref<4x16x128xf32, #tpu.memory_space<vmem>>, vector<1x16x128xf32>
    %110 = vector.shape_cast %109 : vector<1x16x128xf32> to vector<16x128xf32>
    %111 = vector.shape_cast %108 : vector<16x128xf32> to vector<1x16x128xf32>
    tpu.vector_store %arg10[%c3, %c0_48, %c0_49], %111 {strides = array<i32>} : memref<4x16x128xf32, #tpu.memory_space<vmem>>, vector<1x16x128xf32>,
    %112 = vector.extract_strided_slice %25 {offsets = [0, 0], sizes = [16, 128], strides = [1, 1]} : vector<16x256xf32> to vector<16x128xf32>
    %c0_50 = arith.constant 0 : index
    %c0_51 = arith.constant 0 : index
    %113 = vector.load %arg7[%c0_50, %c0_51] : memref<1x128xf32, #tpu.memory_space<vmem>>, vector<1x128xf32>
    %114 = arith.mulf %112, %112 : vector<16x128xf32>
    %cst_52 = arith.constant dense<0.000000e+00> : vector<16xf32>
    %115 = vector.multi_reduction <add>, %114, %cst_52 [1] : vector<16x128xf32> to vector<16xf32>
    %116 = vector.shape_cast %115 : vector<16xf32> to vector<16x1xf32>
    %cst_53 = arith.constant 1.280000e+02 : f32
    %117 = vector.broadcast %cst_53 : f32 to vector<16x1xf32>
    %118 = arith.divf %116, %117 : vector<16x1xf32>
    %cst_54 = arith.constant 9.99999997E-7 : f32
    %119 = vector.broadcast %cst_54 : f32 to vector<16x1xf32>
    %120 = arith.addf %118, %119 : vector<16x1xf32>
    %121 = math.rsqrt %120 : vector<16x1xf32>
    %122 = vector.broadcast %121 : vector<16x1xf32> to vector<16x128xf32>
    %123 = arith.mulf %112, %122 : vector<16x128xf32>
    %124 = vector.broadcast %113 : vector<1x128xf32> to vector<16x128xf32>
    %125 = arith.mulf %123, %124 : vector<16x128xf32>
    %126 = arith.mulf %125, %20 : vector<16x128xf32>
    %c64_i32_55 = arith.constant 64 : i32
    %127 = tpu.dynamic_rotate %125 by %c64_i32_55 dim 1 : vector<16x128xf32>, i32 -> vector<16x128xf32>
    %128 = arith.mulf %127, %21 : vector<16x128xf32>
    %129 = arith.addf %126, %128 : vector<16x128xf32>
    %c0_56 = arith.constant 0 : index
    %c0_57 = arith.constant 0 : index
    %c0_58 = arith.constant 0 : index
    %130 = vector.load %arg11[%c0_56, %c0_57, %c0_58] : memref<2x16x128xf32, #tpu.memory_space<vmem>>, vector<1x16x128xf32>
    %131 = vector.shape_cast %130 : vector<1x16x128xf32> to vector<16x128xf32>
    %132 = vector.shape_cast %129 : vector<16x128xf32> to vector<1x16x128xf32>
    tpu.vector_store %arg11[%c0_56, %c0_57, %c0_58], %132 {strides = array<i32>} : memref<2x16x128xf32, #tpu.memory_space<vmem>>, vector<1x16x128xf32>,
    %133 = vector.extract_strided_slice %27 {offsets = [0, 0], sizes = [16, 128], strides = [1, 1]} : vector<16x256xf32> to vector<16x128xf32>
    %c0_59 = arith.constant 0 : index
    %c0_60 = arith.constant 0 : index
    %c0_61 = arith.constant 0 : index
    %134 = vector.load %arg12[%c0_59, %c0_60, %c0_61] : memref<2x16x128xf32, #tpu.memory_space<vmem>>, vector<1x16x128xf32>
    %135 = vector.shape_cast %134 : vector<1x16x128xf32> to vector<16x128xf32>
    %136 = vector.shape_cast %133 : vector<16x128xf32> to vector<1x16x128xf32>
    tpu.vector_store %arg12[%c0_59, %c0_60, %c0_61], %136 {strides = array<i32>} : memref<2x16x128xf32, #tpu.memory_space<vmem>>, vector<1x16x128xf32>,
    %137 = vector.extract_strided_slice %25 {offsets = [0, 128], sizes = [16, 128], strides = [1, 1]} : vector<16x256xf32> to vector<16x128xf32>
    %c0_62 = arith.constant 0 : index
    %c0_63 = arith.constant 0 : index
    %138 = vector.load %arg7[%c0_62, %c0_63] : memref<1x128xf32, #tpu.memory_space<vmem>>, vector<1x128xf32>
    %139 = arith.mulf %137, %137 : vector<16x128xf32>
    %cst_64 = arith.constant dense<0.000000e+00> : vector<16xf32>
    %140 = vector.multi_reduction <add>, %139, %cst_64 [1] : vector<16x128xf32> to vector<16xf32>
    %141 = vector.shape_cast %140 : vector<16xf32> to vector<16x1xf32>
    %cst_65 = arith.constant 1.280000e+02 : f32
    %142 = vector.broadcast %cst_65 : f32 to vector<16x1xf32>
    %143 = arith.divf %141, %142 : vector<16x1xf32>
    %cst_66 = arith.constant 9.99999997E-7 : f32
    %144 = vector.broadcast %cst_66 : f32 to vector<16x1xf32>
    %145 = arith.addf %143, %144 : vector<16x1xf32>
    %146 = math.rsqrt %145 : vector<16x1xf32>
    %147 = vector.broadcast %146 : vector<16x1xf32> to vector<16x128xf32>
    %148 = arith.mulf %137, %147 : vector<16x128xf32>
    %149 = vector.broadcast %138 : vector<1x128xf32> to vector<16x128xf32>
    %150 = arith.mulf %148, %149 : vector<16x128xf32>
    %151 = arith.mulf %150, %20 : vector<16x128xf32>
    %c64_i32_67 = arith.constant 64 : i32
    %152 = tpu.dynamic_rotate %150 by %c64_i32_67 dim 1 : vector<16x128xf32>, i32 -> vector<16x128xf32>
    %153 = arith.mulf %152, %21 : vector<16x128xf32>
    %154 = arith.addf %151, %153 : vector<16x128xf32>
    %c1_68 = arith.constant 1 : index
    %c0_69 = arith.constant 0 : index
    %c0_70 = arith.constant 0 : index
    %155 = vector.load %arg11[%c1_68, %c0_69, %c0_70] : memref<2x16x128xf32, #tpu.memory_space<vmem>>, vector<1x16x128xf32>
    %156 = vector.shape_cast %155 : vector<1x16x128xf32> to vector<16x128xf32>
    %157 = vector.shape_cast %154 : vector<16x128xf32> to vector<1x16x128xf32>
    tpu.vector_store %arg11[%c1_68, %c0_69, %c0_70], %157 {strides = array<i32>} : memref<2x16x128xf32, #tpu.memory_space<vmem>>, vector<1x16x128xf32>,
    %158 = vector.extract_strided_slice %27 {offsets = [0, 128], sizes = [16, 128], strides = [1, 1]} : vector<16x256xf32> to vector<16x128xf32>
    %c1_71 = arith.constant 1 : index
    %c0_72 = arith.constant 0 : index
    %c0_73 = arith.constant 0 : index
    %159 = vector.load %arg12[%c1_71, %c0_72, %c0_73] : memref<2x16x128xf32, #tpu.memory_space<vmem>>, vector<1x16x128xf32>
    %160 = vector.shape_cast %159 : vector<1x16x128xf32> to vector<16x128xf32>
    %161 = vector.shape_cast %158 : vector<16x128xf32> to vector<1x16x128xf32>
    tpu.vector_store %arg12[%c1_71, %c0_72, %c0_73], %161 {strides = array<i32>} : memref<2x16x128xf32, #tpu.memory_space<vmem>>, vector<1x16x128xf32>,
    return
  }
  func.func @transform_0(%arg0: i32) -> (i32, i32) {
    %c0_i32 = arith.constant 0 : i32
    %c0_i32_0 = arith.constant 0 : i32
    return %arg0, %c0_i32 : i32, i32
  }
  func.func @transform_1(%arg0: i32) -> (i32, i32) {
    %c0_i32 = arith.constant 0 : i32
    %c0_i32_0 = arith.constant 0 : i32
    %c0_i32_1 = arith.constant 0 : i32
    return %c0_i32, %c0_i32_0 : i32, i32
  }
  func.func @transform_2(%arg0: i32) -> (i32, i32) {
    %c0_i32 = arith.constant 0 : i32
    %c0_i32_0 = arith.constant 0 : i32
    %c0_i32_1 = arith.constant 0 : i32
    return %c0_i32, %c0_i32_0 : i32, i32
  }
  func.func @transform_3(%arg0: i32) -> (i32, i32) {
    %c0_i32 = arith.constant 0 : i32
    %c0_i32_0 = arith.constant 0 : i32
    %c0_i32_1 = arith.constant 0 : i32
    return %c0_i32, %c0_i32_0 : i32, i32
  }
  func.func @transform_4(%arg0: i32) -> (i32, i32) {
    %c0_i32 = arith.constant 0 : i32
    %c0_i32_0 = arith.constant 0 : i32
    %c0_i32_1 = arith.constant 0 : i32
    return %c0_i32, %c0_i32_0 : i32, i32
  }
  func.func @transform_5(%arg0: i32) -> (i32, i32) {
    %c0_i32 = arith.constant 0 : i32
    %c0_i32_0 = arith.constant 0 : i32
    %c0_i32_1 = arith.constant 0 : i32
    return %c0_i32, %c0_i32_0 : i32, i32
  }
  func.func @transform_6(%arg0: i32) -> (i32, i32) {
    %c0_i32 = arith.constant 0 : i32
    %c0_i32_0 = arith.constant 0 : i32
    %c0_i32_1 = arith.constant 0 : i32
    return %c0_i32, %c0_i32_0 : i32, i32
  }
  func.func @transform_7(%arg0: i32) -> (i32, i32) {
    %c0_i32 = arith.constant 0 : i32
    %c0_i32_0 = arith.constant 0 : i32
    return %arg0, %c0_i32 : i32, i32
  }
  func.func @transform_8(%arg0: i32) -> (i32, i32) {
    %c0_i32 = arith.constant 0 : i32
    %c0_i32_0 = arith.constant 0 : i32
    %c0_i32_1 = arith.constant 0 : i32
    return %c0_i32, %c0_i32_0 : i32, i32
  }
  func.func @transform_9(%arg0: i32) -> (i32, i32, i32) {
    %c0_i32 = arith.constant 0 : i32
    %c0_i32_0 = arith.constant 0 : i32
    %c0_i32_1 = arith.constant 0 : i32
    return %c0_i32, %arg0, %c0_i32_0 : i32, i32, i32
  }
  func.func @transform_10(%arg0: i32) -> (i32, i32, i32) {
    %c0_i32 = arith.constant 0 : i32
    %c0_i32_0 = arith.constant 0 : i32
    %c0_i32_1 = arith.constant 0 : i32
    return %c0_i32, %arg0, %c0_i32_0 : i32, i32, i32
  }
  func.func @transform_11(%arg0: i32) -> (i32, i32, i32) {
    %c0_i32 = arith.constant 0 : i32
    %c0_i32_0 = arith.constant 0 : i32
    %c0_i32_1 = arith.constant 0 : i32
    return %c0_i32, %arg0, %c0_i32_0 : i32, i32, i32
  }
}

module attributes {stable_mosaic.version = 11 : i64} {
  func.func @_attn_oproj_kernel(%arg0: i32, %arg1: i32, %arg2: memref<2x1x8x128xf32, #tpu.memory_space<vmem>>, %arg3: memref<1x1x8x128xf32, #tpu.memory_space<vmem>>, %arg4: memref<1x1x8x128xf32, #tpu.memory_space<vmem>>, %arg5: memref<1x1x8x8xf32, #tpu.memory_space<vmem>>, %arg6: memref<2x128x64xf32, #tpu.memory_space<vmem>>, %arg7: memref<1x8x64xf32, #tpu.memory_space<vmem>>, %arg8: memref<1x8x64xf32, #tpu.memory_space<vmem>>, %arg9: memref<8x64xf32, #tpu.memory_space<vmem>>) attributes {dimension_semantics = [#tpu.dimension_semantics<parallel>, #tpu.dimension_semantics<arbitrary>], iteration_bounds = array<i64: 2, 2>, scalar_prefetch = 0 : i64, scratch_operands = 1 : i64, tpu.core_type = #tpu.core_type<tc>, window_params = [{transform_indices = @transform_0, window_bounds = array<i64: 2, 1, 8, 128>}, {transform_indices = @transform_1, window_bounds = array<i64: 1, 1, 8, 128>}, {transform_indices = @transform_2, window_bounds = array<i64: 1, 1, 8, 128>}, {transform_indices = @transform_3, window_bounds = array<i64: 1, 1, 8, 8>}, {transform_indices = @transform_4, window_bounds = array<i64: 2, 128, 64>}, {transform_indices = @transform_5, window_bounds = array<i64: 1, 8, 64>}, {transform_indices = @transform_6, window_bounds = array<i64: 1, 8, 64>}]} {
    %c0_i32 = arith.constant 0 : i32
    %0 = arith.cmpi eq, %arg1, %c0_i32 : i32
    %1 = arith.extui %0 : i1 to i32
    %c0_i32_0 = arith.constant 0 : i32
    %2 = arith.cmpi ne, %1, %c0_i32_0 : i32
    scf.if %2 {
      %c0_41 = arith.constant 0 : index
      %c0_42 = arith.constant 0 : index
      %c0_43 = arith.constant 0 : index
      %56 = vector.load %arg7[%c0_41, %c0_42, %c0_43] : memref<1x8x64xf32, #tpu.memory_space<vmem>>, vector<1x8x64xf32>
      %57 = vector.shape_cast %56 : vector<1x8x64xf32> to vector<8x64xf32>
      %c0_44 = arith.constant 0 : index
      %c0_45 = arith.constant 0 : index
      %58 = vector.load %arg9[%c0_44, %c0_45] : memref<8x64xf32, #tpu.memory_space<vmem>>, vector<8x64xf32>
      tpu.vector_store %arg9[%c0_44, %c0_45], %57 {strides = array<i32>} : memref<8x64xf32, #tpu.memory_space<vmem>>, vector<8x64xf32>,
    } else {
    }
    %c0 = arith.constant 0 : index
    %c0_1 = arith.constant 0 : index
    %c0_2 = arith.constant 0 : index
    %c0_3 = arith.constant 0 : index
    %3 = vector.load %arg3[%c0, %c0_1, %c0_2, %c0_3] : memref<1x1x8x128xf32, #tpu.memory_space<vmem>>, vector<1x1x8x128xf32>
    %4 = vector.shape_cast %3 : vector<1x1x8x128xf32> to vector<8x128xf32>
    %c0_4 = arith.constant 0 : index
    %c0_5 = arith.constant 0 : index
    %c0_6 = arith.constant 0 : index
    %c0_7 = arith.constant 0 : index
    %5 = vector.load %arg4[%c0_4, %c0_5, %c0_6, %c0_7] : memref<1x1x8x128xf32, #tpu.memory_space<vmem>>, vector<1x1x8x128xf32>
    %6 = vector.shape_cast %5 : vector<1x1x8x128xf32> to vector<8x128xf32>
    %c0_8 = arith.constant 0 : index
    %c0_9 = arith.constant 0 : index
    %c0_10 = arith.constant 0 : index
    %c0_11 = arith.constant 0 : index
    %7 = vector.load %arg5[%c0_8, %c0_9, %c0_10, %c0_11] : memref<1x1x8x8xf32, #tpu.memory_space<vmem>>, vector<1x1x8x8xf32>
    %8 = vector.shape_cast %7 : vector<1x1x8x8xf32> to vector<8x8xf32>
    %c0_12 = arith.constant 0 : index
    %c0_13 = arith.constant 0 : index
    %9 = vector.load %arg9[%c0_12, %c0_13] : memref<8x64xf32, #tpu.memory_space<vmem>>, vector<8x64xf32>
    %c0_14 = arith.constant 0 : index
    %c0_15 = arith.constant 0 : index
    %c0_16 = arith.constant 0 : index
    %c0_17 = arith.constant 0 : index
    %10 = vector.load %arg2[%c0_14, %c0_15, %c0_16, %c0_17] : memref<2x1x8x128xf32, #tpu.memory_space<vmem>>, vector<1x1x8x128xf32>
    %11 = vector.shape_cast %10 : vector<1x1x8x128xf32> to vector<8x128xf32>
    %cst = arith.constant dense<0.000000e+00> : vector<8x8xf32>
    %12 = tpu.matmul %11, %4, %cst {dimension_numbers = #tpu.dot_dimension_numbers<[1], [1], [0], [0], [0, 0, 1, 0], [], []>} : vector<8x128xf32>, vector<8x128xf32>, vector<8x8xf32> -> vector<8x8xf32>
    %cst_18 = arith.constant 0.0883883461 : f32
    %13 = vector.broadcast %cst_18 : f32 to vector<8x8xf32>
    %14 = arith.mulf %12, %13 : vector<8x8xf32>
    %15 = arith.addf %14, %8 : vector<8x8xf32>
    %cst_19 = arith.constant dense<0xFF800000> : vector<8xf32>
    %16 = vector.multi_reduction <maximumf>, %15, %cst_19 [1] : vector<8x8xf32> to vector<8xf32>
    %17 = vector.shape_cast %16 : vector<8xf32> to vector<8x1xf32>
    %18 = vector.broadcast %17 : vector<8x1xf32> to vector<8x8xf32>
    %19 = arith.subf %15, %18 : vector<8x8xf32>
    %20 = math.exp %19 : vector<8x8xf32>
    %cst_20 = arith.constant dense<0.000000e+00> : vector<8xf32>
    %21 = vector.multi_reduction <add>, %20, %cst_20 [1] : vector<8x8xf32> to vector<8xf32>
    %22 = vector.shape_cast %21 : vector<8xf32> to vector<8x1xf32>
    %cst_21 = arith.constant dense<0.000000e+00> : vector<8x128xf32>
    %23 = tpu.matmul %20, %6, %cst_21 {dimension_numbers = #tpu.dot_dimension_numbers<[1], [0], [0], [1], [0, 0, 1, 1], [], []>} : vector<8x8xf32>, vector<8x128xf32>, vector<8x128xf32> -> vector<8x128xf32>
    %24 = tpu.reciprocal %22 {approx = true} : vector<8x1xf32> -> vector<8x1xf32>
    %25 = vector.broadcast %24 : vector<8x1xf32> to vector<8x128xf32>
    %26 = arith.mulf %23, %25 : vector<8x128xf32>
    %c0_22 = arith.constant 0 : index
    %c0_23 = arith.constant 0 : index
    %c0_24 = arith.constant 0 : index
    %27 = vector.load %arg6[%c0_22, %c0_23, %c0_24] : memref<2x128x64xf32, #tpu.memory_space<vmem>>, vector<1x128x64xf32>
    %28 = vector.shape_cast %27 : vector<1x128x64xf32> to vector<128x64xf32>
    %cst_25 = arith.constant dense<0.000000e+00> : vector<8x64xf32>
    %29 = tpu.matmul %26, %28, %cst_25 {dimension_numbers = #tpu.dot_dimension_numbers<[1], [0], [0], [1], [0, 0, 1, 1], [], []>} : vector<8x128xf32>, vector<128x64xf32>, vector<8x64xf32> -> vector<8x64xf32>
    %30 = arith.addf %9, %29 : vector<8x64xf32>
    %c1 = arith.constant 1 : index
    %c0_26 = arith.constant 0 : index
    %c0_27 = arith.constant 0 : index
    %c0_28 = arith.constant 0 : index
    %31 = vector.load %arg2[%c1, %c0_26, %c0_27, %c0_28] : memref<2x1x8x128xf32, #tpu.memory_space<vmem>>, vector<1x1x8x128xf32>
    %32 = vector.shape_cast %31 : vector<1x1x8x128xf32> to vector<8x128xf32>
    %cst_29 = arith.constant dense<0.000000e+00> : vector<8x8xf32>
    %33 = tpu.matmul %32, %4, %cst_29 {dimension_numbers = #tpu.dot_dimension_numbers<[1], [1], [0], [0], [0, 0, 1, 0], [], []>} : vector<8x128xf32>, vector<8x128xf32>, vector<8x8xf32> -> vector<8x8xf32>
    %cst_30 = arith.constant 0.0883883461 : f32
    %34 = vector.broadcast %cst_30 : f32 to vector<8x8xf32>
    %35 = arith.mulf %33, %34 : vector<8x8xf32>
    %36 = arith.addf %35, %8 : vector<8x8xf32>
    %cst_31 = arith.constant dense<0xFF800000> : vector<8xf32>
    %37 = vector.multi_reduction <maximumf>, %36, %cst_31 [1] : vector<8x8xf32> to vector<8xf32>
    %38 = vector.shape_cast %37 : vector<8xf32> to vector<8x1xf32>
    %39 = vector.broadcast %38 : vector<8x1xf32> to vector<8x8xf32>
    %40 = arith.subf %36, %39 : vector<8x8xf32>
    %41 = math.exp %40 : vector<8x8xf32>
    %cst_32 = arith.constant dense<0.000000e+00> : vector<8xf32>
    %42 = vector.multi_reduction <add>, %41, %cst_32 [1] : vector<8x8xf32> to vector<8xf32>
    %43 = vector.shape_cast %42 : vector<8xf32> to vector<8x1xf32>
    %cst_33 = arith.constant dense<0.000000e+00> : vector<8x128xf32>
    %44 = tpu.matmul %41, %6, %cst_33 {dimension_numbers = #tpu.dot_dimension_numbers<[1], [0], [0], [1], [0, 0, 1, 1], [], []>} : vector<8x8xf32>, vector<8x128xf32>, vector<8x128xf32> -> vector<8x128xf32>
    %45 = tpu.reciprocal %43 {approx = true} : vector<8x1xf32> -> vector<8x1xf32>
    %46 = vector.broadcast %45 : vector<8x1xf32> to vector<8x128xf32>
    %47 = arith.mulf %44, %46 : vector<8x128xf32>
    %c1_34 = arith.constant 1 : index
    %c0_35 = arith.constant 0 : index
    %c0_36 = arith.constant 0 : index
    %48 = vector.load %arg6[%c1_34, %c0_35, %c0_36] : memref<2x128x64xf32, #tpu.memory_space<vmem>>, vector<1x128x64xf32>
    %49 = vector.shape_cast %48 : vector<1x128x64xf32> to vector<128x64xf32>
    %cst_37 = arith.constant dense<0.000000e+00> : vector<8x64xf32>
    %50 = tpu.matmul %47, %49, %cst_37 {dimension_numbers = #tpu.dot_dimension_numbers<[1], [0], [0], [1], [0, 0, 1, 1], [], []>} : vector<8x128xf32>, vector<128x64xf32>, vector<8x64xf32> -> vector<8x64xf32>
    %51 = arith.addf %30, %50 : vector<8x64xf32>
    %c0_38 = arith.constant 0 : index
    %c0_39 = arith.constant 0 : index
    %52 = vector.load %arg9[%c0_38, %c0_39] : memref<8x64xf32, #tpu.memory_space<vmem>>, vector<8x64xf32>
    tpu.vector_store %arg9[%c0_38, %c0_39], %51 {strides = array<i32>} : memref<8x64xf32, #tpu.memory_space<vmem>>, vector<8x64xf32>,
    %c1_i32 = arith.constant 1 : i32
    %53 = arith.cmpi eq, %arg1, %c1_i32 : i32
    %54 = arith.extui %53 : i1 to i32
    %c0_i32_40 = arith.constant 0 : i32
    %55 = arith.cmpi ne, %54, %c0_i32_40 : i32
    scf.if %55 {
      %c0_41 = arith.constant 0 : index
      %c0_42 = arith.constant 0 : index
      %56 = vector.load %arg9[%c0_41, %c0_42] : memref<8x64xf32, #tpu.memory_space<vmem>>, vector<8x64xf32>
      %c0_43 = arith.constant 0 : index
      %c0_44 = arith.constant 0 : index
      %c0_45 = arith.constant 0 : index
      %57 = vector.load %arg8[%c0_43, %c0_44, %c0_45] : memref<1x8x64xf32, #tpu.memory_space<vmem>>, vector<1x8x64xf32>
      %58 = vector.shape_cast %57 : vector<1x8x64xf32> to vector<8x64xf32>
      %59 = vector.shape_cast %56 : vector<8x64xf32> to vector<1x8x64xf32>
      tpu.vector_store %arg8[%c0_43, %c0_44, %c0_45], %59 {strides = array<i32>} : memref<1x8x64xf32, #tpu.memory_space<vmem>>, vector<1x8x64xf32>,
    } else {
    }
    return
  }
  func.func @transform_0(%arg0: i32, %arg1: i32) -> (i32, i32, i32, i32) {
    %c0_i32 = arith.constant 0 : i32
    %c0_i32_0 = arith.constant 0 : i32
    %c0_i32_1 = arith.constant 0 : i32
    return %arg1, %arg0, %c0_i32, %c0_i32_0 : i32, i32, i32, i32
  }
  func.func @transform_1(%arg0: i32, %arg1: i32) -> (i32, i32, i32, i32) {
    %c0_i32 = arith.constant 0 : i32
    %c0_i32_0 = arith.constant 0 : i32
    %c0_i32_1 = arith.constant 0 : i32
    return %arg1, %arg0, %c0_i32, %c0_i32_0 : i32, i32, i32, i32
  }
  func.func @transform_2(%arg0: i32, %arg1: i32) -> (i32, i32, i32, i32) {
    %c0_i32 = arith.constant 0 : i32
    %c0_i32_0 = arith.constant 0 : i32
    %c0_i32_1 = arith.constant 0 : i32
    return %arg1, %arg0, %c0_i32, %c0_i32_0 : i32, i32, i32, i32
  }
  func.func @transform_3(%arg0: i32, %arg1: i32) -> (i32, i32, i32, i32) {
    %c0_i32 = arith.constant 0 : i32
    %c0_i32_0 = arith.constant 0 : i32
    %c0_i32_1 = arith.constant 0 : i32
    %c0_i32_2 = arith.constant 0 : i32
    return %arg0, %c0_i32, %c0_i32_0, %c0_i32_1 : i32, i32, i32, i32
  }
  func.func @transform_4(%arg0: i32, %arg1: i32) -> (i32, i32, i32) {
    %c0_i32 = arith.constant 0 : i32
    %c0_i32_0 = arith.constant 0 : i32
    %c0_i32_1 = arith.constant 0 : i32
    return %arg1, %c0_i32, %c0_i32_0 : i32, i32, i32
  }
  func.func @transform_5(%arg0: i32, %arg1: i32) -> (i32, i32, i32) {
    %c0_i32 = arith.constant 0 : i32
    %c0_i32_0 = arith.constant 0 : i32
    %c0_i32_1 = arith.constant 0 : i32
    return %arg0, %c0_i32, %c0_i32_0 : i32, i32, i32
  }
  func.func @transform_6(%arg0: i32, %arg1: i32) -> (i32, i32, i32) {
    %c0_i32 = arith.constant 0 : i32
    %c0_i32_0 = arith.constant 0 : i32
    %c0_i32_1 = arith.constant 0 : i32
    return %arg0, %c0_i32, %c0_i32_0 : i32, i32, i32
  }
}

module attributes {stable_mosaic.version = 11 : i64} {
  func.func @_mlp_kernel(%arg0: i32, %arg1: i32, %arg2: memref<16x64xf32, #tpu.memory_space<vmem>>, %arg3: memref<1x64xf32, #tpu.memory_space<vmem>>, %arg4: memref<64x128xf32, #tpu.memory_space<vmem>>, %arg5: memref<64x128xf32, #tpu.memory_space<vmem>>, %arg6: memref<128x64xf32, #tpu.memory_space<vmem>>, %arg7: memref<16x64xf32, #tpu.memory_space<vmem>>, %arg8: memref<16x64xf32, #tpu.memory_space<vmem>>, %arg9: memref<16x64xf32, #tpu.memory_space<vmem>>) attributes {dimension_semantics = [#tpu.dimension_semantics<parallel>, #tpu.dimension_semantics<arbitrary>], iteration_bounds = array<i64: 1, 1>, scalar_prefetch = 0 : i64, scratch_operands = 2 : i64, tpu.core_type = #tpu.core_type<tc>, window_params = [{transform_indices = @transform_0, window_bounds = array<i64: 16, 64>}, {pipeline_mode = #tpu.pipeline_mode<synchronous>, transform_indices = @transform_1, window_bounds = array<i64: 1, 64>}, {transform_indices = @transform_2, window_bounds = array<i64: 64, 128>}, {transform_indices = @transform_3, window_bounds = array<i64: 64, 128>}, {transform_indices = @transform_4, window_bounds = array<i64: 128, 64>}, {transform_indices = @transform_5, window_bounds = array<i64: 16, 64>}]} {
    %c0_i32 = arith.constant 0 : i32
    %0 = arith.cmpi eq, %arg1, %c0_i32 : i32
    %1 = arith.extui %0 : i1 to i32
    %c0_i32_0 = arith.constant 0 : i32
    %2 = arith.cmpi ne, %1, %c0_i32_0 : i32
    scf.if %2 {
      %c0_19 = arith.constant 0 : index
      %c0_20 = arith.constant 0 : index
      %25 = vector.load %arg2[%c0_19, %c0_20] : memref<16x64xf32, #tpu.memory_space<vmem>>, vector<16x64xf32>
      %26 = arith.mulf %25, %25 : vector<16x64xf32>
      %cst_21 = arith.constant dense<0.000000e+00> : vector<16xf32>
      %27 = vector.multi_reduction <add>, %26, %cst_21 [1] : vector<16x64xf32> to vector<16xf32>
      %28 = vector.shape_cast %27 : vector<16xf32> to vector<16x1xf32>
      %cst_22 = arith.constant 6.400000e+01 : f32
      %29 = vector.broadcast %cst_22 : f32 to vector<16x1xf32>
      %30 = arith.divf %28, %29 : vector<16x1xf32>
      %cst_23 = arith.constant 9.99999997E-7 : f32
      %31 = vector.broadcast %cst_23 : f32 to vector<16x1xf32>
      %32 = arith.addf %30, %31 : vector<16x1xf32>
      %33 = math.rsqrt %32 : vector<16x1xf32>
      %34 = vector.broadcast %33 : vector<16x1xf32> to vector<16x64xf32>
      %35 = arith.mulf %25, %34 : vector<16x64xf32>
      %c0_24 = arith.constant 0 : index
      %c0_25 = arith.constant 0 : index
      %36 = vector.load %arg3[%c0_24, %c0_25] : memref<1x64xf32, #tpu.memory_space<vmem>>, vector<1x64xf32>
      %37 = vector.broadcast %36 : vector<1x64xf32> to vector<16x64xf32>
      %38 = arith.mulf %35, %37 : vector<16x64xf32>
      %c0_26 = arith.constant 0 : index
      %c0_27 = arith.constant 0 : index
      %39 = vector.load %arg8[%c0_26, %c0_27] : memref<16x64xf32, #tpu.memory_space<vmem>>, vector<16x64xf32>
      tpu.vector_store %arg8[%c0_26, %c0_27], %38 {strides = array<i32>} : memref<16x64xf32, #tpu.memory_space<vmem>>, vector<16x64xf32>,
      %c0_28 = arith.constant 0 : index
      %c0_29 = arith.constant 0 : index
      %40 = vector.load %arg9[%c0_28, %c0_29] : memref<16x64xf32, #tpu.memory_space<vmem>>, vector<16x64xf32>
      tpu.vector_store %arg9[%c0_28, %c0_29], %25 {strides = array<i32>} : memref<16x64xf32, #tpu.memory_space<vmem>>, vector<16x64xf32>,
    } else {
    }
    %c0 = arith.constant 0 : index
    %c0_1 = arith.constant 0 : index
    %3 = vector.load %arg8[%c0, %c0_1] : memref<16x64xf32, #tpu.memory_space<vmem>>, vector<16x64xf32>
    %c0_2 = arith.constant 0 : index
    %c0_3 = arith.constant 0 : index
    %4 = vector.load %arg4[%c0_2, %c0_3] : memref<64x128xf32, #tpu.memory_space<vmem>>, vector<64x128xf32>
    %cst = arith.constant dense<0.000000e+00> : vector<16x128xf32>
    %5 = tpu.matmul %3, %4, %cst {dimension_numbers = #tpu.dot_dimension_numbers<[1], [0], [0], [1], [0, 0, 1, 1], [], []>} : vector<16x64xf32>, vector<64x128xf32>, vector<16x128xf32> -> vector<16x128xf32>
    %c0_4 = arith.constant 0 : index
    %c0_5 = arith.constant 0 : index
    %6 = vector.load %arg5[%c0_4, %c0_5] : memref<64x128xf32, #tpu.memory_space<vmem>>, vector<64x128xf32>
    %cst_6 = arith.constant dense<0.000000e+00> : vector<16x128xf32>
    %7 = tpu.matmul %3, %6, %cst_6 {dimension_numbers = #tpu.dot_dimension_numbers<[1], [0], [0], [1], [0, 0, 1, 1], [], []>} : vector<16x64xf32>, vector<64x128xf32>, vector<16x128xf32> -> vector<16x128xf32>
    %cst_7 = arith.constant 0.000000e+00 : f32
    %8 = vector.broadcast %cst_7 : f32 to vector<16x128xf32>
    %9 = arith.subf %8, %5 : vector<16x128xf32>
    %10 = math.exp %9 : vector<16x128xf32>
    %cst_8 = arith.constant 1.000000e+00 : f32
    %11 = vector.broadcast %cst_8 : f32 to vector<16x128xf32>
    %12 = arith.addf %11, %10 : vector<16x128xf32>
    %cst_9 = arith.constant 1.000000e+00 : f32
    %13 = vector.broadcast %cst_9 : f32 to vector<16x128xf32>
    %14 = arith.divf %13, %12 : vector<16x128xf32>
    %15 = arith.mulf %5, %14 : vector<16x128xf32>
    %c0_10 = arith.constant 0 : index
    %c0_11 = arith.constant 0 : index
    %16 = vector.load %arg9[%c0_10, %c0_11] : memref<16x64xf32, #tpu.memory_space<vmem>>, vector<16x64xf32>
    %17 = arith.mulf %15, %7 : vector<16x128xf32>
    %c0_12 = arith.constant 0 : index
    %c0_13 = arith.constant 0 : index
    %18 = vector.load %arg6[%c0_12, %c0_13] : memref<128x64xf32, #tpu.memory_space<vmem>>, vector<128x64xf32>
    %cst_14 = arith.constant dense<0.000000e+00> : vector<16x64xf32>
    %19 = tpu.matmul %17, %18, %cst_14 {dimension_numbers = #tpu.dot_dimension_numbers<[1], [0], [0], [1], [0, 0, 1, 1], [], []>} : vector<16x128xf32>, vector<128x64xf32>, vector<16x64xf32> -> vector<16x64xf32>
    %20 = arith.addf %16, %19 : vector<16x64xf32>
    %c0_15 = arith.constant 0 : index
    %c0_16 = arith.constant 0 : index
    %21 = vector.load %arg9[%c0_15, %c0_16] : memref<16x64xf32, #tpu.memory_space<vmem>>, vector<16x64xf32>
    tpu.vector_store %arg9[%c0_15, %c0_16], %20 {strides = array<i32>} : memref<16x64xf32, #tpu.memory_space<vmem>>, vector<16x64xf32>,
    %c0_i32_17 = arith.constant 0 : i32
    %22 = arith.cmpi eq, %arg1, %c0_i32_17 : i32
    %23 = arith.extui %22 : i1 to i32
    %c0_i32_18 = arith.constant 0 : i32
    %24 = arith.cmpi ne, %23, %c0_i32_18 : i32
    scf.if %24 {
      %c0_19 = arith.constant 0 : index
      %c0_20 = arith.constant 0 : index
      %25 = vector.load %arg9[%c0_19, %c0_20] : memref<16x64xf32, #tpu.memory_space<vmem>>, vector<16x64xf32>
      %c0_21 = arith.constant 0 : index
      %c0_22 = arith.constant 0 : index
      %26 = vector.load %arg7[%c0_21, %c0_22] : memref<16x64xf32, #tpu.memory_space<vmem>>, vector<16x64xf32>
      tpu.vector_store %arg7[%c0_21, %c0_22], %25 {strides = array<i32>} : memref<16x64xf32, #tpu.memory_space<vmem>>, vector<16x64xf32>,
    } else {
    }
    return
  }
  func.func @transform_0(%arg0: i32, %arg1: i32) -> (i32, i32) {
    %c0_i32 = arith.constant 0 : i32
    %c0_i32_0 = arith.constant 0 : i32
    return %arg0, %c0_i32 : i32, i32
  }
  func.func @transform_1(%arg0: i32, %arg1: i32) -> (i32, i32) {
    %c0_i32 = arith.constant 0 : i32
    %c0_i32_0 = arith.constant 0 : i32
    %c0_i32_1 = arith.constant 0 : i32
    return %c0_i32, %c0_i32_0 : i32, i32
  }
  func.func @transform_2(%arg0: i32, %arg1: i32) -> (i32, i32) {
    %c0_i32 = arith.constant 0 : i32
    %c0_i32_0 = arith.constant 0 : i32
    return %c0_i32, %arg1 : i32, i32
  }
  func.func @transform_3(%arg0: i32, %arg1: i32) -> (i32, i32) {
    %c0_i32 = arith.constant 0 : i32
    %c0_i32_0 = arith.constant 0 : i32
    return %c0_i32, %arg1 : i32, i32
  }
  func.func @transform_4(%arg0: i32, %arg1: i32) -> (i32, i32) {
    %c0_i32 = arith.constant 0 : i32
    %c0_i32_0 = arith.constant 0 : i32
    return %arg1, %c0_i32 : i32, i32
  }
  func.func @transform_5(%arg0: i32, %arg1: i32) -> (i32, i32) {
    %c0_i32 = arith.constant 0 : i32
    %c0_i32_0 = arith.constant 0 : i32
    return %arg0, %c0_i32 : i32, i32
  }
}

</mosaic_0001>

<bundles_post_ra>
// kernel: neg.1
= control target key start
LH: loop header
LB: loop body
LE: loop exit
PB: predicated region body
PF: predicated region fallthrough
CT: control target
= control target key end

     0   :  { %s24_s0 = inlined_call_operand.vmem [shape: f32[64], index: 0, kind: input, shape index: {}]   ;;  %s25_s1 = inlined_call_operand.vmem [shape: f32[64], index: 1, kind: output, shape index: {}]  }
   0x1   :  { %v2_v0 = vld [vmem:[%s24_s0] sm:$0x1] }
   0x2   :  { %v5_v1 = vxor.u32 2147483648, %v2_v0 }
   0x4   :  { %7 = vst [vmem:[%s25_s1] sm:$0x1] %v5_v1 }

// kernel: qwen3_decoder_layer.4
= control target key start
LH: loop header
LB: loop body
LE: loop exit
PB: predicated region body
PF: predicated region fallthrough
CT: control target
= control target key end

     0   :  { %s2625_s0 = inlined_call_operand.hbm [shape: f32[4,2,8,128], index: 0, kind: input, shape index: {}]   ;;  %s2626_s1 = inlined_call_operand.hbm [shape: f32[2,2,8,128], index: 1, kind: input, shape index: {}]   ;;  %s2627_s2 = inlined_call_operand.hbm [shape: f32[2,2,8,128], index: 2, kind: input, shape index: {}]   ;;  %s2628_s3 = inlined_call_operand.hbm [shape: f32[2,1,8,8], index: 3, kind: input, shape index: {}]   ;;  %s2629_s4 = inlined_call_operand.hbm [shape: f32[4,128,64], index: 4, kind: input, shape index: {}]   ;;  %s2630_s5 = inlined_call_operand.hbm [shape: f32[2,8,64], index: 5, kind: input, shape index: {}]   ;;  %s2631_s6 = inlined_call_operand.hbm [shape: f32[2,8,64], index: 6, kind: output, shape index: {}]  }
   0x1   :  { %2670 = sst [smem:[#allocation41_spill]] %s2625_s0 }
   0x2   :  { %2671 = sst [smem:[#allocation42_spill]] %s2626_s1 }
   0x3   :  { %2672 = sst [smem:[#allocation43_spill]] %s2628_s3 }
   0x4   :  { %2673 = sst [smem:[#allocation44_spill]] %s2631_s6 }
   0x5   :  { %11 = vsyncpa [#allocation4], 0 }
   0x6   :  { %13 = vsyncpa [#allocation4 + $0x1], 0 }
   0x7   :  { %14 = vsyncpa [#allocation7], 0 }
   0x8   :  { %16 = vsyncpa [#allocation7 + $0x1], 0 }
   0x9   :  { %17 = vsyncpa [#allocation10], 0 }
   0xa   :  { %19 = vsyncpa [#allocation10 + $0x1], 0 }
   0xb   :  { %20 = vsyncpa [#allocation13], 0 }
   0xc   :  { %22 = vsyncpa [#allocation13 + $0x1], 0 }
   0xd   :  { %23 = vsyncpa [#allocation5], 0 }
   0xe   :  { %25 = vsyncpa [#allocation5 + $0x1], 0  ;;  %s1996_s21 = smov 0   ;;  %s1998_s22 = smov 0  }
   0xf   :  { %s2000_s23 = smov 0   ;;  %s2002_s24 = smov 0  }
  0x10   :  { %s2004_s25 = smov 0   ;;  %s2006_s26 = smov 0  }
  0x11   :  { %s2008_s27 = smov 0   ;;  %s2010_s28 = smov 0  }
  0x12   :  { %s2012_s29 = smov 0   ;;  %s2014_s30 = smov 0  }
  0x13   :  { %s2016_s7 = smov 0   ;;  %s2018_s8 = smov 0  }
  0x14   :  { %s2020_s9 = smov 0   ;;  %s2022_s10 = smov 0  }
  0x15 LB: > { %2674 = sst [smem:[#allocation21_spill]] %s1898_s22  ;;  %s2065_s11 = sadd.s32 4294967295, %s1946_s10   ;;  %s1946_s10 = sphi %s2022_s10, %s31_s10   ;;  %s1942_s9 = sphi %s2020_s9, %s2769_s9   ;;  %s1938_s8 = sphi %s2018_s8, %s2768_s8   ;;  %s1934_s7 = sphi %s2016_s7, %s2767_s7   ;;  %s1930_s30 = sphi %s2014_s30, %s2766_s30   ;;  %s1926_s29 = sphi %s2012_s29, %s2756_s29   ;;  %s1922_s28 = sphi %s2010_s28, %s2765_s28   ;;  %s1918_s27 = sphi %s2008_s27, %s2754_s27   ;;  %s1914_s26 = sphi %s2006_s26, %s2764_s26   ;;  %s1910_s25 = sphi %s2004_s25, %s2763_s25   ;;  %s1906_s24 = sphi %s2002_s24, %s2752_s24   ;;  %s1902_s23 = sphi %s2000_s23, %s2762_s23   ;;  %s1898_s22 = sphi %s1998_s22, %s2761_s22   ;;  %s1894_s21 = sphi %s1996_s21, %s2760_s21  }
  0x16   : > { %2675 = sst [smem:[#allocation22_spill]] %s1906_s24  ;;  %s40_s12 = sadd.s32 1, %s1938_s8 }
  0x17   : > { %2676 = sst [smem:[#allocation23_spill]] %s1910_s25  ;;  %p41_p0 = scmp.ge.s32.totalorder %s40_s12, 2 }
  0x18   : > { %2677 = sst [smem:[#allocation24_spill]] %s1922_s28  ;;  %s43_s13 = sadd.s32 1, %s1942_s9 }
  0x19   : > { %2678 = sst [smem:[#allocation25_spill]] %s1926_s29  ;;  %s52_s14 = sadd.s32 1, %s1926_s29 }
  0x1a   : > { %2679 = sst [smem:[#allocation26_spill]] %s1930_s30  ;;  %p59_p1 = scmp.ne.s32.totalorder %s1926_s29, %s1922_s28 }
  0x1b   : > { %2680 = sst [smem:[#allocation27_spill]] %s1934_s7  ;;  %s2771_s12 = smov (%p41_p0, %s40_s12), 0 }
  0x1c   : > { %2681 = sst [smem:[#allocation28_spill]] %s1946_s10  ;;  %s2773_s13 = smov (!%p41_p0, %s43_s13), %s1942_s9 }
  0x1d   : > { %2682 = sst [smem:[#allocation29_spill]] %s2065_s11  ;;  %s47_s15 = ssub.s32 %s1938_s8, %s2771_s12 }
  0x1e   : > { %2683 = sst [smem:[#allocation30_spill]] %s2771_s12  ;;  %p2645_p2 = scmp.eq.s32.totalorder %s1946_s10, 0 }
  0x1f   : > { %p45_p3 = scmp.ge.s32.totalorder %s2773_s13, 2  ;;  %p65_p4 = scmp.ne.s32.totalorder %s1922_s28, %s1918_s27 }
  0x20   : > { %p2081_p5 = por %p2645_p2, %p59_p1  ;;  %p2644_p6 = scmp.eq.s32.totalorder %s2065_s11, 0 }
  0x21   : > { %s2775_s13 = smov (%p45_p3, %s2773_s13), 0  ;;  %p158_p8 = scmp.eq.s32.totalorder %s47_s15, 0 }
  0x22   : > { %2685 = sst [smem:[#allocation31_spill]] %s2775_s13  ;;  %p2090_p7 = por %p2644_p6, %p65_p4 }
  0x23   : > { %s2096_s18 = ssub.s32 %s1942_s9, %s2775_s13  ;;  %s160_s19 = sadd.s32 1, %s1902_s23 }
  0x24   : > { %s2686_s17 = scalar_select %p2090_p7, 1, 0 }
  0x25   : > { %s49_s20 = sor.u32 %s2096_s18, %s47_s15  ;;  %p167_p9 = scmp.ne.s32.totalorder %s1902_s23, %s1898_s22 }
  0x26   : > { %2687 = sst [smem:[#allocation32_spill]] %s2686_s17  ;;  %p50_p10 = scmp.eq.s32.totalorder %s49_s20, 0 }
  0x27   : > { %p173_p11 = scmp.ne.s32.totalorder %s1898_s22, %s1894_s21  ;;  %p2112_p12 = por %p167_p9, %p2645_p2 }
  0x28   : > { %s2105_s27 = scalar_select %p158_p8, %s1902_s23, %s160_s19  }
  0x29   : > { %s2108_s12 = scalar_select %p50_p10, %s1926_s29, %s52_s14  }
  0x2a   : > { %2688 = sst [smem:[#allocation33_spill]] %s2105_s27  ;;  %p2118_p13 = por %p173_p11, %p2644_p6 }
  0x2b   : > { %2689 = sst [smem:[#allocation34_spill]] %s2108_s12  ;;  %p2646_p0 = scmp.lt.s32.totalorder %s1946_s10, 4 }
  0x2c   : > { %s2690_s6 = scalar_select %p2112_p12, 1, 0 }
  0x2d   : > { %s2691_s13 = scalar_select %p2118_p13, 1, 0 }
  0x2e   : > { %s2124_s15 = sand.u32 1, %s1926_s29   ;;  %p2132_p1 = pnand %p2646_p0, %p2081_p5 }
  0x2f   : > { %2692 = sst [smem:[#allocation35_spill]] %s2691_s13  ;;  %s1203_s14 = sshll.u32 %s2124_s15, 4 }
  0x30   : > { %s2693_s19 = scalar_select %p2132_p1, 1, 0 }
  0x31   : > { %s253_s20 = scalar_lea.vmem [#allocation3], %s1203_s14  ;;  %s2641_s27 = sshll.u32 %s2124_s15, 3 }
  0x32   : > { %s262_s12 = sshll.u32 %s253_s20, 4  ;;  %s1208_s7 = sshll.u32 %s1938_s8, 1  ;;  %s2136_s12 = int_to_ptr.vmem [resolvable:$true] %s262_s12 }
  0x33   : > { %s2141_s29 = sadd.s32 %s1942_s9, %s1208_s7  ;;  %s276_s21 = scalar_lea.vmem [#allocation6], %s2641_s27 }
  0x34   : > { %s2642_s30 = sshll.u32 %s2141_s29, 7  ;;  %s285_s16 = sshll.u32 %s276_s21, 4  ;;  %s2153_s16 = int_to_ptr.vmem [resolvable:$true] %s285_s16 }
  0x35   : > { %s2694_s1 = sld [smem:[#allocation42_spill]]  ;;  %s2695_s7 = sand.u32 1, %s1946_s10  }
  0x36   : > { %s2157_s14 = scalar_lea.sflag [#allocation7], %s2695_s7  ;;  %p2163_p4 = pneg %p2132_p1 }
  0x3b   : > { %s2151_s17 = scalar_lea.hbm %s2694_s1, %s2642_s30  ;;  %s1609_s27 = scalar_lea.hbm %s2694_s1, 512 }
  0x3c   : > { %s1604_s20 = scalar_lea.hbm %s2151_s17, 128  ;;  %p1610_p9 = scmp.lt.u32.totalorder %s2151_s17, %s2694_s1 }
  0x3d   : > { %p1605_p3 = scmp.ne.s32.totalorder %s2151_s17, %s1604_s20  ;;  %p1611_p10 = scmp.lt.u32.totalorder %s1609_s27, %s1604_s20 }
  0x3e   : > { %p1613_p6 = scmp.lt.u32.totalorder %s1604_s20, %s2151_s17 }
  0x3f   : > { %p1607_p5 = pnand %p2163_p4, %p1605_p3  ;;  %p1612_p11 = por %p1611_p10, %p1610_p9 }
  0x41   : > { %p1608_p8 = pneg %p1607_p5  ;;  %p1614_p2 = por %p1613_p6, %p1612_p11 }
  0x43   : > { %p1615_p0 = pnand %p1614_p2, %p1608_p8 }
  0x45   : > { %1618 = shalt.err (!%p1615_p0)
}
  0x46   : > { %s1619_s7 = scalar_lea.vmem %s2153_s16, 128  ;;  %s1948_s22 = smov [#allocation6]  }
  0x47   : > { %p1620_p3 = scmp.ne.s32.totalorder %s2153_s16, %s1619_s7  ;;  %s1624_s13 = sshll.u32 %s1948_s22, 4  ;;  %s1625_s13 = int_to_ptr.vmem [resolvable:$false] %s1624_s13 }
  0x48   : > { %s1626_s28 = scalar_lea.vmem %s1625_s13, 256  ;;  %p1627_p7 = scmp.lt.s32.totalorder %s2153_s16, %s1625_s13 }
  0x49   : > { %p1622_p5 = pnand %p1620_p3, %p2163_p4  ;;  %p1628_p12 = scmp.lt.s32.totalorder %s1626_s28, %s1619_s7 }
  0x4b   : > { %p1623_p13 = pneg %p1622_p5  ;;  %p1629_p9 = por %p1628_p12, %p1627_p7 }
  0x4d   : > { %p1630_p10 = pnand %p1629_p9, %p1623_p13 }
  0x4f   : > { %1633 = shalt.err (!%p1630_p10)
}
  0x50   : > { %1459 = dma.hbm_to_vmem [thread:$0]  (!%p2132_p1), %s2151_s17, 128, %s2153_s16, %s2157_s14  }
  0x51   : > { %s2697_s30 = sshll.u32 %s2141_s29, 7  ;;  %p2698_p2 = scmp.ne.s32.totalorder %s2690_s6, 0 }
  0x52   : > { %s2192_s7 = scalar_lea.hbm %s2627_s2, %s2697_s30  ;;  %p2699_p6 = scmp.lt.s32.totalorder %s1946_s10, 4 }
  0x53   : > { %p1221_p12 = scmp.ge.s32.totalorder %s1946_s10, 1  ;;  %p368_p13 = scmp.lt.s32.totalorder %s1946_s10, 5 }
  0x54   : > { %p2198_p7 = pnand %p2699_p6, %p2698_p2  ;;  %s1200_s29 = sadd.s32 4294967294, %s1946_s10  }
  0x55   : > { %p2204_p0 = pnand %p1221_p12, %p368_p13  ;;  %p132_p8 = scmp.eq.s32.totalorder %s2096_s18, 0 }
  0x56   : > { %s2700_s22 = scalar_select %p2198_p7, 1, 0 }
  0x57   : > { %s2701_s13 = scalar_select %p2204_p0, 1, 0 }
  0x58   : > { %s134_s17 = sadd.s32 1, %s1914_s26  ;;  %p141_p11 = scmp.ne.s32.totalorder %s1914_s26, %s1910_s25 }
  0x59   : > { %2702 = sst [smem:[#allocation36_spill]] %s2701_s13  ;;  %p147_p3 = scmp.ne.s32.totalorder %s1910_s25, %s1906_s24 }
  0x5a   : > { %s2216_s6 = scalar_select %p132_p8, %s1914_s26, %s134_s17  }
  0x5b   : > { %p2704_p5 = scmp.eq.s32.totalorder %s1946_s10, 0  ;;  %p2705_p10 = scmp.eq.s32.totalorder %s2065_s11, 0 }
  0x5c   : > { %2703 = sst [smem:[#allocation37_spill]] %s2216_s6  ;;  %p223_p6 = scmp.eq.s32.totalorder %s2065_s11, 3 }
  0x5d   : > { %p143_p9 = por %p141_p11, %p2704_p5  ;;  %p2222_p2 = por %p147_p3, %p2705_p10 }
  0x5e   : > { %p229_p12 = scmp.eq.s32.totalorder %s1200_s29, 3  ;;  %s2651_s28 = sand.u32 1, %s1914_s26  }
  0x5f   : > { %s2706_s16 = scalar_select %p2222_p2, 1, 0 }
  0x60   : > { %p2228_p13 = por %p223_p6, %p141_p11  ;;  %p2232_p0 = por %p229_p12, %p147_p3 }
  0x61   : > { %2707 = sst [smem:[#allocation38_spill]] %s2706_s16  ;;  %s2238_s27 = sshll.u32 %s2651_s28, 3 }
  0x62   : > { %s2708_s30 = scalar_select %p2228_p13, 1, 0 }
  0x63   : > { %s2710_s18 = scalar_select %p2232_p0, 1, 0 }
  0x64   : > { %2709 = sst [smem:[#allocation39_spill]] %s2708_s30  ;;  %s2654_s20 = sshll.u32 %s1942_s9, 7 }
  0x65   : > { %2711 = sst [smem:[#allocation40_spill]] %s2710_s18  ;;  %s2712_s3 = sld [smem:[#allocation43_spill]] }
  0x66   : > { %s316_s29 = scalar_lea.vmem [#allocation9], %s2238_s27  ;;  %p2713_p8 = scmp.lt.s32.totalorder %s1946_s10, 4 }
  0x67   : > { %s323_s24 = sshll.u32 %s316_s29, 4  ;;  %s2715_s28 = sand.u32 1, %s1946_s10   ;;  %s2255_s24 = int_to_ptr.vmem [resolvable:$true] %s323_s24 }
  0x68   : > { %p2251_p11 = pnand %p2713_p8, %p143_p9  ;;  %s2259_s30 = scalar_lea.sflag [#allocation10], %s2715_s28 }
  0x6a   : > { %s2714_s18 = scalar_select %p2251_p11, 1, 0 }
  0x6b   : > { %s2246_s6 = scalar_lea.hbm %s2712_s3, %s2654_s20  ;;  %p2667_p5 = pneg %p2251_p11 }
  0x6c   : > { %s1634_s1 = scalar_lea.hbm %s2246_s6, 128  ;;  %s1639_s20 = scalar_lea.hbm %s2712_s3, 256 }
  0x6d   : > { %p1635_p3 = scmp.ne.s32.totalorder %s2246_s6, %s1634_s1  ;;  %p1640_p9 = scmp.lt.u32.totalorder %s2246_s6, %s2712_s3 }
  0x6e   : > { %p1641_p12 = scmp.lt.u32.totalorder %s1639_s20, %s1634_s1  ;;  %p1643_p0 = scmp.lt.u32.totalorder %s1634_s1, %s2246_s6 }
  0x6f   : > { %p1637_p10 = pnand %p2667_p5, %p1635_p3 }
  0x70   : > { %p1642_p8 = por %p1641_p12, %p1640_p9 }
  0x71   : > { %p1638_p6 = pneg %p1637_p10 }
  0x72   : > { %p1644_p13 = por %p1643_p0, %p1642_p8 }
  0x74   : > { %p1645_p2 = pnand %p1644_p13, %p1638_p6 }
  0x76   : > { %1648 = shalt.err (!%p1645_p2)
}
  0x77   : > { %s1649_s28 = scalar_lea.vmem %s2255_s24, 128  ;;  %s1949_s17 = smov [#allocation9]  }
  0x78   : > { %p1650_p3 = scmp.ne.s32.totalorder %s2255_s24, %s1649_s28  ;;  %s1654_s29 = sshll.u32 %s1949_s17, 4  ;;  %s1655_s29 = int_to_ptr.vmem [resolvable:$false] %s1654_s29 }
  0x79   : > { %s1656_s25 = scalar_lea.vmem %s1655_s29, 256  ;;  %p1657_p1 = scmp.lt.s32.totalorder %s2255_s24, %s1655_s29 }
  0x7a   : > { %p1652_p10 = pnand %p1650_p3, %p2667_p5  ;;  %p1658_p9 = scmp.lt.s32.totalorder %s1656_s25, %s1649_s28 }
  0x7c   : > { %p1653_p7 = pneg %p1652_p10  ;;  %p1659_p12 = por %p1658_p9, %p1657_p1 }
  0x7e   : > { %p1660_p0 = pnand %p1659_p12, %p1653_p7 }
  0x80   : > { %1663 = shalt.err (!%p1660_p0)
}
  0x81   : > { %1465 = dma.hbm_to_vmem [thread:$0]  (!%p2251_p11), %s2246_s6, 128, %s2255_s24, %s2259_s30  }
  0x82   : > { %s1254_s16 = sshll.u32 %s1938_s8, 2  ;;  %s2716_s0 = sld [smem:[#allocation41_spill]] }
  0x83   : > { %s259_s20 = sadd.s32 %s1942_s9, %s1254_s16  ;;  %s2717_s25 = sshll.u32 %s2124_s15, 3 }
  0x84   : > { %s1206_s1 = sshll.u32 %s259_s20, 7  ;;  %s2296_s3 = scalar_lea.vmem [#allocation8], %s2717_s25 }
  0x85   : > { %s305_s10 = sshll.u32 %s2296_s3, 4  ;;  %s250_s11 = scalar_lea.sflag [#allocation4], %s2124_s15  ;;  %s306_s10 = int_to_ptr.vmem [resolvable:$true] %s305_s10 }
  0x88   : > { %s2292_s28 = scalar_lea.hbm %s2716_s0, %s1206_s1  ;;  %s1669_s16 = scalar_lea.hbm %s2716_s0, 1024 }
  0x89   : > { %s1664_s13 = scalar_lea.hbm %s2292_s28, 256  ;;  %p1670_p13 = scmp.lt.u32.totalorder %s2292_s28, %s2716_s0 }
  0x8a   : > { %p1665_p1 = scmp.ne.s32.totalorder %s2292_s28, %s1664_s13  ;;  %p1671_p6 = scmp.lt.u32.totalorder %s1669_s16, %s1664_s13 }
  0x8b   : > { %p1673_p3 = scmp.lt.u32.totalorder %s1664_s13, %s2292_s28 }
  0x8c   : > { %p1667_p7 = pnand %p1665_p1, %p2163_p4  ;;  %p1672_p8 = por %p1671_p6, %p1670_p13 }
  0x8e   : > { %p1668_p2 = pneg %p1667_p7  ;;  %p1674_p10 = por %p1673_p3, %p1672_p8 }
  0x90   : > { %p1675_p9 = pnand %p1674_p10, %p1668_p2 }
  0x92   : > { %1678 = shalt.err (!%p1675_p9)
}
  0x93   : > { %s1679_s17 = scalar_lea.vmem %s2136_s12, 256  ;;  %s1950_s29 = smov [#allocation3]  }
  0x94   : > { %p1680_p12 = scmp.ne.s32.totalorder %s2136_s12, %s1679_s17  ;;  %s1684_s25 = sshll.u32 %s1950_s29, 4  ;;  %s1685_s25 = int_to_ptr.vmem [resolvable:$false] %s1684_s25 }
  0x95   : > { %s1686_s24 = scalar_lea.vmem %s1685_s25, 512  ;;  %p1687_p7 = scmp.lt.s32.totalorder %s2136_s12, %s1685_s25 }
  0x96   : > { %p1682_p0 = pnand %p1680_p12, %p2163_p4  ;;  %p1688_p5 = scmp.lt.s32.totalorder %s1686_s24, %s1679_s17 }
  0x98   : > { %p1683_p1 = pneg %p1682_p0  ;;  %p1689_p13 = por %p1688_p5, %p1687_p7 }
  0x9a   : > { %p1690_p6 = pnand %p1689_p13, %p1683_p1 }
  0x9c   : > { %1693 = shalt.err (!%p1690_p6)
}
  0x9d   : > { %s1951_s13 = smov 256   ;;  %s1952_s6 = smov 128  }
  0x9e   : > { %s1953_s16 = smov 8   ;;  %p2718_p2 = scmp.ne.s32.totalorder %s2693_s19, 0 }
  0x9f   : > { %s332_s20 = sand.u32 1, %s1902_s23   ;;  %s1694_s1 = scalar_lea.hbm %s2192_s7, 128 }
  0xa0   : > { %1456 = dma.hbm_to_vmem [thread:$0]  (!%p2718_p2), %s2292_s28, 256, %s2136_s12, %s250_s11, %s1951_s13, %s1952_s6, %s1953_s16  }
  0xa1   : > { %p1695_p5 = scmp.ne.s32.totalorder %s2192_s7, %s1694_s1  ;;  %s1699_s25 = scalar_lea.hbm %s2627_s2, 512 }
  0xa2   : > { %p1700_p10 = scmp.lt.u32.totalorder %s2192_s7, %s2627_s2  ;;  %p1701_p9 = scmp.lt.u32.totalorder %s1699_s25, %s1694_s1 }
  0xa3   : > { %p1697_p8 = pnand %p1695_p5, %p2163_p4  ;;  %p1703_p0 = scmp.lt.u32.totalorder %s1694_s1, %s2192_s7 }
  0xa4   : > { %p1702_p12 = por %p1701_p9, %p1700_p10 }
  0xa5   : > { %p1698_p3 = pneg %p1697_p8 }
  0xa6   : > { %p1704_p1 = por %p1703_p0, %p1702_p12 }
  0xa8   : > { %p1705_p7 = pnand %p1704_p1, %p1698_p3 }
  0xaa   : > { %1708 = shalt.err (!%p1705_p7)
}
  0xab   : > { %s1709_s3 = scalar_lea.vmem %s306_s10, 128  ;;  %s1954_s11 = smov [#allocation8]  }
  0xac   : > { %p1710_p13 = scmp.ne.s32.totalorder %s306_s10, %s1709_s3  ;;  %s1714_s12 = sshll.u32 %s1954_s11, 4  ;;  %s1715_s12 = int_to_ptr.vmem [resolvable:$false] %s1714_s12 }
  0xad   : > { %s1716_s15 = scalar_lea.vmem %s1715_s12, 256  ;;  %p1717_p8 = scmp.lt.s32.totalorder %s306_s10, %s1715_s12 }
  0xae   : > { %p1712_p6 = pnand %p1710_p13, %p2163_p4  ;;  %p1718_p11 = scmp.lt.s32.totalorder %s1716_s15, %s1709_s3 }
  0xb0   : > { %p1713_p5 = pneg %p1712_p6  ;;  %p1719_p2 = por %p1718_p11, %p1717_p8 }
  0xb2   : > { %p1720_p9 = pnand %p1719_p2, %p1713_p5 }
  0xb4   : > { %1723 = shalt.err (!%p1720_p9)
}
  0xb5   : > { %p2719_p10 = scmp.ne.s32.totalorder %s2693_s19, 0  ;;  %s1215_s0 = sshll.u32 %s332_s20, 8 }
  0xb6   : > { %s1256_s21 = sshll.u32 %s1938_s8, 12  ;;  %s334_s17 = scalar_lea.vmem [#allocation11], %s1215_s0 }
  0xb7   : > { %1462 = dma.hbm_to_vmem [thread:$0]  (!%p2719_p10), %s2192_s7, 128, %s306_s10, %s2157_s14  }
  0xb8   : > { %s2350_s1 = scalar_lea.hbm %s2629_s4, %s1256_s21  ;;  %s342_s29 = sshll.u32 %s334_s17, 4  ;;  %s2352_s29 = int_to_ptr.vmem [resolvable:$true] %s342_s29 }
  0xb9   : > { %s1724_s19 = scalar_lea.hbm %s2350_s1, 4096  ;;  %p2720_p11 = scmp.ne.s32.totalorder %s2700_s22, 0 }
  0xba   : > { %p1725_p4 = scmp.ne.s32.totalorder %s2350_s1, %s1724_s19  ;;  %s1729_s7 = scalar_lea.hbm %s2629_s4, 8192 }
  0xbb   : > { %p1726_p2 = pneg %p2720_p11  ;;  %p1730_p0 = scmp.lt.u32.totalorder %s2350_s1, %s2629_s4 }
  0xbc   : > { %p1731_p1 = scmp.lt.u32.totalorder %s1729_s7, %s1724_s19  ;;  %p1733_p13 = scmp.lt.u32.totalorder %s1724_s19, %s2350_s1 }
  0xbd   : > { %p1727_p3 = pnand %p1726_p2, %p1725_p4 }
  0xbe   : > { %p1732_p7 = por %p1731_p1, %p1730_p0 }
  0xbf   : > { %p1728_p12 = pneg %p1727_p3 }
  0xc0   : > { %p1734_p6 = por %p1733_p13, %p1732_p7 }
  0xc2   : > { %p1735_p5 = pnand %p1734_p6, %p1728_p12 }
  0xc4   : > { %1738 = shalt.err (!%p1735_p5)
}
  0xc5   : > { %s1739_s24 = scalar_lea.vmem %s2352_s29, 4096  ;;  %s1955_s3 = smov [#allocation11]  }
  0xc6   : > { %p1740_p8 = scmp.ne.s32.totalorder %s2352_s29, %s1739_s24  ;;  %s1744_s11 = sshll.u32 %s1955_s3, 4  ;;  %s1745_s11 = int_to_ptr.vmem [resolvable:$false] %s1744_s11 }
  0xc7   : > { %s1746_s12 = scalar_lea.vmem %s1745_s11, 8192  ;;  %p1747_p4 = scmp.lt.s32.totalorder %s2352_s29, %s1745_s11 }
  0xc8   : > { %p1742_p9 = pnand %p1740_p8, %p1726_p2  ;;  %p1748_p3 = scmp.lt.s32.totalorder %s1746_s12, %s1739_s24 }
  0xca   : > { %p1743_p10 = pneg %p1742_p9  ;;  %p1749_p0 = por %p1748_p3, %p1747_p4 }
  0xcc   : > { %p1750_p1 = pnand %p1749_p0, %p1743_p10 }
  0xce   : > { %1753 = shalt.err (!%p1750_p1)
}
  0xcf   : > { %1468 = dma.hbm_to_vmem [thread:$0]  (!%p2720_p11), %s2350_s1, 4096, %s2352_s29, %s2259_s30, %s1952_s6, %s1952_s6, %s1953_s16  }
  0xd0   : > { %s2721_s15 = sshll.u32 %s1942_s9, 7  ;;  %s356_s22 = scalar_lea.vmem [#allocation12], %s2238_s27 }
  0xd1   : > { %s2388_s28 = scalar_lea.hbm %s2630_s5, %s2721_s15  ;;  %s363_s13 = sshll.u32 %s356_s22, 4  ;;  %s364_s13 = int_to_ptr.vmem [resolvable:$true] %s363_s13 }
  0xd2   : > { %s2722_s17 = sand.u32 1, %s1914_s26   ;;  %s1754_s10 = scalar_lea.hbm %s2388_s28, 128 }
  0xd3   : > { %s353_s19 = scalar_lea.sflag [#allocation13], %s2722_s17  ;;  %p1755_p2 = scmp.ne.s32.totalorder %s2388_s28, %s1754_s10 }
  0xd4   : > { %p2723_p12 = scmp.ne.s32.totalorder %s2714_s18, 0  ;;  %s1759_s16 = scalar_lea.hbm %s2630_s5, 256 }
  0xd5   : > { %p1760_p6 = scmp.lt.u32.totalorder %s2388_s28, %s2630_s5  ;;  %p1761_p5 = scmp.lt.u32.totalorder %s1759_s16, %s1754_s10 }
  0xd6   : > { %p2724_p7 = pneg %p2723_p12  ;;  %p1763_p9 = scmp.lt.u32.totalorder %s1754_s10, %s2388_s28 }
  0xd7   : > { %p1762_p8 = por %p1761_p5, %p1760_p6 }
  0xd8   : > { %p1757_p11 = pnand %p1755_p2, %p2724_p7 }
  0xd9   : > { %p1764_p10 = por %p1763_p9, %p1762_p8 }
  0xda   : > { %p1758_p13 = pneg %p1757_p11 }
  0xdc   : > { %p1765_p4 = pnand %p1764_p10, %p1758_p13 }
  0xde   : > { %1768 = shalt.err (!%p1765_p4)
}
  0xdf   : > { %s1769_s27 = scalar_lea.vmem %s364_s13, 128  ;;  %p2725_p0 = pmov %p2724_p7 }
  0xe0   : > { %p1770_p3 = scmp.ne.s32.totalorder %s364_s13, %s1769_s27  ;;  %s1956_s14 = smov [#allocation12]  }
  0xe1   : > { %s1774_s7 = sshll.u32 %s1956_s14, 4  ;;  %s1775_s7 = int_to_ptr.vmem [resolvable:$false] %s1774_s7 }
  0xe2   : > { %p1772_p1 = pnand %p1770_p3, %p2725_p0  ;;  %s1776_s20 = scalar_lea.vmem %s1775_s7, 256 }
  0xe3   : > { %p1777_p7 = scmp.lt.s32.totalorder %s364_s13, %s1775_s7  ;;  %p1778_p11 = scmp.lt.s32.totalorder %s1776_s20, %s1769_s27 }
  0xe4   : > { %p1773_p2 = pneg %p1772_p1 }
  0xe5   : > { %p1779_p5 = por %p1778_p11, %p1777_p7 }
  0xe7   : > { %p1780_p6 = pnand %p1779_p5, %p1773_p2 }
  0xe9   : > { %1783 = shalt.err (!%p1780_p6)
}
  0xea   : > { %1471 = dma.hbm_to_vmem [thread:$0]  (!%p2723_p12), %s2388_s28, 128, %s364_s13, %s353_s19  }
  0xeb   : > { %s2726_s25 = sld [smem:[#allocation36_spill]] }
  0xf1   : > { %p2727_p13 = scmp.ne.s32.totalorder %s2726_s25, 0 }
  0xf2   : > { %s2728_s24 = sld [smem:[#allocation24_spill]] (!%p2727_p13)  ;;  %s2729_s3 = sld [smem:[#allocation32_spill]] (!%p2727_p13) }
  0xf3   : > { %372 = sbr.rel (%p2727_p13) target bundleno = 1733 (0x6c5), region = 44 }
  0xf8   : > { %s374_s11 = sand.u32 (!%p2727_p13), 1, %s2728_s24   ;;  %p2730_p8 = scmp.ne.s32.totalorder (!%p2727_p13), %s2729_s3, 0 }
  0xf9   : > { %s1222_s12 = sshll.u32 (!%p2727_p13), %s374_s11, 4  ;;  %s375_s15 = scalar_lea.sflag (!%p2727_p13), [#allocation4], %s374_s11 }
  0xfa   : > { %s2415_s0 = scalar_lea.vmem [#allocation3], %s1222_s12 }
  0xfb   : > { %1869 = dma.done.wait (%p2730_p8), %s375_s15, 256  }
  0xfc   : > { %1871 = vsyncadd (%p2730_p8), %s375_s15, 4294967040  ;;  %s2731_s21 = sld [smem:[#allocation29_spill]]  ;;  %s1223_s22 = sshll.u32 %s374_s11, 3 }
  0xfd   : > { %s387_s13 = scalar_lea.vmem [#allocation6], %s1223_s22 }
 0x102   : > { %s383_s18 = sand.u32 1, %s2731_s21  }
 0x103   : > { %s384_s28 = scalar_lea.sflag [#allocation7], %s383_s18 }
 0x104   : > { %1873 = dma.done.wait (%p2730_p8), %s384_s28, 256  }
 0x105   : > { %1875 = vsyncadd (%p2730_p8), %s384_s28, 4294967040  ;;  %s2732_s17 = sld [smem:[#allocation23_spill]]  ;;  %s2432_s6 = scalar_lea.vmem [#allocation8], %s1223_s22 }
 0x106   : > { %s2733_s19 = sld [smem:[#allocation38_spill]]  ;;  %s402_s16 = scalar_lea.sflag [#allocation10], %s383_s18 }
 0x10b   : > { %s2427_s10 = sand.u32 1, %s2732_s17  }
 0x10c   : > { %s2430_s30 = sshll.u32 %s2427_s10, 3  ;;  %p2734_p12 = scmp.ne.s32.totalorder %s2733_s19, 0 }
 0x10d   : > { %s405_s1 = scalar_lea.vmem [#allocation9], %s2430_s30 }
 0x10e   : > { %1877 = dma.done.wait (%p2734_p12), %s402_s16, 128  }
 0x10f   : > { %1879 = vsyncadd (%p2734_p12), %s402_s16, 4294967168  ;;  %s2735_s29 = sld [smem:[#allocation21_spill]]  ;;  %s2736_s27 = sld [smem:[#allocation35_spill]] }
 0x115   : > { %s412_s14 = sand.u32 1, %s2735_s29   ;;  %p2737_p9 = scmp.ne.s32.totalorder %s2736_s27, 0 }
 0x116   : > { %s1226_s7 = sshll.u32 %s412_s14, 8 }
 0x117   : > { %s2440_s20 = scalar_lea.vmem [#allocation11], %s1226_s7 }
 0x118   : > { %1881 = dma.done.wait (%p2737_p9), %s402_s16, 4096  }
 0x119   : > { %1883 = vsyncadd (%p2737_p9), %s402_s16, 4294963200  ;;  %s420_s25 = scalar_lea.sflag [#allocation13], %s2427_s10  ;;  %s423_s24 = scalar_lea.vmem [#allocation12], %s2430_s30 }
 0x11a   : > { %1885 = dma.done.wait (%p2734_p12), %s420_s25, 128  }
 0x11b   : > { %1887 = vsyncadd (%p2734_p12), %s420_s25, 4294967168  ;;  %s476_s3 = scalar_lea.vmem [#allocation14], %s2430_s30  ;;  %s2738_s11 = sld [smem:[#allocation26_spill]] }
 0x121   : > { %p1229_p10 = scmp.ne.s32.totalorder %s2738_s11, 0 }
 0x122   : > { %v483_v0 = vld [vmem:[%s423_s24] sm:$0xff] (!%p1229_p10)  ;;  %vm484_vm0 = vcmask (!%p1229_p10), 523264  }
 0x123   : > { %482 = sbr.rel (%p1229_p10) target bundleno = 298 (0x12a), region = 72  ;;  %485 = vst.msk [vmem:[#allocation2] sm:$0xff] (!%p1229_p10), %vm484_vm0, %v483_v0 }
 0x12a PF: > { %v2454_v1 = vld [vmem:[%s387_s13] sm:$0xff]  ;;  %v1957_v2 = vmov 0.0   ;;  %vm1958_vm1 = vmmov 0   ;;  %vm563_vm2 = vcmask 64512   ;;  %v2473_v10 = vld [vmem:[%s2432_s6] sm:$0xff]  ;;  %v1959_v19 = vmov 0.0|0.0  }
 0x12b   : > { %1299 = vmatprep.subr.mxu1 %v1957_v2  ;;  %1301 = vmatprep.mubr.msk.f32.mxu1 %vm1958_vm1, %v1957_v2  ;;  %v490_v3 = vld [vmem:[%s2415_s0] sm:$0xff]  ;;  %v649_v17 = vld [vmem:[%s2440_s20 + $0x8] sm:$0xff]  ;;  %v651_v21 = vld [vmem:[%s2440_s20 + $0x18] sm:$0xff]  ;;  %vm981_vm3 = vcmask 523264   ;;  %s2739_s12 = sld [smem:[#allocation26_spill]] }
 0x12c   : > { %1300 = vmatpush3.xpose.msra.mxu1 %v2454_v1  ;;  %1341 = vmatprep.mubr.msk.f32.mxu0 %vm1958_vm1, %v1957_v2  ;;  %v2468_v5 = vld [vmem:[%s405_s1] sm:$0xff]  ;;  %v648_v16 = vld [vmem:[%s2440_s20] sm:$0xff]  ;;  %v653_v24 = vld [vmem:[%s2440_s20 + $0x28] sm:$0xff] }
 0x12d   : > { %1304 = vmatprep.subr.mxu1 %v1957_v2  ;;  %v650_v18 = vld [vmem:[%s2440_s20 + $0x10] sm:$0xff]  ;;  %1389 = vmatprep.subr.bf16.mxu0 %v1959_v19  ;;  %v1390_v20 = vpack.c.bf16 %v649_v17, %v648_v16  ;;  %v652_v23 = vld [vmem:[%s2440_s20 + $0x20] sm:$0xff]  ;;  %v655_v27 = vld [vmem:[%s2440_s20 + $0x38] sm:$0xff] }
 0x12e   : > { %v1393_v22 = vpack.c.bf16 %v651_v21, %v650_v18  ;;  %v1396_v25 = vpack.c.bf16 %v653_v24, %v652_v23  ;;  %v654_v26 = vld [vmem:[%s2440_s20 + $0x30] sm:$0xff]  ;;  %v656_v29 = vld [vmem:[%s2440_s20 + $0x40] sm:$0xff]  ;;  %v657_v30 = vld [vmem:[%s2440_s20 + $0x48] sm:$0xff] }
 0x12f   : > { %1302 = vmatmul.mubr.f32.vlgmr.msra.gmra.mrb[0].mxu1 %v490_v3  ;;  %1391 = vmatpush3.bf16.msra.mxu0 %v1390_v20  ;;  %v1399_v28 = vpack.c.bf16 %v655_v27, %v654_v26  ;;  %v1402_v31 = vpack.c.bf16 %v657_v30, %v656_v29  ;;  %v658_v32 = vld [vmem:[%s2440_s20 + $0x50] sm:$0xff]  ;;  %v659_v33 = vld [vmem:[%s2440_s20 + $0x58] sm:$0xff]  ;;  %v660_v35 = vld [vmem:[%s2440_s20 + $0x60] sm:$0xff] }
 0x130   : > { %1306 = vmatprep.mubr.msk.f32.mxu1 %vm1958_vm1, %v1957_v2  ;;  %1305 = vmatpush3.msra.mxu1 %v2473_v10  ;;  %v1405_v34 = vpack.c.bf16 %v659_v33, %v658_v32  ;;  %v661_v36 = vld [vmem:[%s2440_s20 + $0x68] sm:$0xff]  ;;  %v662_v38 = vld [vmem:[%s2440_s20 + $0x70] sm:$0xff]  ;;  %v663_v39 = vld [vmem:[%s2440_s20 + $0x78] sm:$0xff] }
 0x131   : > { %1413 = vmatprep.subr.bf16.mxu1 %v1959_v19  ;;  %1392 = vmatprep.subr.bf16.mxu0 %v1959_v19  ;;  %v1408_v37 = vpack.c.bf16 %v661_v36, %v660_v35  ;;  %v1411_v40 = vpack.c.bf16 %v663_v39, %v662_v38  ;;  %v1231_v46 = vld [vmem:[%s2415_s0 + $0x8] sm:$0xff]  ;;  %v1233_v59 = vld [vmem:[%s2440_s20 + $0x80] sm:$0xff]  ;;  %v1235_v61 = vld [vmem:[%s2440_s20 + $0x90] sm:$0xff]  ;;  %p1249_p4 = scmp.ne.s32.totalorder %s2739_s12, 1 }
 0x132   : > { %v1234_v60 = vld [vmem:[%s2440_s20 + $0x88] sm:$0xff]  ;;  %v1236_v63 = vld [vmem:[%s2440_s20 + $0x98] sm:$0xff]  ;;  %v1247_v16 = vld [vmem:[%s2440_s20 + $0xf0] sm:$0xff] }
 0x133   : > { %1394 = vmatpush3.bf16.msra.mxu0 %v1393_v22  ;;  %v1414_v62 = vpack.c.bf16 %v1234_v60, %v1233_v59  ;;  %v1417_v0 = vpack.c.bf16 %v1236_v63, %v1235_v61  ;;  %v1248_v17 = vld [vmem:[%s2440_s20 + $0xf8] sm:$0xff] }
 0x134   : > { %1395 = vmatprep.subr.bf16.mxu0 %v1959_v19  ;;  %v1435_v18 = vpack.c.bf16 %v1248_v17, %v1247_v16 }
 0x137   : > { %1397 = vmatpush3.bf16.msra.mxu0 %v1396_v25  ;;  %v489_v25 = vld [vmem:[#allocation2] sm:$0xff] }
 0x138   : > { %1398 = vmatprep.subr.bf16.mxu0 %v1959_v19 }
 0x13b   : > { %1400 = vmatpush3.bf16.msra.mxu0 %v1399_v28 }
 0x13c   : > { %1401 = vmatprep.subr.bf16.mxu0 %v1959_v19 }
 0x13f   : > { %1403 = vmatpush3.bf16.msra.mxu0 %v1402_v31 }
 0x140   : > { %1404 = vmatprep.subr.bf16.mxu0 %v1959_v19 }
 0x143   : > { %1406 = vmatpush3.bf16.msra.mxu0 %v1405_v34 }
 0x144   : > { %1407 = vmatprep.subr.bf16.mxu0 %v1959_v19 }
 0x147   : > { %1409 = vmatpush3.bf16.msra.mxu0 %v1408_v37 }
 0x148   : > { %1410 = vmatprep.subr.bf16.mxu0 %v1959_v19 }
 0x14b   : > { %1412 = vmatpush3.bf16.msra.mxu0 %v1411_v40 }
 0x14c   : > { %1344 = vmatprep.subr.mxu0 %v1957_v2 }
 0x202   : > { %v557_v4 = vpop.f32.mrb[0].mxu1 }
 0x203   : > { %v561_v6 = vmul.f32 0.088388346, %v557_v4  ;;  %v1303_v7 = vpop.f32.mrb[1].mxu1  ;;  %v1239_v4 = vld [vmem:[%s2440_s20 + $0xb0] sm:$0xff] }
 0x204   : > { %v1241_v7 = vld [vmem:[%s2440_s20 + $0xc0] sm:$0xff] }
 0x205   : > { %v562_v8 = vadd.f32 %v561_v6, %v2468_v5 }
 0x207   : > { %v564_v9 = vsel %vm563_vm2, %v562_v8, -inf }
 0x208   : > { %565 = vmax.xlane.f32.xlu0 %v564_v9 }
 0x295   : > { %v566_v11 = vpop.xlane.xlu0 %565 }
 0x296   : > { %v567_v12 = vsub.f32 %v562_v8, %v566_v11  ;;  %v1242_v8 = vld [vmem:[%s2440_s20 + $0xc8] sm:$0xff]  ;;  %v1244_v11 = vld [vmem:[%s2440_s20 + $0xd8] sm:$0xff] }
 0x297   : > { %v1426_v9 = vpack.c.bf16 %v1242_v8, %v1241_v7 }
 0x298   : > { %v568_v13 = vmul.f32 1.442695, %v567_v12 }
 0x29a   : > { %1596 = vpow2.f32 %v568_v13  ;;  %v1245_v13 = vld [vmem:[%s2440_s20 + $0xe0] sm:$0xff] }
 0x2a4   : > { %v1597_v14 = vpop.eup %1596 }
 0x2a5   : > { %1307 = vmatmul.mubr.msk.f32.vlgmr.msra.gmra.mrb[2].mxu1 %vm563_vm2, %v1597_v14  ;;  %v570_v15 = vsel %vm563_vm2, %v1597_v14, 0.0  ;;  %v1246_v14 = vld [vmem:[%s2440_s20 + $0xe8] sm:$0xff] }
 0x2a6   : > { %571 = vadd.xlane.f32.xlu0 %v570_v15  ;;  %1386 = vmatprep.mubr.msk.f32.mxu1 %vm1958_vm1, %v1957_v2  ;;  %v1432_v15 = vpack.c.bf16 %v1246_v14, %v1245_v13 }
 0x2a7   : > { %1415 = vmatpush3.bf16.msra.mxu1 %v1414_v62 }
 0x2a8   : > { %1416 = vmatprep.subr.bf16.mxu1 %v1959_v19 }
 0x2ab   : > { %1418 = vmatpush3.bf16.msra.mxu1 %v1417_v0 }
 0x2ac   : > { %1419 = vmatprep.subr.bf16.mxu1 %v1959_v19 }
 0x333   : > { %v572_v41 = vpop.xlane.xlu0 %571 }
 0x334   : > { %1598 = vrcp.f32 %v572_v41 }
 0x33e   : > { %v1599_v42 = vpop.eup %1598 }
 0x378   : > { %v642_v43 = vpop.f32.mrb[2].mxu1 }
 0x379   : > { %v647_v44 = vmul.f32 %v1599_v42, %v642_v43  ;;  %v1308_v45 = vpop.f32.mrb[3].mxu1 }
 0x37b   : > { %1342 = vmatmul.mubr.f32.vlgmr.msra.gmra.mrb[0].mxu0 %v647_v44 }
 0x37c   : > { %1345 = vmatpush3.xpose.msra.mxu0 %v2454_v1  ;;  %1346 = vmatprep.mubr.msk.f32.mxu0 %vm1958_vm1, %v1957_v2  ;;  %v1237_v1 = vld [vmem:[%s2440_s20 + $0xa0] sm:$0xff] }
 0x37d   : > { %1349 = vmatprep.subr.mxu0 %v1957_v2 }
 0x37f   : > { %1347 = vmatmul.mubr.f32.vlgmr.msra.gmra.mrb[2].mxu0 %v1231_v46 }
 0x380   : > { %1350 = vmatpush3.msra.mxu0 %v2473_v10  ;;  %1351 = vmatprep.mubr.msk.f32.mxu0 %vm1958_vm1, %v1957_v2  ;;  %v1238_v2 = vld [vmem:[%s2440_s20 + $0xa8] sm:$0xff]  ;;  %v1243_v10 = vld [vmem:[%s2440_s20 + $0xd0] sm:$0xff] }
 0x381   : > { %v1420_v3 = vpack.c.bf16 %v1238_v2, %v1237_v1  ;;  %v1429_v12 = vpack.c.bf16 %v1244_v11, %v1243_v10 }
 0x383   : > { %1421 = vmatpush3.bf16.msra.mxu1 %v1420_v3 }
 0x384   : > { %1422 = vmatprep.subr.bf16.mxu1 %v1959_v19 }
 0x44e   : > { %v2514_v47 = vpop.f32.mrb[0].mxu0 }
 0x44f   : > { %v1343_v48 = vpop.f32.mrb[1].mxu0  ;;  %v734_v26 = vadd.f32 %v2514_v47, %v489_v25 }
 0x452   : > { %v803_v49 = vpop.f32.mrb[2].mxu0 }
 0x453   : > { %v807_v50 = vmul.f32 0.088388346, %v803_v49  ;;  %v1348_v51 = vpop.f32.mrb[3].mxu0 }
 0x455   : > { %v808_v52 = vadd.f32 %v807_v50, %v2468_v5  ;;  %v1240_v5 = vld [vmem:[%s2440_s20 + $0xb8] sm:$0xff] }
 0x456   : > { %v1423_v6 = vpack.c.bf16 %v1240_v5, %v1239_v4 }
 0x457   : > { %v809_v53 = vsel %vm563_vm2, %v808_v52, -inf }
 0x458   : > { %810 = vmax.xlane.f32.xlu1 %v809_v53  ;;  %1424 = vmatpush3.bf16.msra.mxu1 %v1423_v6 }
 0x459   : > { %1425 = vmatprep.subr.bf16.mxu1 %v1959_v19 }
 0x45c   : > { %1427 = vmatpush3.bf16.msra.mxu1 %v1426_v9 }
 0x45d   : > { %1428 = vmatprep.subr.bf16.mxu1 %v1959_v19 }
 0x460   : > { %1430 = vmatpush3.bf16.msra.mxu1 %v1429_v12 }
 0x461   : > { %1431 = vmatprep.subr.bf16.mxu1 %v1959_v19 }
 0x464   : > { %1433 = vmatpush3.bf16.msra.mxu1 %v1432_v15 }
 0x465   : > { %1434 = vmatprep.subr.bf16.mxu1 %v1959_v19 }
 0x468   : > { %1436 = vmatpush3.bf16.msra.mxu1 %v1435_v18 }
 0x4e5   : > { %v811_v54 = vpop.xlane.xlu1 %810 }
 0x4e6   : > { %v812_v55 = vsub.f32 %v808_v52, %v811_v54 }
 0x4e8   : > { %v813_v56 = vmul.f32 1.442695, %v812_v55 }
 0x4ea   : > { %1600 = vpow2.f32 %v813_v56 }
 0x4f4   : > { %v1601_v57 = vpop.eup %1600 }
 0x4f5   : > { %1352 = vmatmul.mubr.msk.f32.vlgmr.msra.gmra.mrb[4].mxu0 %vm563_vm2, %v1601_v57  ;;  %v815_v58 = vsel %vm563_vm2, %v1601_v57, 0.0 }
 0x4f6   : > { %816 = vadd.xlane.f32.xlu1 %v815_v58 }
 0x583   : > { %v817_v20 = vpop.xlane.xlu1 %816 }
 0x584   : > { %1602 = vrcp.f32 %v817_v20 }
 0x58e   : > { %v1603_v21 = vpop.eup %1602 }
 0x5c8   : > { %v887_v22 = vpop.f32.mrb[4].mxu0 }
 0x5c9   : > { %v892_v23 = vmul.f32 %v1603_v21, %v887_v22  ;;  %v1353_v24 = vpop.f32.mrb[5].mxu0 }
 0x5cb   : > { %1387 = vmatmul.mubr.f32.vlgmr.msra.gmra.mrb[4].mxu1 %v892_v23 }
 0x69b   : > { %986 = sbr.rel (%p1249_p4) target bundleno = 1706 (0x6aa), region = 76 }
 0x69e   : > { %v976_v27 = vpop.f32.mrb[4].mxu1 }
 0x69f   : > { %v980_v28 = vadd.f32 %v976_v27, %v734_v26  ;;  %v1388_v29 = vpop.f32.mrb[5].mxu1 }
 0x6a1   : > { %982 = vst.msk [vmem:[#allocation2] sm:$0xff] %vm981_vm3, %v980_v28 }
 0x6a8   : > { %v987_v19 = vld [vmem:[#allocation2] sm:$0xff] }
 0x6a9   : > { %988 = vst.msk [vmem:[%s476_s3] sm:$0xff] %vm981_vm3, %v987_v19 }
 0x6aa PF: > { %s2740_s15 = sld [smem:[#allocation27_spill]]  ;;  %s2741_s0 = sld [smem:[#allocation39_spill]] }
 0x6ab   : > { %s2742_s28 = sld [smem:[#allocation44_spill]]  ;;  %s1003_s19 = sshll.u32 %s476_s3, 4  ;;  %s1004_s19 = int_to_ptr.vmem [resolvable:$true] %s1003_s19 }
 0x6ac   : > { %s990_s6 = scalar_lea.sflag [#allocation5], %s2427_s10  ;;  %s1784_s16 = scalar_lea.vmem %s1004_s19, 128 }
 0x6ad   : > { %p1785_p3 = scmp.ne.s32.totalorder %s1004_s19, %s1784_s16  ;;  %s1960_s1 = smov [#allocation14]  }
 0x6ae   : > { %s1788_s29 = sshll.u32 %s1960_s1, 4  ;;  %s1789_s29 = int_to_ptr.vmem [resolvable:$false] %s1788_s29 }
 0x6af   : > { %s1790_s27 = scalar_lea.vmem %s1789_s29, 256  ;;  %p1791_p7 = scmp.lt.s32.totalorder %s1004_s19, %s1789_s29 }
 0x6b0   : > { %s1251_s21 = sshll.u32 %s2740_s15, 7  ;;  %p2744_p0 = scmp.ne.s32.totalorder %s2741_s0, 0 }
 0x6b1   : > { %s2743_s13 = smov %s2742_s28  ;;  %s2551_s17 = scalar_lea.hbm %s2742_s28, %s1251_s21 }
 0x6b2   : > { %p1786_p1 = pnand %p1785_p3, %p2744_p0  ;;  %p1792_p11 = scmp.lt.s32.totalorder %s1790_s27, %s1784_s16 }
 0x6b4   : > { %p1787_p2 = pneg %p1786_p1  ;;  %p1793_p5 = por %p1792_p11, %p1791_p7 }
 0x6b6   : > { %p1794_p6 = pnand %p1793_p5, %p1787_p2 }
 0x6b8   : > { %1797 = shalt.err (!%p1794_p6)
}
 0x6b9   : > { %s1798_s10 = scalar_lea.hbm %s2551_s17, 128  ;;  %s1802_s7 = scalar_lea.hbm %s2743_s13, 256 }
 0x6ba   : > { %p1799_p13 = scmp.ne.s32.totalorder %s2551_s17, %s1798_s10  ;;  %p1803_p9 = scmp.lt.u32.totalorder %s2551_s17, %s2743_s13 }
 0x6bb   : > { %p1804_p10 = scmp.lt.u32.totalorder %s1802_s7, %s1798_s10  ;;  %p1806_p3 = scmp.lt.u32.totalorder %s1798_s10, %s2551_s17 }
 0x6bc   : > { %p1800_p8 = pnand %p1799_p13, %p2744_p0 }
 0x6bd   : > { %p1805_p4 = por %p1804_p10, %p1803_p9 }
 0x6be   : > { %p1801_p12 = pneg %p1800_p8 }
 0x6bf   : > { %p1807_p1 = por %p1806_p3, %p1805_p4 }
 0x6c1   : > { %p1808_p2 = pnand %p1807_p1, %p1801_p12 }
 0x6c3   : > { %1811 = shalt.err (!%p1808_p2)
}
 0x6c4   : > { %1451 = dma.vmem_to_hbm [thread:$0]  (%p2744_p0), %s1004_s19, 128, %s2551_s17, %s990_s6  }
 0x6c5 PF: > { %s2745_s24 = sld [smem:[#allocation28_spill]]  ;;  %s2746_s3 = sld [smem:[#allocation22_spill]] }
 0x6c6   : > { %s2747_s11 = sld [smem:[#allocation40_spill]] }
 0x6cb   : > { %p1477_p7 = scmp.ge.s32.totalorder %s2745_s24, 2  ;;  %s1015_s12 = sand.u32 1, %s2746_s3  }
 0x6cc   : > { %p2748_p11 = scmp.ne.s32.totalorder %s2747_s11, 0  ;;  %s1016_s15 = scalar_lea.sflag [#allocation5], %s1015_s12 }
 0x6ce   : > { %p1473_p5 = pnand %p1477_p7, %p2748_p11 }
 0x6d0   : > { %1889 = dma.done.wait (!%p1473_p5), %s1016_s15, 128  }
 0x6d1   : > { %1891 = vsyncadd (!%p1473_p5), %s1016_s15, 4294967168  ;;  %s31_s10 = sadd.s32 1, %s2745_s24   ;;  %s2750_s0 = sld [smem:[#allocation21_spill]] }
 0x6d2   : > { %p2578_p6 = scmp.ge.s32.totalorder %s31_s10, 6   ;;  %s2751_s18 = sld [smem:[#allocation33_spill]] }
 0x6d3   : > { %s2752_s24 = sld [smem:[#allocation23_spill]]  ;;  %s2753_s28 = sld [smem:[#allocation37_spill]] }
 0x6d4   : > { %s2754_s27 = sld [smem:[#allocation24_spill]]  ;;  %s2755_s17 = sld [smem:[#allocation25_spill]] }
 0x6d5   : > { %s2756_s29 = sld [smem:[#allocation34_spill]]  ;;  %s2757_s19 = sld [smem:[#allocation30_spill]] }
 0x6d6   : > { %s2758_s6 = sld [smem:[#allocation31_spill]]  ;;  %s2761_s22 = smov %s1902_s23 }
 0x6d7   : > { %s2760_s21 = smov %s2750_s0  ;;  %s2763_s25 = smov %s1914_s26 }
 0x6d8   : > { %s2762_s23 = smov %s2751_s18  ;;  %s2766_s30 = smov %s1938_s8 }
 0x6d9   : > { %s2764_s26 = smov %s2753_s28  ;;  %s2767_s7 = smov %s1942_s9 }
 0x6da   : > { %s2765_s28 = smov %s2755_s17  ;;  %30 = sbr.rel (!%p2578_p6) target bundleno = 21 (0x15), region = 160 }
 0x6db   : > { %s2768_s8 = smov %s2757_s19 }
 0x6dc   : > { %s2769_s9 = smov %s2758_s6 }
 0x6e1   :  { %1021 = vsyncpa [#allocation4], 1 }
 0x6e2   :  { %1023 = vsyncpa [#allocation4 + $0x1], 1 }
 0x6e3   :  { %1024 = vsyncpa [#allocation7], 1 }
 0x6e4   :  { %1026 = vsyncpa [#allocation7 + $0x1], 1 }
 0x6e5   :  { %1027 = vsyncpa [#allocation10], 1 }
 0x6e6   :  { %1029 = vsyncpa [#allocation10 + $0x1], 1 }
 0x6e7   :  { %1030 = vsyncpa [#allocation13], 1 }
 0x6e8   :  { %1032 = vsyncpa [#allocation13 + $0x1], 1 }
 0x6e9   :  { %1033 = vsyncpa [#allocation5], 1 }
 0x6ea   :  { %1035 = vsyncpa [#allocation5 + $0x1], 1 }

// kernel: qwen3_decoder_layer.5
= control target key start
LH: loop header
LB: loop body
LE: loop exit
PB: predicated region body
PF: predicated region fallthrough
CT: control target
= control target key end

     0   :  { %10 = vsyncpa [#allocation5], 0  ;;  %s917_s0 = inlined_call_operand.hbm [shape: f32[16,64], index: 0, kind: input, shape index: {}]   ;;  %s918_s1 = inlined_call_operand.hbm [shape: f32[1,64], index: 1, kind: input, shape index: {}]   ;;  %s919_s2 = inlined_call_operand.hbm [shape: f32[64,128], index: 2, kind: input, shape index: {}]   ;;  %s920_s3 = inlined_call_operand.hbm [shape: f32[64,128], index: 3, kind: input, shape index: {}]   ;;  %s921_s4 = inlined_call_operand.hbm [shape: f32[128,64], index: 4, kind: input, shape index: {}]   ;;  %s922_s5 = inlined_call_operand.hbm [shape: f32[16,64], index: 5, kind: output, shape index: {}]  }
   0x1   :  { %11 = vsyncpa [#allocation8], 0 }
   0x2   :  { %12 = vsyncpa [#allocation11], 0 }
   0x3   :  { %13 = vsyncpa [#allocation6], 0  ;;  %s778_s18 = smov [#allocation7]   ;;  %s638_s22 = scalar_lea.hbm %s918_s1, 16 }
   0x4   :  { %s32_s19 = sshll.u32 %s778_s18, 4  ;;  %p639_p0 = scmp.ne.s32.totalorder %s918_s1, %s638_s22  ;;  %s33_s19 = int_to_ptr.vmem [resolvable:$true] %s32_s19 }
   0x5   :  { %p642_p1 = scmp.lt.u32.totalorder %s638_s22, %s918_s1 }
   0x7   :  { %p644_p2 = pnand %p642_p1, %p639_p0 }
   0x9   :  { %647 = shalt.err (!%p644_p2)
}
   0xa   :  { %s648_s27 = scalar_lea.vmem %s33_s19, 16  ;;  %s652_s28 = scalar_lea.vmem %s33_s19, 32 }
   0xb   :  { %p649_p3 = scmp.ne.s32.totalorder %s33_s19, %s648_s27  ;;  %p653_p4 = scmp.lt.s32.totalorder %s33_s19, %s33_s19 }
   0xc   :  { %p654_p5 = scmp.lt.s32.totalorder %s652_s28, %s648_s27 }
   0xe   :  { %p655_p6 = por %p654_p5, %p653_p4 }
  0x10   :  { %p656_p7 = pnand %p655_p6, %p649_p3 }
  0x12   :  { %659 = shalt.err (!%p656_p7)
}
  0x13   :  { %35 = dma.hbm_to_vmem [thread:$0]  %s918_s1, 16, %s33_s19, [#allocation8]  }
  0x14   :  { %s779_s6 = smov [#allocation10]   ;;  %s780_s8 = smov [#allocation4]  }
  0x15   :  { %s53_s7 = sshll.u32 %s779_s6, 4  ;;  %s19_s9 = sshll.u32 %s780_s8, 4  ;;  %s54_s7 = int_to_ptr.vmem [resolvable:$true] %s53_s7  ;;  %s20_s9 = int_to_ptr.vmem [resolvable:$true] %s19_s9 }
  0x16   :  { %s660_s12 = scalar_lea.hbm %s920_s3, 1024 }
  0x17   :  { %p661_p8 = scmp.ne.s32.totalorder %s920_s3, %s660_s12  ;;  %p664_p9 = scmp.lt.u32.totalorder %s660_s12, %s920_s3 }
  0x19   :  { %p666_p10 = pnand %p664_p9, %p661_p8 }
  0x1b   :  { %669 = shalt.err (!%p666_p10)
}
  0x1c   :  { %s670_s1 = scalar_lea.vmem %s54_s7, 1024  ;;  %p675_p12 = scmp.lt.s32.totalorder %s54_s7, %s54_s7 }
  0x1d   :  { %p671_p11 = scmp.ne.s32.totalorder %s54_s7, %s670_s1  ;;  %p676_p13 = scmp.lt.s32.totalorder %s670_s1, %s670_s1 }
  0x1f   :  { %p677_p0 = por %p676_p13, %p675_p12 }
  0x21   :  { %p678_p1 = pnand %p677_p0, %p671_p11 }
  0x23   :  { %681 = shalt.err (!%p678_p1)
}
  0x24   :  { %s781_s17 = smov 128   ;;  %s782_s18 = smov 8  }
  0x25   :  { %59 = dma.hbm_to_vmem [thread:$0]  %s920_s3, 1024, %s54_s7, [#allocation11], %s781_s17, %s781_s17, %s782_s18  }
  0x26   :  { %s682_s23 = scalar_lea.hbm %s917_s0, 256 }
  0x27   :  { %p683_p2 = scmp.ne.s32.totalorder %s917_s0, %s682_s23  ;;  %p686_p3 = scmp.lt.u32.totalorder %s682_s23, %s917_s0 }
  0x29   :  { %p688_p4 = pnand %p686_p3, %p683_p2 }
  0x2b   :  { %691 = shalt.err (!%p688_p4)
}
  0x2c   :  { %s692_s28 = scalar_lea.vmem %s20_s9, 256  ;;  %p697_p6 = scmp.lt.s32.totalorder %s20_s9, %s20_s9 }
  0x2d   :  { %p693_p5 = scmp.ne.s32.totalorder %s20_s9, %s692_s28  ;;  %p698_p7 = scmp.lt.s32.totalorder %s692_s28, %s692_s28 }
  0x2f   :  { %p699_p8 = por %p698_p7, %p697_p6 }
  0x31   :  { %p700_p9 = pnand %p699_p8, %p693_p5 }
  0x33   :  { %703 = shalt.err (!%p700_p9)
}
  0x34   :  { %25 = dma.hbm_to_vmem [thread:$0]  %s917_s0, 256, %s20_s9, [#allocation5], %s781_s17, %s781_s17, %s782_s18  }
  0x35   :  { %s783_s30 = smov [#allocation9]   ;;  %s784_s7 = smov [#allocation12]  }
  0x36   :  { %s41_s6 = sshll.u32 %s783_s30, 4  ;;  %s65_s8 = sshll.u32 %s784_s7, 4  ;;  %s42_s6 = int_to_ptr.vmem [resolvable:$true] %s41_s6  ;;  %s66_s8 = int_to_ptr.vmem [resolvable:$true] %s65_s8 }
  0x37   :  { %s704_s12 = scalar_lea.hbm %s919_s2, 1024 }
  0x38   :  { %p705_p10 = scmp.ne.s32.totalorder %s919_s2, %s704_s12  ;;  %p708_p11 = scmp.lt.u32.totalorder %s704_s12, %s919_s2 }
  0x3a   :  { %p710_p12 = pnand %p708_p11, %p705_p10 }
  0x3c   :  { %713 = shalt.err (!%p710_p12)
}
  0x3d   :  { %s714_s0 = scalar_lea.vmem %s42_s6, 1024  ;;  %p719_p0 = scmp.lt.s32.totalorder %s42_s6, %s42_s6 }
  0x3e   :  { %p715_p13 = scmp.ne.s32.totalorder %s42_s6, %s714_s0  ;;  %p720_p1 = scmp.lt.s32.totalorder %s714_s0, %s714_s0 }
  0x40   :  { %p721_p2 = por %p720_p1, %p719_p0 }
  0x42   :  { %p722_p3 = pnand %p721_p2, %p715_p13 }
  0x44   :  { %725 = shalt.err (!%p722_p3)
}
  0x45   :  { %47 = dma.hbm_to_vmem [thread:$0]  %s919_s2, 1024, %s42_s6, [#allocation8], %s781_s17, %s781_s17, %s782_s18  }
  0x46   :  { %s726_s21 = scalar_lea.hbm %s921_s4, 2048 }
  0x47   :  { %p727_p4 = scmp.ne.s32.totalorder %s921_s4, %s726_s21  ;;  %p730_p5 = scmp.lt.u32.totalorder %s726_s21, %s921_s4 }
  0x49   :  { %p732_p6 = pnand %p730_p5, %p727_p4 }
  0x4b   :  { %735 = shalt.err (!%p732_p6)
}
  0x4c   :  { %s736_s26 = scalar_lea.vmem %s66_s8, 2048  ;;  %p741_p8 = scmp.lt.s32.totalorder %s66_s8, %s66_s8 }
  0x4d   :  { %p737_p7 = scmp.ne.s32.totalorder %s66_s8, %s736_s26  ;;  %p742_p9 = scmp.lt.s32.totalorder %s736_s26, %s736_s26 }
  0x4f   :  { %p743_p10 = por %p742_p9, %p741_p8 }
  0x51   :  { %p744_p11 = pnand %p743_p10, %p737_p7 }
  0x53   :  { %747 = shalt.err (!%p744_p11)
}
  0x54   :  { %71 = dma.hbm_to_vmem [thread:$0]  %s921_s4, 2048, %s66_s8, [#allocation11], %s781_s17, %s781_s17, %s782_s18  }
  0x55   :  { %770 = dma.done.wait [#allocation5], 256  }
  0x56   :  { %771 = vsyncadd [#allocation5], 4294967040 }
  0x57   :  { %772 = dma.done.wait [#allocation8], 1040  }
  0x58   :  { %773 = vsyncadd [#allocation8], 4294966256 }
  0x59   :  { %774 = dma.done.wait [#allocation11], 3072  }
  0x5a   :  { %775 = vsyncadd [#allocation11], 4294964224  ;;  %v91_v0 = vld [vmem:[#allocation4] sm:$0xff]  ;;  %vm95_vm0 = vcmask 523264   ;;  %v92_v1 = vld [vmem:[#allocation4 + $0x8] sm:$0xff]  ;;  %s785_s4 = smov [#allocation13]  }
  0x5b   :  { %v93_v2 = vmul.f32 %v91_v0, %v91_v0  ;;  %122 = vst.msk [vmem:[#allocation3] sm:$0xff] %vm95_vm0, %v91_v0  ;;  %v94_v3 = vmul.f32 %v92_v1, %v92_v1  ;;  %123 = vst.msk [vmem:[#allocation3 + $0x8] sm:$0xff] %vm95_vm0, %v92_v1  ;;  %v126_v6 = vld [vmem:[#allocation9] sm:$0xff]  ;;  %v127_v7 = vld [vmem:[#allocation9 + $0x8] sm:$0xff]  ;;  %s424_s28 = sshll.u32 %s785_s4, 4  ;;  %s425_s28 = int_to_ptr.vmem [resolvable:$true] %s424_s28 }
  0x5c   :  { %v554_v8 = vpack.c.bf16 %v127_v7, %v126_v6  ;;  %v128_v9 = vld [vmem:[#allocation9 + $0x10] sm:$0xff]  ;;  %v129_v10 = vld [vmem:[#allocation9 + $0x18] sm:$0xff]  ;;  %v130_v12 = vld [vmem:[#allocation9 + $0x20] sm:$0xff]  ;;  %s748_s3 = scalar_lea.vmem %s425_s28, 256  ;;  %p753_p13 = scmp.lt.s32.totalorder %s425_s28, %s425_s28 }
  0x5d   :  { %v96_v4 = vsel %vm95_vm0, %v93_v2, 0.0  ;;  %v99_v5 = vsel %vm95_vm0, %v94_v3, 0.0  ;;  %v558_v11 = vpack.c.bf16 %v129_v10, %v128_v9  ;;  %v131_v13 = vld [vmem:[#allocation9 + $0x28] sm:$0xff]  ;;  %v132_v15 = vld [vmem:[#allocation9 + $0x30] sm:$0xff]  ;;  %v133_v16 = vld [vmem:[#allocation9 + $0x38] sm:$0xff]  ;;  %p749_p12 = scmp.ne.s32.totalorder %s425_s28, %s748_s3  ;;  %p754_p0 = scmp.lt.s32.totalorder %s748_s3, %s748_s3 }
  0x5e   :  { %97 = vadd.xlane.f32.xlu0 %v96_v4  ;;  %555 = vmatprep.subr.bf16.mxu1 %v554_v8  ;;  %v562_v14 = vpack.c.bf16 %v131_v13, %v130_v12  ;;  %v566_v17 = vpack.c.bf16 %v133_v16, %v132_v15  ;;  %v216_v18 = vld [vmem:[#allocation10] sm:$0xff]  ;;  %v217_v19 = vld [vmem:[#allocation10 + $0x8] sm:$0xff]  ;;  %v438_v28 = vld [vmem:[#allocation7] ss:$0 sm:$0xff] }
  0x5f   :  { %557 = vmatpush3.bf16.msra.mxu1 %v554_v8  ;;  %v570_v20 = vpack.c.bf16 %v217_v19, %v216_v18  ;;  %v218_v35 = vld [vmem:[#allocation10 + $0x10] sm:$0xff]  ;;  %v219_v36 = vld [vmem:[#allocation10 + $0x18] sm:$0xff]  ;;  %v220_v39 = vld [vmem:[#allocation10 + $0x20] sm:$0xff]  ;;  %p755_p1 = por %p754_p0, %p753_p13 }
  0x60   :  { %559 = vmatprep.subr.bf16.mxu1 %v558_v11  ;;  %v574_v37 = vpack.c.bf16 %v219_v36, %v218_v35  ;;  %v221_v40 = vld [vmem:[#allocation10 + $0x28] sm:$0xff]  ;;  %v222_v42 = vld [vmem:[#allocation10 + $0x30] sm:$0xff]  ;;  %v223_v43 = vld [vmem:[#allocation10 + $0x38] sm:$0xff] }
  0x61   :  { %v578_v41 = vpack.c.bf16 %v221_v40, %v220_v39  ;;  %v582_v44 = vpack.c.bf16 %v223_v43, %v222_v42  ;;  %v317_v45 = vld [vmem:[#allocation12] sm:$0xff]  ;;  %v318_v46 = vld [vmem:[#allocation12 + $0x8] sm:$0xff]  ;;  %v319_v48 = vld [vmem:[#allocation12 + $0x10] sm:$0xff]  ;;  %p756_p2 = pnand %p755_p1, %p749_p12 }
  0x62   :  { %100 = vadd.xlane.f32.xlu0 %v99_v5  ;;  %v586_v47 = vpack.c.bf16 %v318_v46, %v317_v45  ;;  %v320_v49 = vld [vmem:[#allocation12 + $0x18] sm:$0xff]  ;;  %v321_v51 = vld [vmem:[#allocation12 + $0x20] sm:$0xff]  ;;  %v322_v52 = vld [vmem:[#allocation12 + $0x28] sm:$0xff] }
  0x63   :  { %561 = vmatpush3.bf16.msra.mxu1 %v558_v11  ;;  %v590_v50 = vpack.c.bf16 %v320_v49, %v319_v48  ;;  %v594_v53 = vpack.c.bf16 %v322_v52, %v321_v51  ;;  %v323_v54 = vld [vmem:[#allocation12 + $0x30] sm:$0xff]  ;;  %v324_v55 = vld [vmem:[#allocation12 + $0x38] sm:$0xff]  ;;  %v325_v57 = vld [vmem:[#allocation12 + $0x40] sm:$0xff] }
  0x64   :  { %563 = vmatprep.subr.bf16.mxu1 %v562_v14  ;;  %587 = vmatprep.subr.bf16.mxu0 %v586_v47  ;;  %v598_v56 = vpack.c.bf16 %v324_v55, %v323_v54  ;;  %v326_v58 = vld [vmem:[#allocation12 + $0x48] sm:$0xff]  ;;  %v327_v60 = vld [vmem:[#allocation12 + $0x50] sm:$0xff]  ;;  %v328_v61 = vld [vmem:[#allocation12 + $0x58] sm:$0xff] }
  0x65   :  { %589 = vmatpush3.bf16.msra.mxu0 %v586_v47  ;;  %v602_v59 = vpack.c.bf16 %v326_v58, %v325_v57  ;;  %v606_v62 = vpack.c.bf16 %v328_v61, %v327_v60  ;;  %v329_v63 = vld [vmem:[#allocation12 + $0x60] sm:$0xff]  ;;  %v331_v2 = vld [vmem:[#allocation12 + $0x70] sm:$0xff]  ;;  %v332_v3 = vld [vmem:[#allocation12 + $0x78] sm:$0xff] }
  0x66   :  { %591 = vmatprep.subr.bf16.mxu0 %v590_v50  ;;  %v614_v4 = vpack.c.bf16 %v332_v3, %v331_v2 }
  0x67   :  { %565 = vmatpush3.bf16.msra.mxu1 %v562_v14 }
  0x68   :  { %567 = vmatprep.subr.bf16.mxu1 %v566_v17 }
  0x69   :  { %593 = vmatpush3.bf16.msra.mxu0 %v590_v50 }
  0x6a   :  { %595 = vmatprep.subr.bf16.mxu0 %v594_v53 }
  0x6b   :  { %569 = vmatpush3.bf16.msra.mxu1 %v566_v17 }
  0x6c   :  { %571 = vmatprep.subr.bf16.mxu1 %v570_v20 }
  0x6d   :  { %597 = vmatpush3.bf16.msra.mxu0 %v594_v53 }
  0x6e   :  { %599 = vmatprep.subr.bf16.mxu0 %v598_v56 }
  0x71   :  { %601 = vmatpush3.bf16.msra.mxu0 %v598_v56 }
  0x72   :  { %603 = vmatprep.subr.bf16.mxu0 %v602_v59 }
  0x75   :  { %605 = vmatpush3.bf16.msra.mxu0 %v602_v59 }
  0x76   :  { %607 = vmatprep.subr.bf16.mxu0 %v606_v62 }
  0x79   :  { %609 = vmatpush3.bf16.msra.mxu0 %v606_v62 }
  0xeb   :  { %v98_v21 = vpop.xlane.xlu0 %97 }
  0xec   :  { %v103_v22 = vmul.f32 0.015625, %v98_v21 }
  0xee   :  { %v105_v23 = vadd.f32 1e-06, %v103_v22 }
  0xef   :  { %v101_v24 = vpop.xlane.xlu0 %100 }
  0xf0   :  { %626 = vrsqrt.f32 %v105_v23  ;;  %v104_v25 = vmul.f32 0.015625, %v101_v24  ;;  %v314_v23 = vld [vmem:[#allocation3 + $0x8] sm:$0xff]  ;;  %v313_v24 = vld [vmem:[#allocation3] sm:$0xff] }
  0xf2   :  { %v106_v26 = vadd.f32 1e-06, %v104_v25 }
  0xf4   :  { %628 = vrsqrt.f32 %v106_v26 }
  0xfa   :  { %v627_v27 = vpop.eup %626 }
  0xfb   :  { %v109_v29 = vmul.f32 %v627_v27, %v91_v0  ;;  %v330_v0 = vld [vmem:[#allocation12 + $0x68] sm:$0xff] }
  0xfd   :  { %v118_v30 = vmul.f32 %v438_v28, %v109_v29 }
  0xfe   :  { %v629_v31 = vpop.eup %628 }
  0xff   :  { %120 = vst.msk [vmem:[#allocation2] sm:$0xff] %vm95_vm0, %v118_v30  ;;  %v110_v32 = vmul.f32 %v629_v31, %v92_v1  ;;  %v610_v1 = vpack.c.bf16 %v330_v0, %v329_v63 }
 0x101   :  { %v119_v33 = vmul.f32 %v438_v28, %v110_v32  ;;  %611 = vmatprep.subr.bf16.mxu0 %v610_v1 }
 0x102   :  { %613 = vmatpush3.bf16.msra.mxu0 %v610_v1 }
 0x103   :  { %121 = vst.msk [vmem:[#allocation2 + $0x8] sm:$0xff] %vm95_vm0, %v119_v33  ;;  %615 = vmatprep.subr.bf16.mxu0 %v614_v4 }
 0x106   :  { %v124_v34 = vld [vmem:[#allocation2] sm:$0xff]  ;;  %617 = vmatpush3.bf16.msra.mxu0 %v614_v4 }
 0x107   :  { %497 = vmatprep.mubr.msk.f32.mxu1 %vm95_vm0, %v124_v34 }
 0x10a   :  { %v125_v38 = vld [vmem:[#allocation2 + $0x8] sm:$0xff] }
 0x10b   :  { %498 = vmatmul.mubr.msk.f32.vlgmr.msra.gmra.mrb[0].mxu1 %vm95_vm0, %v125_v38 }
 0x10c   :  { %573 = vmatpush3.bf16.msra.mxu1 %v570_v20  ;;  %516 = vmatprep.mubr.msk.f32.mxu1 %vm95_vm0, %v124_v34 }
 0x10d   :  { %575 = vmatprep.subr.bf16.mxu1 %v574_v37 }
 0x110   :  { %577 = vmatpush3.bf16.msra.mxu1 %v574_v37 }
 0x111   :  { %579 = vmatprep.subr.bf16.mxu1 %v578_v41 }
 0x114   :  { %581 = vmatpush3.bf16.msra.mxu1 %v578_v41 }
 0x115   :  { %583 = vmatprep.subr.bf16.mxu1 %v582_v44 }
 0x118   :  { %585 = vmatpush3.bf16.msra.mxu1 %v582_v44 }
 0x11b   :  { %517 = vmatmul.mubr.msk.f32.vlgmr.msra.gmra.mrb[2].mxu1 %vm95_vm0, %v125_v38 }
 0x1de   :  { %v499_v5 = vpop.f32.mrb[0].mxu1 }
 0x1df   :  { %v300_v6 = vsub.f32 0.0, %v499_v5  ;;  %v207_v7 = vpop.f32.mrb[1].mxu1 }
 0x1e0   :  { %v299_v8 = vsub.f32 0.0, %v207_v7 }
 0x1e1   :  { %v303_v9 = vmul.f32 1.442695, %v300_v6 }
 0x1e2   :  { %v301_v10 = vmul.f32 1.442695, %v299_v8 }
 0x1e3   :  { %630 = vpow2.f32 %v303_v9 }
 0x1e4   :  { %632 = vpow2.f32 %v301_v10 }
 0x1ed   :  { %v631_v11 = vpop.eup %630 }
 0x1ee   :  { %v633_v12 = vpop.eup %632  ;;  %v306_v13 = vadd.f32 1.0, %v631_v11  ;;  %v518_v14 = vpop.f32.mrb[2].mxu1 }
 0x1ef   :  { %v305_v15 = vadd.f32 1.0, %v633_v12  ;;  %v290_v16 = vpop.f32.mrb[3].mxu1 }
 0x1f0   :  { %634 = vrcp.f32 %v306_v13 }
 0x1f1   :  { %636 = vrcp.f32 %v305_v15 }
 0x1fa   :  { %v635_v17 = vpop.eup %634 }
 0x1fb   :  { %v637_v18 = vpop.eup %636  ;;  %v312_v19 = vmul.f32 %v635_v17, %v499_v5 }
 0x1fc   :  { %v311_v20 = vmul.f32 %v637_v18, %v207_v7 }
 0x1fd   :  { %v316_v21 = vmul.f32 %v518_v14, %v312_v19 }
 0x1fe   :  { %v315_v22 = vmul.f32 %v311_v20, %v290_v16 }
 0x200   :  { %551 = vmatprep.mubr.f32.mxu0 %v315_v22 }
 0x201   :  { %552 = vmatmul.mubr.f32.vlgmr.msra.gmra.mrb[0].mxu0 %v316_v21 }
 0x2d4   :  { %v553_v25 = vpop.f32.mrb[0].mxu0 }
 0x2d5   :  { %v409_v26 = vadd.f32 %v553_v25, %v314_v23  ;;  %v399_v27 = vpop.f32.mrb[1].mxu0 }
 0x2d6   :  { %v408_v28 = vadd.f32 %v399_v27, %v313_v24 }
 0x2d7   :  { %411 = vst.msk [vmem:[#allocation3 + $0x8] sm:$0xff] %vm95_vm0, %v409_v26 }
 0x2d8   :  { %410 = vst.msk [vmem:[#allocation3] sm:$0xff] %vm95_vm0, %v408_v28 }
 0x2de   :  { %v416_v29 = vld [vmem:[#allocation3 + $0x8] sm:$0xff] }
 0x2df   :  { %v415_v30 = vld [vmem:[#allocation3] sm:$0xff]  ;;  %418 = vst.msk [vmem:[#allocation13 + $0x8] sm:$0xff] %vm95_vm0, %v416_v29 }
 0x2e0   :  { %417 = vst.msk [vmem:[#allocation13] sm:$0xff] %vm95_vm0, %v415_v30 }
 0x2e1   :  { %759 = shalt.err (!%p756_p2)
}
 0x2e2   :  { %s760_s6 = scalar_lea.hbm %s922_s5, 256 }
 0x2e3   :  { %p761_p3 = scmp.ne.s32.totalorder %s922_s5, %s760_s6  ;;  %p764_p4 = scmp.lt.u32.totalorder %s760_s6, %s922_s5 }
 0x2e5   :  { %p766_p5 = pnand %p764_p4, %p761_p3 }
 0x2e7   :  { %769 = shalt.err (!%p766_p5)
}
 0x2e8   :  { %430 = dma.vmem_to_hbm [thread:$0]  %s425_s28, 256, %s922_s5, [#allocation6], %s781_s17, %s781_s17, %s782_s18  }
 0x2e9   :  { %776 = dma.done.wait [#allocation6], 256  }
 0x2ea   :  { %777 = vsyncadd [#allocation6], 4294967040 }
 0x2eb   :  { %434 = vsyncpa [#allocation5], 1 }
 0x2ec   :  { %435 = vsyncpa [#allocation8], 1 }
 0x2ed   :  { %436 = vsyncpa [#allocation11], 1 }
 0x2ee   :  { %437 = vsyncpa [#allocation6], 1 }

// kernel: qwen3_decoder_layer.3
= control target key start
LH: loop header
LB: loop body
LE: loop exit
PB: predicated region body
PF: predicated region fallthrough
CT: control target
= control target key end

     0   :  { %17 = vsyncpa [#allocation3], 0  ;;  %s2315_s0 = inlined_call_operand.hbm [shape: f32[16,64], index: 0, kind: input, shape index: {}]   ;;  %s2316_s1 = inlined_call_operand.hbm [shape: f32[1,64], index: 1, kind: input, shape index: {}]   ;;  %s2317_s2 = inlined_call_operand.hbm [shape: f32[64,512], index: 2, kind: input, shape index: {}]   ;;  %s2318_s3 = inlined_call_operand.hbm [shape: f32[64,256], index: 3, kind: input, shape index: {}]   ;;  %s2319_s4 = inlined_call_operand.hbm [shape: f32[64,256], index: 4, kind: input, shape index: {}]   ;;  %s2320_s5 = inlined_call_operand.hbm [shape: f32[1,128], index: 5, kind: input, shape index: {}]   ;;  %s2321_s6 = inlined_call_operand.hbm [shape: f32[1,128], index: 6, kind: input, shape index: {}]   ;;  %s2322_s7 = inlined_call_operand.hbm [shape: s32[16,1], index: 7, kind: input, shape index: {}]   ;;  %s2323_s8 = inlined_call_operand.hbm [shape: f32[1,128], index: 8, kind: input, shape index: {}]   ;;  %s2324_s9 = inlined_call_operand.hbm [shape: f32[4,16,128], index: 9, kind: output, shape index: {0}]   ;;  %s2325_s10 = inlined_call_operand.hbm [shape: f32[2,16,128], index: 10, kind: output, shape index: {1}]   ;;  %s2326_s11 = inlined_call_operand.hbm [shape: f32[2,16,128], index: 11, kind: output, shape index: {2}]  }
   0x1   :  { %18 = vsyncpa [#allocation6], 0 }
   0x2   :  { %19 = vsyncpa [#allocation9], 0 }
   0x3   :  { %20 = vsyncpa [#allocation12], 0 }
   0x4   :  { %21 = vsyncpa [#allocation15], 0 }
   0x5   :  { %22 = vsyncpa [#allocation4], 0 }
   0x6   :  { %23 = vsyncpa [#allocation19], 0  ;;  %s1714_s17 = smov [#allocation5]   ;;  %s1715_s19 = smov [#allocation8]  }
   0x7   :  { %s42_s18 = sshll.u32 %s1714_s17, 4  ;;  %s63_s20 = sshll.u32 %s1715_s19, 4  ;;  %s43_s18 = int_to_ptr.vmem [resolvable:$true] %s42_s18  ;;  %s1801_s20 = int_to_ptr.vmem [resolvable:$true] %s63_s20 }
   0x8   :  { %s1436_s23 = scalar_lea.hbm %s2316_s1, 16 }
   0x9   :  { %p1437_p0 = scmp.ne.s32.totalorder %s2316_s1, %s1436_s23  ;;  %p1440_p1 = scmp.lt.u32.totalorder %s1436_s23, %s2316_s1 }
   0xb   :  { %p1442_p2 = pnand %p1440_p1, %p1437_p0 }
   0xd   :  { %1445 = shalt.err (!%p1442_p2)
}
   0xe   :  { %s1446_s28 = scalar_lea.vmem %s43_s18, 16  ;;  %s1450_s29 = scalar_lea.vmem %s43_s18, 32 }
   0xf   :  { %p1447_p3 = scmp.ne.s32.totalorder %s43_s18, %s1446_s28  ;;  %p1451_p4 = scmp.lt.s32.totalorder %s43_s18, %s43_s18 }
  0x10   :  { %p1452_p5 = scmp.lt.s32.totalorder %s1450_s29, %s1446_s28 }
  0x12   :  { %p1453_p6 = por %p1452_p5, %p1451_p4 }
  0x14   :  { %p1454_p7 = pnand %p1453_p6, %p1447_p3 }
  0x16   :  { %1457 = shalt.err (!%p1454_p7)
}
  0x17   :  { %45 = dma.hbm_to_vmem [thread:$0]  %s2316_s1, 16, %s43_s18, [#allocation6]  }
  0x18   :  { %s1458_s15 = scalar_lea.hbm %s2318_s3, 2048 }
  0x19   :  { %p1459_p8 = scmp.ne.s32.totalorder %s2318_s3, %s1458_s15  ;;  %p1462_p9 = scmp.lt.u32.totalorder %s1458_s15, %s2318_s3 }
  0x1b   :  { %p1464_p10 = pnand %p1462_p9, %p1459_p8 }
  0x1d   :  { %1467 = shalt.err (!%p1464_p10)
}
  0x1e   :  { %s1468_s22 = scalar_lea.vmem %s1801_s20, 2048  ;;  %p1473_p12 = scmp.lt.s32.totalorder %s1801_s20, %s1801_s20 }
  0x1f   :  { %p1469_p11 = scmp.ne.s32.totalorder %s1801_s20, %s1468_s22  ;;  %p1474_p13 = scmp.lt.s32.totalorder %s1468_s22, %s1468_s22 }
  0x21   :  { %p1475_p0 = por %p1474_p13, %p1473_p12 }
  0x23   :  { %p1476_p1 = pnand %p1475_p0, %p1469_p11 }
  0x25   :  { %1479 = shalt.err (!%p1476_p1)
}
  0x26   :  { %s1716_s1 = smov 256   ;;  %s1717_s18 = smov 16  }
  0x27   :  { %69 = dma.hbm_to_vmem [thread:$0]  %s2318_s3, 2048, %s1801_s20, [#allocation9], %s1716_s1, %s1716_s1, %s1717_s18  }
  0x28   :  { %s1718_s25 = smov [#allocation11]   ;;  %s1480_s29 = scalar_lea.hbm %s2320_s5, 16 }
  0x29   :  { %s88_s26 = sshll.u32 %s1718_s25, 4  ;;  %p1481_p2 = scmp.ne.s32.totalorder %s2320_s5, %s1480_s29  ;;  %s89_s26 = int_to_ptr.vmem [resolvable:$true] %s88_s26 }
  0x2a   :  { %p1484_p3 = scmp.lt.u32.totalorder %s1480_s29, %s2320_s5 }
  0x2c   :  { %p1486_p4 = pnand %p1484_p3, %p1481_p2 }
  0x2e   :  { %1489 = shalt.err (!%p1486_p4)
}
  0x2f   :  { %s1490_s15 = scalar_lea.vmem %s89_s26, 16  ;;  %s1494_s3 = scalar_lea.vmem %s89_s26, 32 }
  0x30   :  { %p1491_p5 = scmp.ne.s32.totalorder %s89_s26, %s1490_s15  ;;  %p1495_p6 = scmp.lt.s32.totalorder %s89_s26, %s89_s26 }
  0x31   :  { %p1496_p7 = scmp.lt.s32.totalorder %s1494_s3, %s1490_s15 }
  0x33   :  { %p1497_p8 = por %p1496_p7, %p1495_p6 }
  0x35   :  { %p1498_p9 = pnand %p1497_p8, %p1491_p5 }
  0x37   :  { %1501 = shalt.err (!%p1498_p9)
}
  0x38   :  { %91 = dma.hbm_to_vmem [thread:$0]  %s2320_s5, 16, %s89_s26, [#allocation12]  }
  0x39   :  { %s1719_s17 = smov [#allocation14]   ;;  %s1720_s21 = smov [#allocation2]  }
  0x3a   :  { %s107_s19 = sshll.u32 %s1719_s17, 4  ;;  %s29_s22 = sshll.u32 %s1720_s21, 4  ;;  %s108_s19 = int_to_ptr.vmem [resolvable:$true] %s107_s19  ;;  %s30_s22 = int_to_ptr.vmem [resolvable:$true] %s29_s22 }
  0x3b   :  { %s1502_s25 = scalar_lea.hbm %s2322_s7, 256 }
  0x3c   :  { %p1503_p10 = scmp.ne.s32.totalorder %s2322_s7, %s1502_s25  ;;  %p1506_p11 = scmp.lt.u32.totalorder %s1502_s25, %s2322_s7 }
  0x3e   :  { %p1508_p12 = pnand %p1506_p11, %p1503_p10 }
  0x40   :  { %1511 = shalt.err (!%p1508_p12)
}
  0x41   :  { %s1512_s5 = scalar_lea.vmem %s108_s19, 256  ;;  %p1517_p0 = scmp.lt.s32.totalorder %s108_s19, %s108_s19 }
  0x42   :  { %p1513_p13 = scmp.ne.s32.totalorder %s108_s19, %s1512_s5  ;;  %p1518_p1 = scmp.lt.s32.totalorder %s1512_s5, %s1512_s5 }
  0x44   :  { %p1519_p2 = por %p1518_p1, %p1517_p0 }
  0x46   :  { %p1520_p3 = pnand %p1519_p2, %p1513_p13 }
  0x48   :  { %1523 = shalt.err (!%p1520_p3)
}
  0x49   :  { %s1721_s26 = smov 128   ;;  %s1722_s12 = smov 8  }
  0x4a   :  { %113 = dma.hbm_to_vmem [thread:$0]  %s2322_s7, 256, %s108_s19, [#allocation15], %s1721_s26, %s1721_s26, %s1722_s12  }
  0x4b   :  { %s1524_s20 = scalar_lea.hbm %s2315_s0, 256 }
  0x4c   :  { %p1525_p4 = scmp.ne.s32.totalorder %s2315_s0, %s1524_s20  ;;  %p1528_p5 = scmp.lt.u32.totalorder %s1524_s20, %s2315_s0 }
  0x4e   :  { %p1530_p6 = pnand %p1528_p5, %p1525_p4 }
  0x50   :  { %1533 = shalt.err (!%p1530_p6)
}
  0x51   :  { %s1534_s24 = scalar_lea.vmem %s30_s22, 256  ;;  %p1539_p8 = scmp.lt.s32.totalorder %s30_s22, %s30_s22 }
  0x52   :  { %p1535_p7 = scmp.ne.s32.totalorder %s30_s22, %s1534_s24  ;;  %p1540_p9 = scmp.lt.s32.totalorder %s1534_s24, %s1534_s24 }
  0x54   :  { %p1541_p10 = por %p1540_p9, %p1539_p8 }
  0x56   :  { %p1542_p11 = pnand %p1541_p10, %p1535_p7 }
  0x58   :  { %1545 = shalt.err (!%p1542_p11)
}
  0x59   :  { %35 = dma.hbm_to_vmem [thread:$0]  %s2315_s0, 256, %s30_s22, [#allocation3], %s1721_s26, %s1721_s26, %s1722_s12  }
  0x5a   :  { %s1723_s25 = smov [#allocation7]   ;;  %s1546_s30 = scalar_lea.hbm %s2317_s2, 4096 }
  0x5b   :  { %s51_s27 = sshll.u32 %s1723_s25, 4  ;;  %p1547_p12 = scmp.ne.s32.totalorder %s2317_s2, %s1546_s30  ;;  %s52_s27 = int_to_ptr.vmem [resolvable:$true] %s51_s27 }
  0x5c   :  { %p1550_p13 = scmp.lt.u32.totalorder %s1546_s30, %s2317_s2 }
  0x5e   :  { %p1552_p0 = pnand %p1550_p13, %p1547_p12 }
  0x60   :  { %1555 = shalt.err (!%p1552_p0)
}
  0x61   :  { %s1556_s3 = scalar_lea.vmem %s52_s27, 4096  ;;  %p1561_p2 = scmp.lt.s32.totalorder %s52_s27, %s52_s27 }
  0x62   :  { %p1557_p1 = scmp.ne.s32.totalorder %s52_s27, %s1556_s3  ;;  %p1562_p3 = scmp.lt.s32.totalorder %s1556_s3, %s1556_s3 }
  0x64   :  { %p1563_p4 = por %p1562_p3, %p1561_p2 }
  0x66   :  { %p1564_p5 = pnand %p1563_p4, %p1557_p1 }
  0x68   :  { %1567 = shalt.err (!%p1564_p5)
}
  0x69   :  { %s1724_s0 = smov 512   ;;  %s1725_s22 = smov 32  }
  0x6a   :  { %57 = dma.hbm_to_vmem [thread:$0]  %s2317_s2, 4096, %s52_s27, [#allocation6], %s1724_s0, %s1724_s0, %s1725_s22  }
  0x6b   :  { %s1726_s17 = smov [#allocation10]   ;;  %s1727_s23 = smov [#allocation13]  }
  0x6c   :  { %s75_s21 = sshll.u32 %s1726_s17, 4  ;;  %s98_s24 = sshll.u32 %s1727_s23, 4  ;;  %s76_s21 = int_to_ptr.vmem [resolvable:$true] %s75_s21  ;;  %s99_s24 = int_to_ptr.vmem [resolvable:$true] %s98_s24 }
  0x6d   :  { %s1568_s25 = scalar_lea.hbm %s2319_s4, 2048 }
  0x6e   :  { %p1569_p6 = scmp.ne.s32.totalorder %s2319_s4, %s1568_s25  ;;  %p1572_p7 = scmp.lt.u32.totalorder %s1568_s25, %s2319_s4 }
  0x70   :  { %p1574_p8 = pnand %p1572_p7, %p1569_p6 }
  0x72   :  { %1577 = shalt.err (!%p1574_p8)
}
  0x73   :  { %s1578_s2 = scalar_lea.vmem %s76_s21, 2048  ;;  %p1583_p10 = scmp.lt.s32.totalorder %s76_s21, %s76_s21 }
  0x74   :  { %p1579_p9 = scmp.ne.s32.totalorder %s76_s21, %s1578_s2  ;;  %p1584_p11 = scmp.lt.s32.totalorder %s1578_s2, %s1578_s2 }
  0x76   :  { %p1585_p12 = por %p1584_p11, %p1583_p10 }
  0x78   :  { %p1586_p13 = pnand %p1585_p12, %p1579_p9 }
  0x7a   :  { %1589 = shalt.err (!%p1586_p13)
}
  0x7b   :  { %81 = dma.hbm_to_vmem [thread:$0]  %s2319_s4, 2048, %s76_s21, [#allocation9], %s1716_s1, %s1716_s1, %s1717_s18  }
  0x7c   :  { %s1590_s3 = scalar_lea.hbm %s2321_s6, 16 }
  0x7d   :  { %p1591_p0 = scmp.ne.s32.totalorder %s2321_s6, %s1590_s3  ;;  %p1594_p1 = scmp.lt.u32.totalorder %s1590_s3, %s2321_s6 }
  0x7f   :  { %p1596_p2 = pnand %p1594_p1, %p1591_p0 }
  0x81   :  { %1599 = shalt.err (!%p1596_p2)
}
  0x82   :  { %s1600_s17 = scalar_lea.vmem %s99_s24, 16  ;;  %s1604_s23 = scalar_lea.vmem %s99_s24, 32 }
  0x83   :  { %p1601_p3 = scmp.ne.s32.totalorder %s99_s24, %s1600_s17  ;;  %p1605_p4 = scmp.lt.s32.totalorder %s99_s24, %s99_s24 }
  0x84   :  { %p1606_p5 = scmp.lt.s32.totalorder %s1604_s23, %s1600_s17 }
  0x86   :  { %p1607_p6 = por %p1606_p5, %p1605_p4 }
  0x88   :  { %p1608_p7 = pnand %p1607_p6, %p1601_p3 }
  0x8a   :  { %1611 = shalt.err (!%p1608_p7)
}
  0x8b   :  { %101 = dma.hbm_to_vmem [thread:$0]  %s2321_s6, 16, %s99_s24, [#allocation12]  }
  0x8c   :  { %s1728_s18 = smov [#allocation16]   ;;  %s1612_s25 = scalar_lea.hbm %s2323_s8, 16 }
  0x8d   :  { %s120_s21 = sshll.u32 %s1728_s18, 4  ;;  %p1613_p8 = scmp.ne.s32.totalorder %s2323_s8, %s1612_s25  ;;  %s121_s21 = int_to_ptr.vmem [resolvable:$true] %s120_s21 }
  0x8e   :  { %p1616_p9 = scmp.lt.u32.totalorder %s1612_s25, %s2323_s8 }
  0x90   :  { %p1618_p10 = pnand %p1616_p9, %p1613_p8 }
  0x92   :  { %1621 = shalt.err (!%p1618_p10)
}
  0x93   :  { %s1622_s2 = scalar_lea.vmem %s121_s21, 16  ;;  %s1626_s6 = scalar_lea.vmem %s121_s21, 32 }
  0x94   :  { %p1623_p11 = scmp.ne.s32.totalorder %s121_s21, %s1622_s2  ;;  %p1627_p12 = scmp.lt.s32.totalorder %s121_s21, %s121_s21 }
  0x95   :  { %p1628_p13 = scmp.lt.s32.totalorder %s1626_s6, %s1622_s2 }
  0x97   :  { %p1629_p0 = por %p1628_p13, %p1627_p12 }
  0x99   :  { %p1630_p1 = pnand %p1629_p0, %p1623_p11 }
  0x9b   :  { %1633 = shalt.err (!%p1630_p1)
}
  0x9c   :  { %123 = dma.hbm_to_vmem [thread:$0]  %s2323_s8, 16, %s121_s21, [#allocation15]  }
  0x9d   :  { %1700 = dma.done.wait [#allocation3], 256  }
  0x9e   :  { %1701 = vsyncadd [#allocation3], 4294967040 }
  0x9f   :  { %1702 = dma.done.wait [#allocation6], 4112  }
  0xa0   :  { %1703 = vsyncadd [#allocation6], 4294963184 }
  0xa1   :  { %1704 = dma.done.wait [#allocation9], 4096  }
  0xa2   :  { %1705 = vsyncadd [#allocation9], 4294963200 }
  0xa3   :  { %1706 = dma.done.wait [#allocation12], 32  }
  0xa4   :  { %1707 = vsyncadd [#allocation12], 4294967264 }
  0xa5   :  { %1708 = dma.done.wait [#allocation15], 272  }
  0xa6   :  { %1709 = vsyncadd [#allocation15], 4294967024  ;;  %v1928_v0 = vld [vmem:[#allocation2] sm:$0xff]  ;;  %vm155_vm0 = vcmask 523264   ;;  %v1930_v1 = vld [vmem:[#allocation2 + $0x8] sm:$0xff]  ;;  %v1729_v42 = vmov 0.0  }
  0xa7   :  { %v153_v2 = vmul.f32 %v1928_v0, %v1928_v0  ;;  %v154_v3 = vmul.f32 %v1930_v1, %v1930_v1  ;;  %v618_v6 = vld [vmem:[#allocation7 + $0x8] sm:$0xff]  ;;  %v620_v8 = vld [vmem:[#allocation7 + $0x18] sm:$0xff]  ;;  %v617_v11 = vld [vmem:[#allocation7] sm:$0xff]  ;;  %719 = vmatprep.mubr.f32.mxu0 %v1729_v42  ;;  %796 = vmatprep.mubr.f32.mxu1 %v1729_v42  ;;  %v1730_v63 = vmov 0   ;;  %s1737_s8 = smov 64   ;;  %s1738_s13 = smov [#allocation17]  }
  0xa8   :  { %v622_v7 = vld [vmem:[#allocation7 + $0x28] sm:$0xff]  ;;  %v624_v10 = vld [vmem:[#allocation7 + $0x38] sm:$0xff]  ;;  %v621_v12 = vld [vmem:[#allocation7 + $0x20] sm:$0xff]  ;;  %1398 = vset.pattern.permute.xlu1 %v1730_v63  ;;  %1399 = vset.pattern.permute.xlu0 %v1730_v63  ;;  %s1220_s14 = sshll.u32 %s1738_s13, 4  ;;  %s1221_s14 = int_to_ptr.vmem [resolvable:$true] %s1220_s14 }
  0xa9   :  { %v156_v4 = vsel %vm155_vm0, %v153_v2, 0.0  ;;  %v159_v5 = vsel %vm155_vm0, %v154_v3, 0.0  ;;  %v1299_v9 = vpack.c.bf16 %v622_v7, %v618_v6  ;;  %v1315_v13 = vpack.c.bf16 %v624_v10, %v620_v8  ;;  %v619_v15 = vld [vmem:[#allocation7 + $0x10] sm:$0xff]  ;;  %v626_v18 = vld [vmem:[#allocation7 + $0x48] sm:$0xff]  ;;  %v628_v20 = vld [vmem:[#allocation7 + $0x58] sm:$0xff]  ;;  %s1634_s15 = scalar_lea.vmem %s1221_s14, 1024  ;;  %p1639_p3 = scmp.lt.s32.totalorder %s1221_s14, %s1221_s14 }
  0xaa   :  { %157 = vadd.xlane.f32.xlu0 %v156_v4  ;;  %v1301_v14 = vpack.c.bf16 %v621_v12, %v617_v11  ;;  %v623_v16 = vld [vmem:[#allocation7 + $0x30] sm:$0xff]  ;;  %v630_v19 = vld [vmem:[#allocation7 + $0x68] sm:$0xff]  ;;  %v632_v22 = vld [vmem:[#allocation7 + $0x78] sm:$0xff]  ;;  %p1635_p2 = scmp.ne.s32.totalorder %s1221_s14, %s1634_s15  ;;  %p1640_p4 = scmp.lt.s32.totalorder %s1634_s15, %s1634_s15 }
  0xab   :  { %1300 = vmatprep.subr.bf16.mxu0 %v1299_v9  ;;  %v1317_v17 = vpack.c.bf16 %v623_v16, %v619_v15  ;;  %1316 = vmatprep.subr.bf16.mxu1 %v1315_v13  ;;  %v1303_v21 = vpack.c.bf16 %v630_v19, %v626_v18  ;;  %v625_v23 = vld [vmem:[#allocation7 + $0x40] sm:$0xff]  ;;  %v1319_v25 = vpack.c.bf16 %v632_v22, %v628_v20  ;;  %v627_v27 = vld [vmem:[#allocation7 + $0x50] sm:$0xff]  ;;  %v634_v30 = vld [vmem:[#allocation7 + $0x88] sm:$0xff] }
  0xac   :  { %1302 = vmatpush1.bf16.msra.mxu0 %v1301_v14  ;;  %v629_v24 = vld [vmem:[#allocation7 + $0x60] sm:$0xff]  ;;  %v631_v28 = vld [vmem:[#allocation7 + $0x70] sm:$0xff]  ;;  %v638_v31 = vld [vmem:[#allocation7 + $0xa8] sm:$0xff]  ;;  %p1641_p5 = por %p1640_p4, %p1639_p3 }
  0xad   :  { %1318 = vmatpush1.bf16.msra.mxu1 %v1317_v17  ;;  %v1305_v26 = vpack.c.bf16 %v629_v24, %v625_v23  ;;  %1304 = vmatprep.subr.bf16.mxu0 %v1303_v21  ;;  %v1321_v29 = vpack.c.bf16 %v631_v28, %v627_v27  ;;  %v636_v32 = vld [vmem:[#allocation7 + $0x98] sm:$0xff]  ;;  %v1307_v33 = vpack.c.bf16 %v638_v31, %v634_v30  ;;  %v633_v35 = vld [vmem:[#allocation7 + $0x80] sm:$0xff]  ;;  %v635_v39 = vld [vmem:[#allocation7 + $0x90] sm:$0xff] }
  0xae   :  { %160 = vadd.xlane.f32.xlu0 %v159_v5  ;;  %1320 = vmatprep.subr.bf16.mxu1 %v1319_v25  ;;  %v640_v34 = vld [vmem:[#allocation7 + $0xb8] sm:$0xff]  ;;  %v637_v36 = vld [vmem:[#allocation7 + $0xa0] sm:$0xff]  ;;  %v639_v40 = vld [vmem:[#allocation7 + $0xb0] sm:$0xff]  ;;  %p1642_p6 = pnand %p1641_p5, %p1635_p2 }
  0xaf   :  { %v1323_v37 = vpack.c.bf16 %v640_v34, %v636_v32  ;;  %v1309_v38 = vpack.c.bf16 %v637_v36, %v633_v35  ;;  %v642_v41 = vld [vmem:[#allocation7 + $0xc8] sm:$0xff]  ;;  %v1325_v43 = vpack.c.bf16 %v639_v40, %v635_v39  ;;  %v644_v45 = vld [vmem:[#allocation7 + $0xd8] sm:$0xff]  ;;  %v641_v49 = vld [vmem:[#allocation7 + $0xc0] sm:$0xff] }
  0xb0   :  { %1306 = vmatpush1.bf16.msra.mxu0 %v1305_v26  ;;  %v646_v44 = vld [vmem:[#allocation7 + $0xe8] sm:$0xff]  ;;  %v648_v46 = vld [vmem:[#allocation7 + $0xf8] sm:$0xff]  ;;  %v645_v50 = vld [vmem:[#allocation7 + $0xe0] sm:$0xff] }
  0xb1   :  { %1322 = vmatpush1.bf16.msra.mxu1 %v1321_v29  ;;  %1308 = vmatprep.subr.bf16.mxu0 %v1307_v33  ;;  %v1311_v47 = vpack.c.bf16 %v646_v44, %v642_v41  ;;  %v1327_v48 = vpack.c.bf16 %v648_v46, %v644_v45  ;;  %v643_v51 = vld [vmem:[#allocation7 + $0xd0] sm:$0xff]  ;;  %v1313_v52 = vpack.c.bf16 %v645_v50, %v641_v49  ;;  %v810_v54 = vld [vmem:[#allocation8 + $0x8] sm:$0xff]  ;;  %v812_v55 = vld [vmem:[#allocation8 + $0x18] sm:$0xff] }
  0xb2   :  { %1324 = vmatprep.subr.bf16.mxu1 %v1323_v37  ;;  %v647_v53 = vld [vmem:[#allocation7 + $0xf0] sm:$0xff]  ;;  %v1331_v57 = vpack.c.bf16 %v812_v55, %v810_v54  ;;  %v903_v58 = vld [vmem:[#allocation10 + $0x8] sm:$0xff]  ;;  %v905_v59 = vld [vmem:[#allocation10 + $0x18] sm:$0xff] }
  0xb3   :  { %v1329_v56 = vpack.c.bf16 %v647_v53, %v643_v51  ;;  %v1347_v60 = vpack.c.bf16 %v905_v59, %v903_v58  ;;  %v180_v61 = vld [vmem:[#allocation14] sm:$0xff]  ;;  %v181_v62 = vld [vmem:[#allocation14 + $0x8] sm:$0xff]  ;;  %v1267_v10 = vld [vmem:[#allocation5] ss:$0 sm:$0xff] }
  0xb4   :  { %1310 = vmatpush1.bf16.msra.mxu0 %v1309_v38  ;;  %v182_v2 = vcvt.s32.f32 %v180_v61  ;;  %v183_v3 = vcvt.s32.f32 %v181_v62  ;;  %v809_v11 = vld [vmem:[#allocation8] sm:$0xff]  ;;  %v811_v12 = vld [vmem:[#allocation8 + $0x10] sm:$0xff]  ;;  %v814_v15 = vld [vmem:[#allocation8 + $0x28] sm:$0xff] }
  0xb5   :  { %1326 = vmatpush1.bf16.msra.mxu1 %v1325_v43  ;;  %1312 = vmatprep.subr.bf16.mxu0 %v1311_v47  ;;  %v902_v13 = vld [vmem:[#allocation10] sm:$0xff]  ;;  %v904_v14 = vld [vmem:[#allocation10 + $0x10] sm:$0xff]  ;;  %v816_v17 = vld [vmem:[#allocation8 + $0x38] sm:$0xff]  ;;  %v1333_v21 = vpack.c.bf16 %v811_v12, %v809_v11 }
  0xb6   :  { %1328 = vmatprep.subr.bf16.mxu1 %v1327_v48  ;;  %187 = vperm.xlu1 %1398, %v182_v2   ;;  %v907_v18 = vld [vmem:[#allocation10 + $0x28] sm:$0xff]  ;;  %v909_v19 = vld [vmem:[#allocation10 + $0x38] sm:$0xff]  ;;  %v1349_v22 = vpack.c.bf16 %v904_v14, %v902_v13  ;;  %v813_v23 = vld [vmem:[#allocation8 + $0x20] sm:$0xff]  ;;  %v1335_v26 = vpack.c.bf16 %v816_v17, %v814_v15 }
  0xb7   :  { %v815_v24 = vld [vmem:[#allocation8 + $0x30] sm:$0xff]  ;;  %v1351_v27 = vpack.c.bf16 %v909_v19, %v907_v18  ;;  %v906_v28 = vld [vmem:[#allocation10 + $0x20] sm:$0xff]  ;;  %v818_v30 = vld [vmem:[#allocation8 + $0x48] sm:$0xff] }
  0xb8   :  { %1314 = vmatpush1.bf16.msra.mxu0 %v1313_v52  ;;  %v908_v29 = vld [vmem:[#allocation10 + $0x30] sm:$0xff]  ;;  %v820_v32 = vld [vmem:[#allocation8 + $0x58] sm:$0xff]  ;;  %v911_v33 = vld [vmem:[#allocation10 + $0x48] sm:$0xff]  ;;  %v1337_v35 = vpack.c.bf16 %v815_v24, %v813_v23 }
  0xb9   :  { %1330 = vmatpush1.bf16.msra.mxu1 %v1329_v56  ;;  %1332 = vmatprep.subr.bf16.mxu0 %v1331_v57  ;;  %v913_v34 = vld [vmem:[#allocation10 + $0x58] sm:$0xff]  ;;  %v1353_v36 = vpack.c.bf16 %v908_v29, %v906_v28  ;;  %v817_v37 = vld [vmem:[#allocation8 + $0x40] sm:$0xff]  ;;  %v819_v38 = vld [vmem:[#allocation8 + $0x50] sm:$0xff]  ;;  %v1339_v40 = vpack.c.bf16 %v820_v32, %v818_v30 }
  0xba   :  { %1348 = vmatprep.subr.bf16.mxu1 %v1347_v60  ;;  %192 = vperm.xlu1 %1398, %v183_v3   ;;  %v1355_v41 = vpack.c.bf16 %v913_v34, %v911_v33  ;;  %v910_v43 = vld [vmem:[#allocation10 + $0x40] sm:$0xff]  ;;  %v912_v44 = vld [vmem:[#allocation10 + $0x50] sm:$0xff]  ;;  %v822_v45 = vld [vmem:[#allocation8 + $0x68] sm:$0xff]  ;;  %v1341_v48 = vpack.c.bf16 %v819_v38, %v817_v37  ;;  %v1731_v38 = vmov 920167782  }
  0xbb   :  { %v824_v46 = vld [vmem:[#allocation8 + $0x78] sm:$0xff]  ;;  %v1357_v49 = vpack.c.bf16 %v912_v44, %v910_v43  ;;  %v821_v50 = vld [vmem:[#allocation8 + $0x60] sm:$0xff]  ;;  %v823_v53 = vld [vmem:[#allocation8 + $0x70] sm:$0xff] }
  0xbc   :  { %v917_v47 = vld [vmem:[#allocation10 + $0x78] sm:$0xff]  ;;  %v1343_v51 = vpack.c.bf16 %v824_v46, %v822_v45  ;;  %v914_v54 = vld [vmem:[#allocation10 + $0x60] sm:$0xff]  ;;  %v916_v55 = vld [vmem:[#allocation10 + $0x70] sm:$0xff]  ;;  %v1345_v56 = vpack.c.bf16 %v823_v53, %v821_v50  ;;  %v1733_v45 = vmov 2475754826  }
  0xbd   :  { %v1361_v57 = vpack.c.bf16 %v916_v55, %v914_v54  ;;  %v1268_v23 = vld [vmem:[#allocation16] ss:$0 sm:$0xff]  ;;  %v1736_v55 = vmov 683565275  }
 0x135   :  { %v188_v24 = vpop.permute.xlu1 %187 }
 0x137   :  { %v158_v4 = vpop.xlane.xlu0 %157 }
 0x138   :  { %v163_v5 = vmul.f32 0.015625, %v158_v4 }
 0x139   :  { %v193_v29 = vpop.permute.xlu1 %192 }
 0x13a   :  { %v165_v6 = vadd.f32 1e-06, %v163_v5 }
 0x13b   :  { %v161_v7 = vpop.xlane.xlu0 %160 }
 0x13c   :  { %1400 = vrsqrt.f32 %v165_v6  ;;  %v164_v8 = vmul.f32 0.015625, %v161_v7 }
 0x13e   :  { %v166_v9 = vadd.f32 1e-06, %v164_v8 }
 0x140   :  { %1402 = vrsqrt.f32 %v166_v9 }
 0x146   :  { %v1401_v16 = vpop.eup %1400 }
 0x147   :  { %v169_v20 = vmul.f32 %v1401_v16, %v1928_v0 }
 0x149   :  { %v178_v25 = vmul.f32 %v1267_v10, %v169_v20 }
 0x14a   :  { %v1403_v31 = vpop.eup %1402 }
 0x14b   :  { %1285 = vmatmul.mubr.msk.f32.vlgmr.msra.gmra.mrb[0].mxu0 %vm155_vm0, %v178_v25  ;;  %1287 = vmatmul.mubr.msk.f32.vlgmr.msra.gmra.mrb[0].mxu1 %vm155_vm0, %v178_v25  ;;  %v170_v0 = vmul.f32 %v1403_v31, %v1930_v1  ;;  %v915_v1 = vld [vmem:[#allocation10 + $0x68] sm:$0xff]  ;;  %v2007_v31 = vmul.f32 %v1268_v23, %v193_v29 }
 0x14c   :  { %1334 = vmatpush1.bf16.msra.mxu0 %v1333_v21  ;;  %1350 = vmatpush1.bf16.msra.mxu1 %v1349_v22  ;;  %v1359_v52 = vpack.c.bf16 %v917_v47, %v915_v1  ;;  %v1734_v1 = vmov 2102212464  }
 0x14d   :  { %1336 = vmatprep.subr.bf16.mxu0 %v1335_v26  ;;  %1352 = vmatprep.subr.bf16.mxu1 %v1351_v27  ;;  %v179_v39 = vmul.f32 %v1267_v10, %v170_v0  ;;  %v309_v32 = vand.u32 2139095040, %v2007_v31 }
 0x14e   :  { %725 = vmatprep.mubr.f32.mxu0 %v1729_v42  ;;  %802 = vmatprep.mubr.f32.mxu1 %v1729_v42 }
 0x14f   :  { %1286 = vmatmul.mubr.msk.f32.gmra.mrb[2].mxu0 %vm155_vm0, %v179_v39  ;;  %1288 = vmatmul.mubr.msk.f32.gmra.mrb[2].mxu1 %vm155_vm0, %v179_v39  ;;  %v310_v34 = vshrl.u32 %v309_v32, 23 }
 0x150   :  { %1338 = vmatpush1.bf16.msra.mxu0 %v1337_v35  ;;  %1354 = vmatpush1.bf16.msra.mxu1 %v1353_v36 }
 0x151   :  { %1340 = vmatprep.subr.bf16.mxu0 %v1339_v40  ;;  %1356 = vmatprep.subr.bf16.mxu1 %v1355_v41  ;;  %v1273_v35 = vadd.s32 4294967169, %v310_v34  ;;  %v1732_v40 = vmov 1326507024  }
 0x152   :  { %889 = vmatprep.mubr.f32.mxu0 %v1729_v42  ;;  %982 = vmatprep.mubr.f32.mxu1 %v1729_v42 }
 0x153   :  { %v316_v37 = vadd.s32 1, %v1273_v35 }
 0x154   :  { %1342 = vmatpush1.bf16.msra.mxu0 %v1341_v48  ;;  %1358 = vmatpush1.bf16.msra.mxu1 %v1357_v49  ;;  %v1735_v49 = vmov 2131351028  }
 0x155   :  { %1344 = vmatprep.subr.bf16.mxu0 %v1343_v51  ;;  %1360 = vmatprep.subr.bf16.mxu1 %v1359_v52  ;;  %vm317_vm2 = vcmp.gt.s32.totalorder %v316_v37, 0 }
 0x158   :  { %1346 = vmatpush1.bf16.msra.mxu0 %v1345_v56  ;;  %1362 = vmatpush1.bf16.msra.mxu1 %v1361_v57 }
 0x15b   :  { %1289 = vmatmul.mubr.msk.f32.vlgmr.msra.gmra.mrb[4].mxu0 %vm155_vm0, %v178_v25  ;;  %1291 = vmatmul.mubr.msk.f32.vlgmr.msra.gmra.mrb[4].mxu1 %vm155_vm0, %v178_v25  ;;  %v2004_v25 = vmul.f32 %v1268_v23, %v188_v24 }
 0x15c   :  { %895 = vmatprep.mubr.f32.mxu0 %v1729_v42  ;;  %988 = vmatprep.mubr.f32.mxu1 %v1729_v42 }
 0x15d   :  { %v206_v26 = vand.u32 2139095040, %v2004_v25  ;;  %v203_v44 = vand.u32 2147483647, %v2004_v25  ;;  %vm205_vm15 = vcmp.lt.s32.totalorder %v2004_v25, 0 }
 0x15f   :  { %1290 = vmatmul.mubr.msk.f32.gmra.mrb[6].mxu0 %vm155_vm0, %v179_v39  ;;  %1292 = vmatmul.mubr.msk.f32.gmra.mrb[6].mxu1 %vm155_vm0, %v179_v39  ;;  %v207_v27 = vshrl.u32 %v206_v26, 23  ;;  %v210_v54 = vand.u32 8388607, %v203_v44  ;;  %vm204_vm0 = vcmp.le.f32.partialorder %v203_v44, 0.7853982 }
 0x161   :  { %v1269_v28 = vadd.s32 4294967169, %v207_v27 }
 0x163   :  { %v213_v30 = vadd.s32 1, %v1269_v28 }
 0x165   :  { %vm214_vm1 = vcmp.gt.s32.totalorder %v213_v30, 0 }
 0x166   :  { %v215_v33 = vsel %vm214_vm1, %v213_v30, 0  ;;  %vm308_vm1 = vcmp.lt.s32.totalorder %v2007_v31, 0 }
 0x167   :  { %v217_v0 = vand.u32 31, %v215_v33  ;;  %v2015_v43 = vshrl.u32 %v215_v33, 5 }
 0x169   :  { %v2010_v36 = vsub.s32 32, %v217_v0  ;;  %v232_v39 = vshll.u32 %v1731_v38, %v217_v0  ;;  %v223_v46 = vshll.u32 %v1733_v45, %v217_v0  ;;  %v229_v47 = vshll.u32 %v1734_v1, %v217_v0 }
 0x16a   :  { %v226_v51 = vshll.u32 %v1735_v49, %v217_v0  ;;  %vm238_vm3 = vcmp.lt.s32.totalorder %v2015_v43, 4  ;;  %v220_v56 = vshll.u32 %v1736_v55, %v217_v0  ;;  %vm235_vm4 = vcmp.lt.s32.totalorder %v2015_v43, 1 }
 0x16b   :  { %v233_v41 = vshrl.u32 %v1732_v40, %v2010_v36  ;;  %v230_v48 = vshrl.u32 %v1731_v38, %v2010_v36  ;;  %v224_v50 = vshrl.u32 %v1735_v49, %v2010_v36  ;;  %v227_v52 = vshrl.u32 %v1734_v1, %v2010_v36 }
 0x16c   :  { %v221_v57 = vshrl.u32 %v1733_v45, %v2010_v36  ;;  %vm237_vm5 = vcmp.lt.s32.totalorder %v2015_v43, 3  ;;  %vm236_vm6 = vcmp.lt.s32.totalorder %v2015_v43, 2 }
 0x16d   :  { %v234_v53 = vor.u32 %v233_v41, %v232_v39 }
 0x21e   :  { %v1956_v58 = vpop.f32.mrb[0].mxu0  ;;  %v1958_v59 = vpop.f32.mrb[0].mxu1 }
 0x21f   :  { %v1960_v60 = vpop.f32.mrb[1].mxu0  ;;  %v1962_v61 = vpop.f32.mrb[1].mxu1  ;;  %v1068_v62 = vmul.f32 %v1958_v59, %v1958_v59  ;;  %v996_v63 = vmul.f32 %v1956_v58, %v1956_v58 }
 0x220   :  { %v1032_v3 = vmul.f32 %v1960_v60, %v1960_v60  ;;  %v1104_v18 = vmul.f32 %v1962_v61, %v1962_v61 }
 0x221   :  { %1070 = vadd.xlane.f32.xlu1 %v1068_v62  ;;  %998 = vadd.xlane.f32.xlu0 %v996_v63  ;;  %v318_v62 = vsel %vm317_vm2, %v316_v37, 0 }
 0x222   :  { %v1968_v42 = vpop.f32.mrb[2].mxu0  ;;  %v1970_v2 = vpop.f32.mrb[2].mxu1  ;;  %v2062_v41 = vshrl.u32 %v318_v62, 5 }
 0x223   :  { %v1974_v4 = vpop.f32.mrb[3].mxu0  ;;  %v1976_v5 = vpop.f32.mrb[3].mxu1  ;;  %v997_v6 = vmul.f32 %v1968_v42, %v1968_v42  ;;  %v1069_v7 = vmul.f32 %v1970_v2, %v1970_v2 }
 0x224   :  { %v1033_v13 = vmul.f32 %v1974_v4, %v1974_v4  ;;  %v1105_v22 = vmul.f32 %v1976_v5, %v1976_v5  ;;  %vm341_vm7 = vcmp.lt.s32.totalorder %v2062_v41, 4  ;;  %vm338_vm8 = vcmp.lt.s32.totalorder %v2062_v41, 1 }
 0x225   :  { %1034 = vadd.xlane.f32.xlu1 %v1032_v3  ;;  %vm340_vm9 = vcmp.lt.s32.totalorder %v2062_v41, 3  ;;  %vm339_vm10 = vcmp.lt.s32.totalorder %v2062_v41, 2 }
 0x229   :  { %1000 = vadd.xlane.f32.xlu1 %v997_v6  ;;  %v231_v6 = vor.u32 %v230_v48, %v229_v47 }
 0x22b   :  { %v244_v23 = vsel %vm238_vm3, %v231_v6, 920167782 }
 0x22d   :  { %1072 = vadd.xlane.f32.xlu1 %v1069_v7  ;;  %v306_v7 = vand.u32 2147483647, %v2007_v31 }
 0x22e   :  { %v984_v8 = vpop.f32.mrb[4].mxu1  ;;  %v1982_v9 = vpop.f32.mrb[4].mxu0 }
 0x22f   :  { %1174 = vst [vmem:[#allocation20] sm:$0xff] %v984_v8  ;;  %v1984_v10 = vpop.f32.mrb[5].mxu0  ;;  %v986_v11 = vpop.f32.mrb[5].mxu1  ;;  %v1140_v12 = vmul.f32 %v1982_v9, %v1982_v9  ;;  %v313_v24 = vand.u32 8388607, %v306_v7 }
 0x230   :  { %1213 = vst [vmem:[#allocation20 + $0x10] sm:$0xff] %v986_v11  ;;  %v1177_v19 = vmul.f32 %v1984_v10, %v1984_v10  ;;  %vm307_vm2 = vcmp.le.f32.partialorder %v306_v7, 0.7853982 }
 0x231   :  { %1142 = vadd.xlane.f32.xlu0 %v1140_v12  ;;  %1036 = vadd.xlane.f32.xlu1 %v1033_v13  ;;  %v2032_v12 = vor.u32 %v224_v50, %v223_v46  ;;  %v228_v13 = vor.u32 %v227_v52, %v226_v51  ;;  %v314_v39 = vor.u32 8388608, %v313_v24 }
 0x232   :  { %v990_v14 = vpop.f32.mrb[6].mxu1  ;;  %v1990_v15 = vpop.f32.mrb[6].mxu0 }
 0x233   :  { %1175 = vst [vmem:[#allocation20 + $0x8] sm:$0xff] %v990_v14  ;;  %v1992_v16 = vpop.f32.mrb[7].mxu0  ;;  %v992_v17 = vpop.f32.mrb[7].mxu1  ;;  %v1141_v20 = vmul.f32 %v1990_v15, %v1990_v15  ;;  %v248_v14 = vsel %vm238_vm3, %v234_v53, 1326507024  ;;  %v247_v27 = vsel %vm235_vm4, %v2032_v12, %v228_v13  ;;  %v245_v33 = vsel %vm237_vm5, %v228_v13, %v244_v23 }
 0x234   :  { %1214 = vst [vmem:[#allocation20 + $0x18] sm:$0xff] %v992_v17  ;;  %v1178_v21 = vmul.f32 %v1992_v16, %v1992_v16  ;;  %v320_v17 = vand.u32 31, %v318_v62  ;;  %v249_v28 = vsel %vm237_vm5, %v231_v6, %v248_v14  ;;  %v240_v24 = vsel %vm238_vm3, %v228_v13, 2102212464 }
 0x235   :  { %1106 = vadd.xlane.f32.xlu0 %v1104_v18  ;;  %1179 = vadd.xlane.f32.xlu1 %v1177_v19  ;;  %v250_v35 = vsel %vm236_vm6, %v247_v27, %v249_v28 }
 0x236   :  { %v2050_v29 = vsub.s32 32, %v320_v17  ;;  %v332_v47 = vshll.u32 %v1734_v1, %v320_v17  ;;  %v335_v53 = vshll.u32 %v1731_v38, %v320_v17  ;;  %v326_v62 = vshll.u32 %v1733_v45, %v320_v17 }
 0x238   :  { %v333_v48 = vshrl.u32 %v1731_v38, %v2050_v29  ;;  %v327_v6 = vshrl.u32 %v1735_v49, %v2050_v29 }
 0x239   :  { %1144 = vadd.xlane.f32.xlu1 %v1141_v20  ;;  %v211_v20 = vor.u32 8388608, %v210_v54  ;;  %v336_v54 = vshrl.u32 %v1732_v40, %v2050_v29 }
 0x23b   :  { %v2058_v34 = vshll.u32 %v211_v20, 8  ;;  %v2088_v20 = vld [vmem:[#allocation11] ss:$0 sm:$0xff]  ;;  %v337_v23 = vor.u32 %v336_v54, %v335_v53 }
 0x23d   :  { %1181 = vadd.xlane.f32.xlu1 %v1178_v21  ;;  %v2038_v21 = vor.u32 %v221_v57, %v220_v56  ;;  %v2070_v51 = vmul.u32.u64.low %v2058_v34, %v250_v35  ;;  %v2071_v52 = vmul.u32.u64.high %v2058_v34, %v250_v35, %v2070_v51  ;;  %v323_v57 = vshll.u32 %v1736_v55, %v320_v17 }
 0x23f   :  { %v243_v32 = vsel %vm235_vm4, %v2038_v21, %v2032_v12 }
 0x240   :  { %v246_v46 = vsel %vm236_vm6, %v243_v32, %v245_v33 }
 0x241   :  { %1108 = vadd.xlane.f32.xlu1 %v1105_v22  ;;  %v2084_v14 = vmul.u32.u64.low %v2058_v34, %v246_v46  ;;  %v2085_v40 = vmul.u32.u64.high %v2058_v34, %v246_v46, %v2084_v14 }
 0x243   :  { %vm260_vm11 = vc.u32 %v2071_v52, %v2084_v14 }
 0x2ae   :  { %v1071_v63 = vpop.xlane.xlu1 %1070  ;;  %v999_v3 = vpop.xlane.xlu0 %998 }
 0x2af   :  { %v1074_v8 = vmul.f32 0.0078125, %v1071_v63  ;;  %v1003_v11 = vmul.f32 0.0078125, %v999_v3  ;;  %v324_v3 = vshrl.u32 %v1733_v45, %v2050_v29  ;;  %v219_v45 = vshrl.u32 %v1736_v55, %v2010_v36 }
 0x2b1   :  { %v1076_v18 = vadd.f32 1e-06, %v1074_v8  ;;  %v1005_v19 = vadd.f32 1e-06, %v1003_v11  ;;  %v329_v8 = vshll.u32 %v1735_v49, %v320_v17  ;;  %v330_v11 = vshrl.u32 %v1734_v1, %v2050_v29 }
 0x2b2   :  { %v1035_v22 = vpop.xlane.xlu1 %1034  ;;  %v325_v28 = vor.u32 %v324_v3, %v323_v57 }
 0x2b3   :  { %1404 = vrsqrt.f32 %v1076_v18  ;;  %v1038_v26 = vmul.f32 0.0078125, %v1035_v22  ;;  %v334_v18 = vor.u32 %v333_v48, %v332_v47  ;;  %v331_v32 = vor.u32 %v330_v11, %v329_v8 }
 0x2b4   :  { %1406 = vrsqrt.f32 %v1005_v19  ;;  %v239_v48 = vsel %vm235_vm4, %v219_v45, %v2038_v21  ;;  %v322_v45 = vshrl.u32 %v1736_v55, %v2050_v29 }
 0x2b5   :  { %v1040_v30 = vadd.f32 1e-06, %v1038_v26  ;;  %v343_v55 = vsel %vm341_vm7, %v331_v32, 2102212464 }
 0x2b6   :  { %v1001_v0 = vpop.xlane.xlu1 %1000 }
 0x2b7   :  { %1408 = vrsqrt.f32 %v1040_v30  ;;  %v1004_v37 = vmul.f32 0.0078125, %v1001_v0  ;;  %v2097_v30 = vor.u32 %v327_v6, %v326_v62  ;;  %v2111_v0 = vshll.u32 %v314_v39, 8 }
 0x2b9   :  { %v1006_v50 = vadd.f32 1e-06, %v1004_v37  ;;  %v346_v53 = vsel %vm338_vm8, %v325_v28, %v2097_v30 }
 0x2ba   :  { %v1073_v56 = vpop.xlane.xlu1 %1072 }
 0x2bb   :  { %1410 = vrsqrt.f32 %v1006_v50  ;;  %v1075_v63 = vmul.f32 0.0078125, %v1073_v56  ;;  %v241_v50 = vsel %vm237_vm5, %v2032_v12, %v240_v24  ;;  %v261_v12 = vadd.s32 1, %v2085_v40 }
 0x2bc   :  { %v350_v56 = vsel %vm338_vm8, %v2097_v30, %v331_v32 }
 0x2bd   :  { %v1405_v38 = vpop.eup %1404  ;;  %v1077_v19 = vadd.f32 1e-06, %v1075_v63  ;;  %v242_v63 = vsel %vm236_vm6, %v239_v48, %v241_v50 }
 0x2be   :  { %v1407_v22 = vpop.eup %1406  ;;  %v1143_v49 = vpop.xlane.xlu0 %1142  ;;  %v1080_v1 = vmul.f32 %v1405_v38, %v1958_v59  ;;  %v347_v59 = vsel %vm341_vm7, %v334_v18, 920167782 }
 0x2bf   :  { %v1037_v17 = vpop.xlane.xlu1 %1036  ;;  %1412 = vrsqrt.f32 %v1077_v19  ;;  %v1009_v27 = vmul.f32 %v1407_v22, %v1956_v58  ;;  %v351_v58 = vsel %vm341_vm7, %v337_v23, 1326507024  ;;  %v1146_v51 = vmul.f32 0.0078125, %v1143_v49 }
 0x2c0   :  { %v1039_v26 = vmul.f32 0.0078125, %v1037_v17  ;;  %v2100_v36 = vmul.f32 %v2088_v20, %v1080_v1  ;;  %v352_v57 = vsel %vm340_vm9, %v334_v18, %v351_v58  ;;  %v258_v22 = vmul.u32 %v2058_v34, %v242_v63  ;;  %v1297_v63 = vld [vmem:[#allocation13] ss:$0 sm:$0xff] }
 0x2c1   :  { %v1409_v33 = vpop.eup %1408  ;;  %v2107_v13 = vmul.f32 %v2088_v20, %v1009_v27  ;;  %v1148_v11 = vadd.f32 1e-06, %v1146_v51  ;;  %v353_v43 = vsel %vm339_vm10, %v350_v56, %v352_v57  ;;  %v344_v58 = vsel %vm340_vm9, %v2097_v30, %v343_v55 }
 0x2c2   :  { %v1041_v35 = vadd.f32 1e-06, %v1039_v26  ;;  %v1107_v37 = vpop.xlane.xlu0 %1106  ;;  %1092 = vrot.lane.b32.xlu1 %v2100_v36, %s1737_s8  ;;  %v1044_v47 = vmul.f32 %v1409_v33, %v1960_v60  ;;  %v348_v60 = vsel %vm340_vm9, %v331_v32, %v347_v59  ;;  %v342_v33 = vsel %vm338_vm8, %v322_v45, %v325_v28 }
 0x2c3   :  { %v1180_v46 = vpop.xlane.xlu1 %1179  ;;  %v1110_v39 = vmul.f32 0.0078125, %v1107_v37  ;;  %1021 = vrot.lane.b32.xlu0 %v2107_v13, %s1737_s8  ;;  %v349_v8 = vsel %vm339_vm10, %v346_v53, %v348_v60  ;;  %v2164_v26 = vmul.u32.u64.low %v2111_v0, %v353_v43  ;;  %v2165_v27 = vmul.u32.u64.high %v2111_v0, %v353_v43, %v2164_v26 }
 0x2c4   :  { %v2131_v21 = vmul.f32 %v2088_v20, %v1044_v47  ;;  %1414 = vrsqrt.f32 %v1041_v35  ;;  %v1183_v38 = vmul.f32 0.0078125, %v1180_v46  ;;  %v345_v48 = vsel %vm339_vm10, %v342_v33, %v344_v58 }
 0x2c5   :  { %v1411_v54 = vpop.eup %1410  ;;  %v1112_v62 = vadd.f32 1e-06, %v1110_v39  ;;  %v2158_v23 = vmul.u32.u64.low %v2111_v0, %v349_v8  ;;  %v2159_v49 = vmul.u32.u64.high %v2111_v0, %v349_v8, %v2158_v23  ;;  %v361_v41 = vmul.u32 %v2111_v0, %v345_v48 }
 0x2c6   :  { %v1010_v6 = vmul.f32 %v1411_v54, %v1968_v42  ;;  %v262_v42 = vsel %vm260_vm11, %v261_v12, %v2085_v40  ;;  %v1185_v34 = vadd.f32 1e-06, %v1183_v38  ;;  %vm295_vm9 = vweird.f32 %v2004_v25 }
 0x2c7   :  { %v1145_v3 = vpop.xlane.xlu1 %1144  ;;  %1416 = vrsqrt.f32 %v1112_v62  ;;  %1056 = vrot.lane.b32.xlu0 %v2131_v21, %s1737_s8  ;;  %v263_v40 = vadd.s32 %v262_v42, %v258_v22  ;;  %v364_v28 = vadd.s32 1, %v2159_v49  ;;  %vm363_vm12 = vc.u32 %v2165_v27, %v2158_v23 }
 0x2c8   :  { %v2151_v18 = vmul.f32 %v2088_v20, %v1010_v6  ;;  %v1147_v17 = vmul.f32 0.0078125, %v1145_v3  ;;  %1418 = vrsqrt.f32 %v1148_v11 }
 0x2c9   :  { %v1413_v19 = vpop.eup %1412  ;;  %1420 = vrsqrt.f32 %v1185_v34  ;;  %v264_v51 = vadd.s32 536870912, %v263_v40  ;;  %v365_v54 = vsel %vm363_vm12, %v364_v28, %v2159_v49 }
 0x2ca   :  { %v1081_v24 = vmul.f32 %v1413_v19, %v1970_v2  ;;  %v1149_v2 = vadd.f32 1e-06, %v1147_v17  ;;  %v366_v62 = vadd.s32 %v365_v54, %v361_v41 }
 0x2cb   :  { %v1182_v1 = vpop.xlane.xlu1 %1181  ;;  %1023 = vrot.lane.b32.xlu0 %v2151_v18, %s1737_s8 }
 0x2cc   :  { %v2172_v29 = vmul.f32 %v2088_v20, %v1081_v24  ;;  %v1184_v35 = vmul.f32 0.0078125, %v1182_v1  ;;  %1422 = vrsqrt.f32 %v1149_v2  ;;  %v367_v11 = vadd.s32 536870912, %v366_v62 }
 0x2ce   :  { %v1415_v32 = vpop.eup %1414  ;;  %v1186_v30 = vadd.f32 1e-06, %v1184_v35  ;;  %v2216_v45 = vshrl.u32 %v367_v11, 30 }
 0x2cf   :  { %v1109_v59 = vpop.xlane.xlu1 %1108  ;;  %1094 = vrot.lane.b32.xlu0 %v2172_v29, %s1737_s8  ;;  %v1045_v53 = vmul.f32 %v1415_v32, %v1974_v4 }
 0x2d0   :  { %v1111_v37 = vmul.f32 0.0078125, %v1109_v59  ;;  %v369_v17 = vshll.u32 %v2216_v45, 30  ;;  %v259_v59 = vadd.s32 %v2084_v14, %v2071_v52  ;;  %v392_v44 = vsub.s32 4, %v2216_v45 }
 0x2d1   :  { %v1417_v46 = vpop.eup %1416  ;;  %v2198_v12 = vmul.f32 %v2088_v20, %v1045_v53 }
 0x2d2   :  { %v1113_v47 = vadd.f32 1e-06, %v1111_v37  ;;  %v1116_v50 = vmul.f32 %v1417_v46, %v1962_v61  ;;  %v1419_v60 = vpop.eup %1418  ;;  %v2195_v61 = vshrl.u32 %v264_v51, 30  ;;  %v370_v1 = vsub.s32 %v366_v62, %v369_v17 }
 0x2d3   :  { %v1152_v56 = vmul.f32 %v1419_v60, %v1982_v9  ;;  %v1421_v57 = vpop.eup %1420  ;;  %v362_v51 = vadd.s32 %v2158_v23, %v2165_v27 }
 0x2d4   :  { %1424 = vrsqrt.f32 %v1113_v47  ;;  %v2188_v39 = vmul.f32 %v2088_v20, %v1116_v50  ;;  %v266_v4 = vshll.u32 %v2195_v61, 30  ;;  %v1189_v6 = vmul.f32 %v1421_v57, %v1984_v10 }
 0x2d5   :  { %1426 = vrsqrt.f32 %v1186_v30  ;;  %v2204_v3 = vmul.f32 %v1297_v63, %v1152_v56  ;;  %v372_v26 = vsub.s32 0, %v370_v1 }
 0x2d6   :  { %1128 = vrot.lane.b32.xlu1 %v2188_v39, %s1737_s8  ;;  %v1423_v0 = vpop.eup %1422  ;;  %v267_v38 = vsub.s32 %v263_v40, %v266_v4  ;;  %v2210_v43 = vmul.f32 %v1297_v63, %v1189_v6 }
 0x2d7   :  { %v1153_v22 = vmul.f32 %v1423_v0, %v1990_v15  ;;  %v1274_v55 = vmin.u32 %v372_v26, %v370_v1 }
 0x2d8   :  { %v269_v10 = vsub.s32 0, %v267_v38 }
 0x2d9   :  { %v2222_v49 = vmul.f32 %v1297_v63, %v1153_v22  ;;  %v374_v40 = vclz %v1274_v55 }
 0x2da   :  { %1058 = vrot.lane.b32.xlu1 %v2198_v12, %s1737_s8  ;;  %v1270_v15 = vmin.u32 %v269_v10, %v267_v38 }
 0x2db   :  { %v1275_v2 = vadd.s32 4294967294, %v374_v40 }
 0x2dc   :  { %v271_v24 = vclz %v1270_v15 }
 0x2dd   :  { %vm1276_vm14 = vcmp.lt.s32.totalorder %v1275_v2, 0 }
 0x2de   :  { %v1425_v8 = vpop.eup %1424  ;;  %1164 = vrot.lane.b32.xlu1 %v2204_v3, %s1737_s8  ;;  %v1271_v34 = vadd.s32 4294967294, %v271_v24  ;;  %v377_v37 = vsel %vm1276_vm14, 0, %v1275_v2 }
 0x2df   :  { %v1117_v9 = vmul.f32 %v1425_v8, %v1976_v5  ;;  %v1427_v42 = vpop.eup %1426  ;;  %v382_v48 = vsub.s32 4294967266, %v377_v37  ;;  %v378_v30 = vsub.s32 32, %v377_v37  ;;  %v379_v54 = vshll.u32 %v370_v1, %v377_v37 }
 0x2e0   :  { %v1190_v5 = vmul.f32 %v1427_v42, %v1992_v16  ;;  %vm1272_vm13 = vcmp.lt.s32.totalorder %v1271_v34, 0  ;;  %v289_v8 = vsub.s32 4, %v2195_v61  ;;  %v393_v1 = vsel %vm308_vm1, %v392_v44, %v2216_v45 }
 0x2e1   :  { %v2213_v19 = vmul.f32 %v2088_v20, %v1117_v9  ;;  %v274_v33 = vsel %vm1272_vm13, 0, %v1271_v34  ;;  %v383_v53 = vadd.s32 127, %v382_v48  ;;  %v380_v56 = vshrl.u32 %v362_v51, %v378_v30 }
 0x2e2   :  { %1201 = vrot.lane.b32.xlu1 %v2210_v43, %s1737_s8  ;;  %v2228_v20 = vmul.f32 %v1297_v63, %v1190_v5  ;;  %v279_v16 = vsub.s32 4294967266, %v274_v33  ;;  %v275_v58 = vsub.s32 32, %v274_v33  ;;  %v276_v32 = vshll.u32 %v267_v38, %v274_v33 }
 0x2e3   :  { %1130 = vrot.lane.b32.xlu0 %v2213_v19, %s1737_s8  ;;  %v384_v52 = vshll.u32 %v383_v53, 23  ;;  %v381_v57 = vor.u32 %v380_v56, %v379_v54  ;;  %v290_v9 = vsel %vm205_vm15, %v289_v8, %v2195_v61  ;;  %v395_v26 = vsel %vm307_vm2, 0, %v393_v1 }
 0x2e4   :  { %v280_v35 = vadd.s32 127, %v279_v16  ;;  %v277_v46 = vshrl.u32 %v259_v59, %v275_v58  ;;  %v292_v22 = vsel %vm204_vm0, 0, %v290_v9  ;;  %v606_v7 = vadd.s32 3, %v395_v26 }
 0x2e5   :  { %v385_v62 = vor.u32 4788187, %v384_v52  ;;  %v388_v0 = vcvt.s32.f32 %v381_v57  ;;  %v502_v10 = vadd.s32 3, %v292_v22  ;;  %v296_v15 = vand.u32 3, %v292_v22 }
 0x2e6   :  { %v281_v47 = vshll.u32 %v280_v35, 23  ;;  %v278_v28 = vor.u32 %v277_v46, %v276_v32  ;;  %v399_v59 = vand.u32 3, %v395_v26  ;;  %v607_v35 = vand.u32 3, %v606_v7 }
 0x2e7   :  { %1166 = vrot.lane.b32.xlu0 %v2222_v49, %s1737_s8  ;;  %v386_v4 = vand.u32 2147483647, %v385_v62  ;;  %v503_v24 = vand.u32 3, %v502_v10  ;;  %vm298_vm3 = vcmp.eq.s32.totalorder %v296_v15, 0  ;;  %vm301_vm4 = vcmp.eq.s32.totalorder %v296_v15, 2 }
 0x2e8   :  { %v282_v50 = vor.u32 4788187, %v281_v47  ;;  %v285_v41 = vcvt.s32.f32 %v278_v28  ;;  %vm297_vm7 = vcmp.lt.s32.totalorder %v296_v15, 2  ;;  %vm404_vm10 = vcmp.eq.s32.totalorder %v399_v59, 2 }
 0x2e9   :  { %v389_v23 = vmul.f32 %v388_v0, %v386_v4  ;;  %vm505_vm5 = vcmp.eq.s32.totalorder %v503_v24, 0  ;;  %vm508_vm6 = vcmp.eq.s32.totalorder %v503_v24, 2  ;;  %vm504_vm8 = vcmp.lt.s32.totalorder %v503_v24, 2 }
 0x2ea   :  { %v283_v60 = vand.u32 2147483647, %v282_v50  ;;  %vm401_vm11 = vcmp.eq.s32.totalorder %v399_v59, 0  ;;  %vm609_vm12 = vcmp.eq.s32.totalorder %v607_v35, 0  ;;  %vm612_vm13 = vcmp.eq.s32.totalorder %v607_v35, 2 }
 0x2eb   :  { %1203 = vrot.lane.b32.xlu0 %v2228_v20, %s1737_s8  ;;  %v390_v11 = vxor.u32 2147483648, %v389_v23  ;;  %vm400_vm14 = vcmp.lt.s32.totalorder %v399_v59, 2 }
 0x2ec   :  { %v286_v14 = vmul.f32 %v285_v41, %v283_v60 }
 0x2ed   :  { %v391_v38 = vsel %vm308_vm1, %v390_v11, %v389_v23 }
 0x2ee   :  { %v287_v63 = vxor.u32 2147483648, %v286_v14  ;;  %v394_v42 = vsel %vm307_vm2, %v2007_v31, %v391_v38 }
 0x2f0   :  { %v288_v6 = vsel %vm205_vm15, %v287_v63, %v286_v14  ;;  %vm608_vm15 = vcmp.lt.s32.totalorder %v607_v35, 2 }
 0x2f1   :  { %v291_v27 = vsel %vm204_vm0, %v2004_v25, %v288_v6  ;;  %vm398_vm0 = vweird.f32 %v2007_v31 }
 0x2f2   :  { %1428 = vcosq.f32 %v291_v27 }
 0x2f3   :  { %1430 = vsinq.f32 %v291_v27 }
 0x2f4   :  { %1432 = vcosq.f32 %v394_v42 }
 0x2f5   :  { %1434 = vsinq.f32 %v394_v42 }
 0x2fc   :  { %v1429_v5 = vpop.eup %1428 }
 0x2fd   :  { %v1431_v17 = vpop.eup %1430  ;;  %v302_v34 = vxor.u32 2147483648, %v1429_v5 }
 0x2fe   :  { %v299_v61 = vxor.u32 2147483648, %v1431_v17  ;;  %v1433_v2 = vpop.eup %1432 }
 0x2ff   :  { %v303_v40 = vsel %vm301_vm4, %v302_v34, %v1431_v17  ;;  %v510_v16 = vsel %vm508_vm6, %v302_v34, %v1431_v17  ;;  %v1435_v58 = vpop.eup %1434  ;;  %v405_v32 = vxor.u32 2147483648, %v1433_v2 }
 0x300   :  { %v300_v55 = vsel %vm298_vm3, %v1429_v5, %v299_v61  ;;  %v507_v33 = vsel %vm505_vm5, %v1429_v5, %v299_v61  ;;  %v402_v47 = vxor.u32 2147483648, %v1435_v58 }
 0x301   :  { %v304_v45 = vsel %vm297_vm7, %v300_v55, %v303_v40  ;;  %v511_v37 = vsel %vm504_vm8, %v507_v33, %v510_v16  ;;  %v406_v60 = vsel %vm404_vm10, %v405_v32, %v1435_v58  ;;  %v614_v52 = vsel %vm612_vm13, %v405_v32, %v1435_v58 }
 0x302   :  { %v305_v46 = vsel %vm295_vm9, nan, %v304_v45  ;;  %v512_v48 = vsel %vm295_vm9, nan, %v511_v37  ;;  %v403_v54 = vsel %vm401_vm11, %v1433_v2, %v402_v47  ;;  %v611_v56 = vsel %vm609_vm12, %v1433_v2, %v402_v47 }
 0x303   :  { %v1090_v50 = vmul.f32 %v2100_v36, %v305_v46  ;;  %v1019_v53 = vmul.f32 %v2107_v13, %v305_v46  ;;  %v1054_v36 = vmul.f32 %v2131_v21, %v305_v46  ;;  %v407_v63 = vsel %vm400_vm14, %v403_v54, %v406_v60 }
 0x304   :  { %v615_v4 = vsel %vm608_vm15, %v611_v56, %v614_v52  ;;  %v408_v0 = vsel %vm398_vm0, nan, %v407_v63  ;;  %v1126_v44 = vmul.f32 %v2188_v39, %v305_v46  ;;  %v1162_v24 = vmul.f32 %v2204_v3, %v305_v46 }
 0x305   :  { %v616_v6 = vsel %vm398_vm0, nan, %v615_v4  ;;  %v1020_v27 = vmul.f32 %v2151_v18, %v408_v0  ;;  %v1091_v31 = vmul.f32 %v2172_v29, %v408_v0  ;;  %v1055_v17 = vmul.f32 %v2198_v12, %v408_v0 }
 0x306   :  { %v1199_v39 = vmul.f32 %v2210_v43, %v305_v46  ;;  %v1127_v55 = vmul.f32 %v2213_v19, %v408_v0  ;;  %v1163_v3 = vmul.f32 %v2222_v49, %v408_v0 }
 0x334   :  { %v1093_v28 = vpop.permute.xlu1 %1092 }
 0x335   :  { %v1096_v51 = vmul.f32 %v1093_v28, %v512_v48  ;;  %v1022_v30 = vpop.permute.xlu0 %1021 }
 0x336   :  { %v1025_v25 = vmul.f32 %v1022_v30, %v512_v48 }
 0x337   :  { %v1098_v41 = vadd.f32 %v1096_v51, %v1090_v50 }
 0x338   :  { %v1027_v14 = vadd.f32 %v1025_v25, %v1019_v53 }
 0x339   :  { %1101 = vst [vmem:[#allocation17 + $0x20] sm:$0xff] %v1098_v41  ;;  %v1057_v57 = vpop.permute.xlu0 %1056 }
 0x33a   :  { %1029 = vst [vmem:[#allocation17] sm:$0xff] %v1027_v14  ;;  %v1060_v62 = vmul.f32 %v1057_v57, %v512_v48 }
 0x33c   :  { %v1062_v13 = vadd.f32 %v1060_v62, %v1054_v36 }
 0x33d   :  { %v1024_v23 = vpop.permute.xlu0 %1023 }
 0x33e   :  { %1065 = vst [vmem:[#allocation17 + $0x10] sm:$0xff] %v1062_v13  ;;  %v1026_v8 = vmul.f32 %v1024_v23, %v616_v6 }
 0x340   :  { %v1028_v11 = vadd.f32 %v1026_v8, %v1020_v27 }
 0x341   :  { %v1095_v9 = vpop.permute.xlu0 %1094 }
 0x342   :  { %1030 = vst [vmem:[#allocation17 + $0x8] sm:$0xff] %v1028_v11  ;;  %v1097_v38 = vmul.f32 %v1095_v9, %v616_v6 }
 0x344   :  { %v1099_v22 = vadd.f32 %v1097_v38, %v1091_v31 }
 0x346   :  { %1102 = vst [vmem:[#allocation17 + $0x28] sm:$0xff] %v1099_v22 }
 0x348   :  { %v1129_v21 = vpop.permute.xlu1 %1128 }
 0x349   :  { %v1132_v42 = vmul.f32 %v1129_v21, %v512_v48 }
 0x34b   :  { %v1134_v10 = vadd.f32 %v1132_v42, %v1126_v44 }
 0x34c   :  { %v1059_v5 = vpop.permute.xlu1 %1058 }
 0x34d   :  { %1137 = vst [vmem:[#allocation17 + $0x30] sm:$0xff] %v1134_v10  ;;  %v1061_v15 = vmul.f32 %v1059_v5, %v616_v6 }
 0x34f   :  { %v1063_v18 = vadd.f32 %v1061_v15, %v1055_v17 }
 0x350   :  { %v1165_v1 = vpop.permute.xlu1 %1164 }
 0x351   :  { %1066 = vst [vmem:[#allocation17 + $0x18] sm:$0xff] %v1063_v18  ;;  %v1168_v26 = vmul.f32 %v1165_v1, %v512_v48 }
 0x353   :  { %v1170_v29 = vadd.f32 %v1168_v26, %v1162_v24 }
 0x354   :  { %v1202_v61 = vpop.permute.xlu1 %1201 }
 0x355   :  { %v1131_v34 = vpop.permute.xlu0 %1130  ;;  %1172 = vst [vmem:[#allocation18] sm:$0xff] %v1170_v29  ;;  %v1205_v7 = vmul.f32 %v1202_v61, %v512_v48 }
 0x356   :  { %v1133_v40 = vmul.f32 %v1131_v34, %v616_v6 }
 0x357   :  { %v1207_v12 = vadd.f32 %v1205_v7, %v1199_v39 }
 0x358   :  { %v1135_v33 = vadd.f32 %v1133_v40, %v1127_v55 }
 0x359   :  { %v1167_v16 = vpop.permute.xlu0 %1166  ;;  %1210 = vst [vmem:[#allocation18 + $0x10] sm:$0xff] %v1207_v12 }
 0x35a   :  { %1138 = vst [vmem:[#allocation17 + $0x38] sm:$0xff] %v1135_v33  ;;  %v1169_v2 = vmul.f32 %v1167_v16, %v616_v6 }
 0x35b   :  { %1645 = shalt.err (!%p1642_p6)
}
 0x35c   :  { %s1646_s22 = scalar_lea.hbm %s2324_s9, 1024 }
 0x35d   :  { %p1647_p7 = scmp.ne.s32.totalorder %s2324_s9, %s1646_s22  ;;  %p1650_p8 = scmp.lt.u32.totalorder %s1646_s22, %s2324_s9 }
 0x35f   :  { %p1652_p9 = pnand %p1650_p8, %p1647_p7 }
 0x361   :  { %1655 = shalt.err (!%p1652_p9)
}
 0x362   :  { %1226 = dma.vmem_to_hbm [thread:$0]  %s1221_s14, 1024, %s2324_s9, [#allocation4], %s1721_s26, %s1721_s26, %s1722_s12   ;;  %v1171_v43 = vadd.f32 %v1169_v2, %v1163_v3  ;;  %v1204_v19 = vpop.permute.xlu0 %1203  ;;  %v1200_v49 = vmul.f32 %v2228_v20, %v408_v0 }
 0x363   :  { %s1739_s18 = smov [#allocation18]   ;;  %v1206_v59 = vmul.f32 %v1204_v19, %v616_v6  ;;  %s1740_s7 = smov [#allocation20]  }
 0x364   :  { %s1232_s21 = sshll.u32 %s1739_s18, 4  ;;  %1173 = vst [vmem:[#allocation18 + $0x8] sm:$0xff] %v1171_v43  ;;  %s1244_s19 = sshll.u32 %s1740_s7, 4  ;;  %s1233_s21 = int_to_ptr.vmem [resolvable:$true] %s1232_s21  ;;  %s2278_s19 = int_to_ptr.vmem [resolvable:$true] %s1244_s19 }
 0x365   :  { %v1208_v58 = vadd.f32 %v1206_v59, %v1200_v49  ;;  %s1656_s25 = scalar_lea.vmem %s1233_s21, 512  ;;  %p1661_p11 = scmp.lt.s32.totalorder %s1233_s21, %s1233_s21 }
 0x366   :  { %p1657_p10 = scmp.ne.s32.totalorder %s1233_s21, %s1656_s25  ;;  %p1662_p12 = scmp.lt.s32.totalorder %s1656_s25, %s1656_s25 }
 0x367   :  { %1211 = vst [vmem:[#allocation18 + $0x18] sm:$0xff] %v1208_v58 }
 0x368   :  { %p1663_p13 = por %p1662_p12, %p1661_p11 }
 0x36a   :  { %p1664_p0 = pnand %p1663_p13, %p1657_p10 }
 0x36c   :  { %1667 = shalt.err (!%p1664_p0)
}
 0x36d   :  { %s1668_s29 = scalar_lea.hbm %s2325_s10, 512 }
 0x36e   :  { %p1669_p1 = scmp.ne.s32.totalorder %s2325_s10, %s1668_s29  ;;  %p1672_p2 = scmp.lt.u32.totalorder %s1668_s29, %s2325_s10 }
 0x370   :  { %p1674_p3 = pnand %p1672_p2, %p1669_p1 }
 0x372   :  { %1677 = shalt.err (!%p1674_p3)
}
 0x373   :  { %1238 = dma.vmem_to_hbm [thread:$0]  %s1233_s21, 512, %s2325_s10, [#allocation19], %s1721_s26, %s1721_s26, %s1722_s12  }
 0x374   :  { %s1678_s8 = scalar_lea.vmem %s2278_s19, 512  ;;  %p1683_p5 = scmp.lt.s32.totalorder %s2278_s19, %s2278_s19 }
 0x375   :  { %p1679_p4 = scmp.ne.s32.totalorder %s2278_s19, %s1678_s8  ;;  %p1684_p6 = scmp.lt.s32.totalorder %s1678_s8, %s1678_s8 }
 0x377   :  { %p1685_p7 = por %p1684_p6, %p1683_p5 }
 0x379   :  { %p1686_p8 = pnand %p1685_p7, %p1679_p4 }
 0x37b   :  { %1689 = shalt.err (!%p1686_p8)
}
 0x37c   :  { %s1690_s15 = scalar_lea.hbm %s2326_s11, 512 }
 0x37d   :  { %p1691_p9 = scmp.ne.s32.totalorder %s2326_s11, %s1690_s15  ;;  %p1694_p10 = scmp.lt.u32.totalorder %s1690_s15, %s2326_s11 }
 0x37f   :  { %p1696_p11 = pnand %p1694_p10, %p1691_p9 }
 0x381   :  { %1699 = shalt.err (!%p1696_p11)
}
 0x382   :  { %1250 = dma.vmem_to_hbm [thread:$0]  %s2278_s19, 512, %s2326_s11, [#allocation19], %s1721_s26, %s1721_s26, %s1722_s12  }
 0x383   :  { %1710 = dma.done.wait [#allocation4], 1024  }
 0x384   :  { %1711 = vsyncadd [#allocation4], 4294966272 }
 0x385   :  { %1712 = dma.done.wait [#allocation19], 1024  }
 0x386   :  { %1713 = vsyncadd [#allocation19], 4294966272 }
 0x387   :  { %1260 = vsyncpa [#allocation3], 1 }
 0x388   :  { %1261 = vsyncpa [#allocation6], 1 }
 0x389   :  { %1262 = vsyncpa [#allocation9], 1 }
 0x38a   :  { %1263 = vsyncpa [#allocation12], 1 }
 0x38b   :  { %1264 = vsyncpa [#allocation15], 1 }
 0x38c   :  { %1265 = vsyncpa [#allocation4], 1 }
 0x38d   :  { %1266 = vsyncpa [#allocation19], 1 }

</bundles_post_ra>
